<compile_context>
chip_gen: v7x
topology: tpu7x:2x2x1
jax: 0.10.0
libtpu: 0.0.40
codegen_flags: <defaults>
</compile_context>

<pallas_src>
import functools

import jax
import jax.numpy as jnp
from jax import lax
from jax.experimental import pallas as pl
from jax.experimental.pallas import tpu as pltpu

EPS = 1e-5                     # nn.BatchNorm2d default eps
LANE = 128                     # TPU lane width; channels padded to a multiple
ACT_DTYPE = jnp.bfloat16       # MXU operand / intermediate-activation dtype


def _round_up(x, m):
    return (x + m - 1) // m * m


def _vmem_limit_bytes():
    """Generation-aware scoped-VMEM limit (v5e/v6e: ~96MiB, v7x: ~48MiB)."""
    try:
        cap = int(pltpu.get_tpu_info().vmem_capacity_bytes)
    except Exception:
        cap = 64 * 1024 * 1024
    return int(max(32 * 1024 * 1024, min(96 * 1024 * 1024, cap * 3 // 4)))


_VMEM_LIMIT = _vmem_limit_bytes()


def _auto_row_tile(h, w, cin_p, cout_p):
    """Largest divisor of H (<=32) whose tile footprint fits the VMEM budget."""
    wp2 = w + 2
    per_row = (2 * 2 * wp2 * cin_p       # input halo block, bf16, 2 buffers
               + 2 * 2 * wp2 * cout_p    # output block, bf16, 2 buffers
               + 2 * w * 3 * cin_p       # per-dy im2col scratch (bf16)
               + 4 * w * cout_p)         # f32 accumulator
    fixed = 2 * 2 * 9 * cin_p * cout_p   # weights (bf16, double-buffered)
    budget = max(_VMEM_LIMIT // 2 - fixed, per_row)
    cap = int(max(1, min(32, budget // per_row)))
    divs = [d for d in range(1, h + 1) if h % d == 0 and d <= cap]
    return max(divs) if divs else h


# ---------------------------------------------------------------------------
# In-kernel helpers
# ---------------------------------------------------------------------------
def _load_tile(x_ref, th, use_halo):
    """Return the (TH+2, W+2, C) activation tile for the current grid step."""
    if use_halo:
        return x_ref[0]
    hh = pl.program_id(1)
    return x_ref[0, pl.ds(hh * th, th + 2), :, :]


def _conv_taps(x, w_ref, patches_ref):
    """3x3 'same' conv of one row tile: per-dy im2col + 3 accumulated matmuls.

    x          : (TH+2, W+2, Cin_p) bf16 tile (halo included)
    w_ref      : (9*Cin_p, Cout_p)  flattened HWIO weights (rows: ky, kx, ci)
    patches_ref: (TH*W, 3*Cin_p)    bf16 VMEM scratch
    returns      (TH*W, Cout_p)     f32 accumulator
    """
    thp2, wp2, cin_p = x.shape
    th, w = thp2 - 2, wp2 - 2
    cout_p = w_ref.shape[-1]
    acc = jnp.zeros((th * w, cout_p), jnp.float32)
    for dy in range(3):
        for dx in range(3):
            patches_ref[:, dx * cin_p:(dx + 1) * cin_p] = (
                x[dy:dy + th, dx:dx + w, :].reshape(th * w, cin_p))
        acc = acc + jnp.dot(
            patches_ref[...],
            w_ref[dy * 3 * cin_p:(dy + 1) * 3 * cin_p, :],
            preferred_element_type=jnp.float32)
    return acc


def _write_stats(acc, ps_ref):
    """Per-tile BN partials: [sum ; sum((x - tile_mean)^2)] (stable merge)."""
    mu = jnp.mean(acc, axis=0, keepdims=True)
    ps_ref[0, 0, 0:1, :] = jnp.sum(acc, axis=0, keepdims=True)
    ps_ref[0, 0, 1:2, :] = jnp.sum((acc - mu) ** 2, axis=0, keepdims=True)


def _store_conv_out(y_ref, yt, th, w, use_halo, pad_out):
    """Write the (TH, W, Cout_p) conv result (optionally into a padded buffer)."""
    cout_p = yt.shape[-1]
    if pad_out:
        zcol = jnp.zeros((th, 1, cout_p), y_ref.dtype)
        if use_halo:
            y_ref[0, :, 1:w + 1, :] = yt
            y_ref[0, :, 0:1, :] = zcol
            y_ref[0, :, w + 1:w + 2, :] = zcol
        else:
            hh = pl.program_id(1)
            y_ref[0, pl.ds(hh * th + 1, th), 1:w + 1, :] = yt
            y_ref[0, pl.ds(hh * th + 1, th), 0:1, :] = zcol
            y_ref[0, pl.ds(hh * th + 1, th), w + 1:w + 2, :] = zcol
        # Top/bottom ring rows of the padded buffer stay unwritten; the
        # consumer masks the whole 1-pixel ring, so their content is irrelevant.
    else:
        y_ref[0] = yt


# ---------------------------------------------------------------------------
# Kernels
# ---------------------------------------------------------------------------
def _conv1_kernel(x_ref, w_ref, y_ref, ps_ref, patches_ref, *,
                  th, use_halo, pad_out):
    """Conv3x3 (bias-free) + fused BN partial statistics."""
    wp2 = x_ref.shape[2]
    w = wp2 - 2
    x = _load_tile(x_ref, th, use_halo)
    acc = _conv_taps(x, w_ref, patches_ref)
    _write_stats(acc, ps_ref)
    yt = acc.reshape(th, w, ps_ref.shape[-1]).astype(y_ref.dtype)
    _store_conv_out(y_ref, yt, th, w, use_halo, pad_out)


def _conv2_fused_kernel(x_ref, sc_ref, sh_ref, w_ref, y_ref, ps_ref,
                        patches_ref, *, th, h_img, use_halo, pad_out):
    """BN1+ReLU (on the loaded raw conv1 tile) fused into Conv3x3 + BN partials."""
    wp2 = x_ref.shape[2]
    cin_p = x_ref.shape[3]
    w = wp2 - 2
    hh = pl.program_id(1)

    x = _load_tile(x_ref, th, use_halo)                       # raw conv1 out
    sc = sc_ref[...].reshape(1, 1, cin_p)
    sh = sh_ref[...].reshape(1, 1, cin_p)
    a = jnp.maximum(x.astype(jnp.float32) * sc + sh, 0.0)     # BN1 + ReLU

    # Zero the 1-pixel "same"-padding ring (rows/cols outside the real image).
    shp = (th + 2, wp2, cin_p)
    row = lax.broadcasted_iota(jnp.int32, shp, 0) + hh * th   # padded-row idx
    col = lax.broadcasted_iota(jnp.int32, shp, 1)             # padded-col idx
    interior = (row >= 1) & (row <= h_img) & (col >= 1) & (col <= w)
    x = jnp.where(interior, a, 0.0).astype(ACT_DTYPE)

    acc = _conv_taps(x, w_ref, patches_ref)
    _write_stats(acc, ps_ref)
    yt = acc.reshape(th, w, ps_ref.shape[-1]).astype(y_ref.dtype)
    _store_conv_out(y_ref, yt, th, w, use_halo, pad_out)


def _bn_relu_kernel(y_ref, sc_ref, sh_ref, o_ref):
    """y -> ReLU(y * scale + shift)  (final BatchNorm normalize + ReLU)."""
    c = o_ref.shape[-1]
    sc = sc_ref[...].reshape(1, 1, c)
    sh = sh_ref[...].reshape(1, 1, c)
    o_ref[0] = jnp.maximum(y_ref[0].astype(jnp.float32) * sc + sh, 0.0)


# ---------------------------------------------------------------------------
# pallas_call wrappers
# ---------------------------------------------------------------------------
def _conv3x3(x_pad, w_mat, th, *, scale=None, shift=None, pad_out, use_halo):
    """x_pad: (N, H+2, W+2, Cin_p) bf16; w_mat: (9*Cin_p, Cout_p) bf16."""
    n, hp2, wp2, cin_p = x_pad.shape
    h, w = hp2 - 2, wp2 - 2
    cout_p = w_mat.shape[-1]
    n_h = h // th
    fused = scale is not None

    if use_halo:
        # One overlapping (TH+2)-row halo window per step (element-indexed).
        x_spec = pl.BlockSpec((1, pl.Element(th + 2), wp2, cin_p),
                              lambda nn, hh: (nn, hh * th, 0, 0))
    else:
        # Fallback: whole padded image resident per batch element.
        x_spec = pl.BlockSpec((1, hp2, wp2, cin_p),
                              lambda nn, hh: (nn, 0, 0, 0))

    if pad_out:
        y_shape = jax.ShapeDtypeStruct((n, h + 2, w + 2, cout_p), ACT_DTYPE)
        if use_halo:
            y_spec = pl.BlockSpec((1, pl.Element(th), w + 2, cout_p),
                                  lambda nn, hh: (nn, hh * th + 1, 0, 0))
        else:
            y_spec = pl.BlockSpec((1, h + 2, w + 2, cout_p),
                                  lambda nn, hh: (nn, 0, 0, 0))
    else:
        y_shape = jax.ShapeDtypeStruct((n, h, w, cout_p), ACT_DTYPE)
        y_spec = pl.BlockSpec((1, th, w, cout_p), lambda nn, hh: (nn, hh, 0, 0))

    ps_shape = jax.ShapeDtypeStruct((n, n_h, 2, cout_p), jnp.float32)
    ps_spec = pl.BlockSpec((1, 1, 2, cout_p), lambda nn, hh: (nn, hh, 0, 0))
    w_spec = pl.BlockSpec(w_mat.shape, lambda nn, hh: (0, 0))
    vec_spec = pl.BlockSpec((1, cin_p), lambda nn, hh: (0, 0))

    if fused:
        kern = functools.partial(_conv2_fused_kernel, th=th, h_img=h,
                                 use_halo=use_halo, pad_out=pad_out)
        in_specs = [x_spec, vec_spec, vec_spec, w_spec]
        args = (x_pad, scale, shift, w_mat)
    else:
        kern = functools.partial(_conv1_kernel, th=th,
                                 use_halo=use_halo, pad_out=pad_out)
        in_specs = [x_spec, w_spec]
        args = (x_pad, w_mat)

    # Halo path writes disjoint blocks every step -> both axes "parallel".
    # Fallback keeps a resident (revisited) block along hh -> "arbitrary".
    dim_sem = ("parallel", "parallel") if use_halo else ("parallel", "arbitrary")

    return pl.pallas_call(
        kern,
        out_shape=(y_shape, ps_shape),
        grid=(n, n_h),
        in_specs=in_specs,
        out_specs=(y_spec, ps_spec),
        scratch_shapes=[pltpu.VMEM((th * w, 3 * cin_p), ACT_DTYPE)],
        compiler_params=pltpu.CompilerParams(
            dimension_semantics=dim_sem,
            vmem_limit_bytes=_VMEM_LIMIT),
    )(*args)


def _bn_relu(y, scale, shift, th):
    n, h, w, c = y.shape
    n_h = h // th
    blk_in = pl.BlockSpec((1, th, w, c), lambda nn, hh: (nn, hh, 0, 0))
    blk_out = pl.BlockSpec((1, th, w, c), lambda nn, hh: (nn, hh, 0, 0))
    vec = pl.BlockSpec((1, c), lambda nn, hh: (0, 0))
    return pl.pallas_call(
        _bn_relu_kernel,
        out_shape=jax.ShapeDtypeStruct((n, h, w, c), jnp.float32),
        grid=(n, n_h),
        in_specs=[blk_in, vec, vec],
        out_specs=blk_out,
        compiler_params=pltpu.CompilerParams(
            dimension_semantics=("parallel", "parallel"),
            vmem_limit_bytes=_VMEM_LIMIT),
    )(y, scale, shift)


def _bn_affine(ps, gamma, beta, count, tile_count):
    """Finalize training-mode BN from per-tile (sum, centered-M2) partials."""
    s = ps[:, :, 0, :]                                  # (N, n_h, C)
    m2 = ps[:, :, 1, :]
    mean = jnp.sum(s, axis=(0, 1)) / count
    mu_t = s / tile_count
    var = (jnp.sum(m2, axis=(0, 1))
           + tile_count * jnp.sum((mu_t - mean) ** 2, axis=(0, 1))) / count
    var = jnp.maximum(var, 0.0)
    scale = gamma * lax.rsqrt(var + EPS)
    shift = beta - mean * scale
    return scale.reshape(1, -1), shift.reshape(1, -1)


@functools.partial(jax.jit, static_argnames=("row_tile", "use_halo"))
def double_conv_pallas(x_nchw, w1, b1, g1, be1, w2, b2, g2, be2,
                       *, row_tile=None, use_halo=True):
    """Double_Conv forward.  x_nchw: (N, Cin, H, W) f32; w*: (3,3,ci,co) HWIO.

    BatchNorm uses batch statistics (training mode), so the conv biases b1/b2
    are accepted for API parity but unused: a per-channel bias added right
    before training-mode BN is exactly cancelled by the mean subtraction.
    (This cancellation would NOT hold in eval mode with running stats.)
    """
    del b1, b2
    n, cin, h, w = x_nchw.shape
    cout = w1.shape[-1]
    cin_p = _round_up(cin, LANE)
    cout_p = _round_up(cout, LANE)
    th = row_tile if row_tile is not None else _auto_row_tile(h, w, cin_p, cout_p)
    assert h % th == 0, (h, th)
    count = n * h * w

    # NCHW -> NHWC (channels on lanes), bf16, pad channels + 1-pixel halo.
    # TODO(synk): fold this transpose/pad into the first conv's input DMA to
    # save one HBM round trip over the input.
    x = jnp.transpose(x_nchw, (0, 2, 3, 1)).astype(ACT_DTYPE)
    x = jnp.pad(x, ((0, 0), (1, 1), (1, 1), (0, cin_p - cin)))

    # HWIO weights -> channel-padded -> (9*Cin_p, Cout_p) rows (ky, kx, ci).
    # TODO(synk): for Cin << 128 (first U-Net layer) pack the 9 taps into a
    # shared padded lane group instead of padding Cin to 128.
    w1m = jnp.pad(w1, ((0, 0), (0, 0), (0, cin_p - cin), (0, cout_p - cout))
                  ).reshape(9 * cin_p, cout_p).astype(ACT_DTYPE)
    w2m = jnp.pad(w2, ((0, 0), (0, 0), (0, cout_p - cout), (0, cout_p - cout))
                  ).reshape(9 * cout_p, cout_p).astype(ACT_DTYPE)
    g1p = jnp.pad(g1, (0, cout_p - cout))
    be1p = jnp.pad(be1, (0, cout_p - cout))
    g2p = jnp.pad(g2, (0, cout_p - cout))
    be2p = jnp.pad(be2, (0, cout_p - cout))

    # conv1 (raw, bias-free) written into a spatially padded buffer + BN1 partials.
    y1p, ps1 = _conv3x3(x, w1m, th, pad_out=True, use_halo=use_halo)
    sc1, sh1 = _bn_affine(ps1, g1p, be1p, count, th * w)

    # conv2 with BN1 + ReLU fused into its input path (+ BN2 partials):
    # no separate normalize pass, no jnp.pad of the intermediate activation.
    y2, ps2 = _conv3x3(y1p, w2m, th, scale=sc1, shift=sh1,
                       pad_out=False, use_halo=use_halo)
    sc2, sh2 = _bn_affine(ps2, g2p, be2p, count, th * w)

    out = _bn_relu(y2, sc2, sh2, th)

    # Strip channel padding, back to NCHW (f32, matching the PyTorch module).
    return jnp.transpose(out[..., :cout], (0, 3, 1, 2))


# ----------------------------- reference (pure JAX, for verification) -------
def _ref_double_conv(x_nchw, w1, b1, g1, be1, w2, b2, g2, be2):
    x = jnp.transpose(x_nchw, (0, 2, 3, 1))

    def conv(x, w, b):
        y = lax.conv_general_dilated(
            x, w, window_strides=(1, 1), padding="SAME",
            dimension_numbers=("NHWC", "HWIO", "NHWC"))
        return y + b.reshape(1, 1, 1, -1)

    def bn_relu(y, g, be):
        mean = jnp.mean(y, axis=(0, 1, 2), keepdims=True)
        var = jnp.mean((y - mean) ** 2, axis=(0, 1, 2), keepdims=True)
        yn = (y - mean) * lax.rsqrt(var + EPS) * g.reshape(1, 1, 1, -1) \
             + be.reshape(1, 1, 1, -1)
        return jnp.maximum(yn, 0.0)

    y = bn_relu(conv(x, w1, b1), g1, be1)
    y = bn_relu(conv(y, w2, b2), g2, be2)
    return jnp.transpose(y, (0, 3, 1, 2))


if __name__ == "__main__":
    N, Cin, Cout, H, W = 2, 4, 8, 16, 16

    key = jax.random.PRNGKey(0)
    kx, kw1, kb1, kw2, kb2, kg1, kbe1, kg2, kbe2 = jax.random.split(key, 9)

    x = jax.random.normal(kx, (N, Cin, H, W), jnp.float32)
    w1 = 0.1 * jax.random.normal(kw1, (3, 3, Cin, Cout), jnp.float32)
    b1 = 0.1 * jax.random.normal(kb1, (Cout,), jnp.float32)
    w2 = 0.1 * jax.random.normal(kw2, (3, 3, Cout, Cout), jnp.float32)
    b2 = 0.1 * jax.random.normal(kb2, (Cout,), jnp.float32)
    g1 = 1.0 + 0.1 * jax.random.normal(kg1, (Cout,), jnp.float32)
    be1 = 0.1 * jax.random.normal(kbe1, (Cout,), jnp.float32)
    g2 = 1.0 + 0.1 * jax.random.normal(kg2, (Cout,), jnp.float32)
    be2 = 0.1 * jax.random.normal(kbe2, (Cout,), jnp.float32)

    args = (x, w1, b1, g1, be1, w2, b2, g2, be2)

    # row_tile=8 (H=16 -> two row tiles) deliberately exercises the multi-tile
    # halo / element-offset path; the auto-tile default would pick TH=16.
    try:
        out = jax.block_until_ready(
            double_conv_pallas(*args, row_tile=8, use_halo=True))
    except Exception:
        # Conservative fallback if element-indexed BlockSpecs fail to lower on
        # this jax/libtpu build: whole-image-resident blocks + in-kernel pl.ds.
        out = jax.block_until_ready(
            double_conv_pallas(*args, row_tile=8, use_halo=False))

    ref = _ref_double_conv(*args)
    assert out.shape == (N, Cout, H, W), out.shape
    err = float(jnp.max(jnp.abs(out - ref)))
    # bf16 MXU operands / intermediates -> looser tolerance than pure f32.
    assert jnp.allclose(out, ref, rtol=5e-2, atol=5e-2), f"max abs err {err}"

    print("KERNEL_OK")
</pallas_src>

<mosaic_0001>
module attributes {stable_mosaic.version = 11 : i64} {
  func.func @_conv1_kernel(%arg0: i32, %arg1: i32, %arg2: memref<1x18x18x128xbf16, #tpu.memory_space<vmem>>, %arg3: memref<1152x128xbf16, #tpu.memory_space<vmem>>, %arg4: memref<1x18x18x128xbf16, #tpu.memory_space<vmem>>, %arg5: memref<1x1x2x128xf32, #tpu.memory_space<vmem>>, %arg6: memref<128x384xbf16, #tpu.memory_space<vmem>>) attributes {dimension_semantics = [#tpu.dimension_semantics<parallel>, #tpu.dimension_semantics<arbitrary>], iteration_bounds = array<i64: 2, 2>, scalar_prefetch = 0 : i64, scratch_operands = 1 : i64, tpu.core_type = #tpu.core_type<tc>, window_params = [{transform_indices = @transform_0, window_bounds = array<i64: 1, 18, 18, 128>}, {pipeline_mode = #tpu.pipeline_mode<synchronous>, transform_indices = @transform_1, window_bounds = array<i64: 1152, 128>}, {transform_indices = @transform_2, window_bounds = array<i64: 1, 18, 18, 128>}, {transform_indices = @transform_3, window_bounds = array<i64: 1, 1, 2, 128>}]} {
    %c8_i32 = arith.constant 8 : i32
    %0 = arith.muli %arg1, %c8_i32 : i32
    %c0 = arith.constant 0 : index
    %1 = arith.index_cast %0 : i32 to index
    %c0_0 = arith.constant 0 : index
    %c0_1 = arith.constant 0 : index
    %2 = vector.load %arg2[%c0, %1, %c0_0, %c0_1] : memref<1x18x18x128xbf16, #tpu.memory_space<vmem>>, vector<1x10x18x128xbf16>
    %3 = vector.shape_cast %2 : vector<1x10x18x128xbf16> to vector<10x18x128xbf16>
    %cst = arith.constant 0.000000e+00 : f32
    %4 = vector.broadcast %cst : f32 to vector<128x128xf32>
    %5 = vector.extract_strided_slice %3 {offsets = [0, 0, 0], sizes = [8, 16, 128], strides = [1, 1, 1]} : vector<10x18x128xbf16> to vector<8x16x128xbf16>
    %6 = vector.shape_cast %5 : vector<8x16x128xbf16> to vector<128x128xbf16>
    %c0_2 = arith.constant 0 : index
    %c0_3 = arith.constant 0 : index
    %7 = vector.load %arg6[%c0_2, %c0_3] : memref<128x384xbf16, #tpu.memory_space<vmem>>, vector<128x128xbf16>
    tpu.vector_store %arg6[%c0_2, %c0_3], %6 {strides = array<i32>} : memref<128x384xbf16, #tpu.memory_space<vmem>>, vector<128x128xbf16>,
    %8 = vector.extract_strided_slice %3 {offsets = [0, 1, 0], sizes = [8, 16, 128], strides = [1, 1, 1]} : vector<10x18x128xbf16> to vector<8x16x128xbf16>
    %9 = vector.shape_cast %8 : vector<8x16x128xbf16> to vector<128x128xbf16>
    %c0_4 = arith.constant 0 : index
    %c128 = arith.constant 128 : index
    %10 = vector.load %arg6[%c0_4, %c128] : memref<128x384xbf16, #tpu.memory_space<vmem>>, vector<128x128xbf16>
    tpu.vector_store %arg6[%c0_4, %c128], %9 {strides = array<i32>} : memref<128x384xbf16, #tpu.memory_space<vmem>>, vector<128x128xbf16>,
    %11 = vector.extract_strided_slice %3 {offsets = [0, 2, 0], sizes = [8, 16, 128], strides = [1, 1, 1]} : vector<10x18x128xbf16> to vector<8x16x128xbf16>
    %12 = vector.shape_cast %11 : vector<8x16x128xbf16> to vector<128x128xbf16>
    %c0_5 = arith.constant 0 : index
    %c256 = arith.constant 256 : index
    %13 = vector.load %arg6[%c0_5, %c256] : memref<128x384xbf16, #tpu.memory_space<vmem>>, vector<128x128xbf16>
    tpu.vector_store %arg6[%c0_5, %c256], %12 {strides = array<i32>} : memref<128x384xbf16, #tpu.memory_space<vmem>>, vector<128x128xbf16>,
    %c0_6 = arith.constant 0 : index
    %c0_7 = arith.constant 0 : index
    %14 = vector.load %arg6[%c0_6, %c0_7] : memref<128x384xbf16, #tpu.memory_space<vmem>>, vector<128x384xbf16>
    %c0_8 = arith.constant 0 : index
    %c0_9 = arith.constant 0 : index
    %15 = vector.load %arg3[%c0_8, %c0_9] : memref<1152x128xbf16, #tpu.memory_space<vmem>>, vector<384x128xbf16>
    %cst_10 = arith.constant dense<0.000000e+00> : vector<128x128xf32>
    %16 = tpu.matmul %14, %15, %cst_10 {dimension_numbers = #tpu.dot_dimension_numbers<[1], [0], [0], [1], [0, 0, 1, 1], [], []>} : vector<128x384xbf16>, vector<384x128xbf16>, vector<128x128xf32> -> vector<128x128xf32>
    %17 = arith.addf %4, %16 : vector<128x128xf32>
    %18 = vector.extract_strided_slice %3 {offsets = [1, 0, 0], sizes = [8, 16, 128], strides = [1, 1, 1]} : vector<10x18x128xbf16> to vector<8x16x128xbf16>
    %19 = vector.shape_cast %18 : vector<8x16x128xbf16> to vector<128x128xbf16>
    %c0_11 = arith.constant 0 : index
    %c0_12 = arith.constant 0 : index
    %20 = vector.load %arg6[%c0_11, %c0_12] : memref<128x384xbf16, #tpu.memory_space<vmem>>, vector<128x128xbf16>
    tpu.vector_store %arg6[%c0_11, %c0_12], %19 {strides = array<i32>} : memref<128x384xbf16, #tpu.memory_space<vmem>>, vector<128x128xbf16>,
    %21 = vector.extract_strided_slice %3 {offsets = [1, 1, 0], sizes = [8, 16, 128], strides = [1, 1, 1]} : vector<10x18x128xbf16> to vector<8x16x128xbf16>
    %22 = vector.shape_cast %21 : vector<8x16x128xbf16> to vector<128x128xbf16>
    %c0_13 = arith.constant 0 : index
    %c128_14 = arith.constant 128 : index
    %23 = vector.load %arg6[%c0_13, %c128_14] : memref<128x384xbf16, #tpu.memory_space<vmem>>, vector<128x128xbf16>
    tpu.vector_store %arg6[%c0_13, %c128_14], %22 {strides = array<i32>} : memref<128x384xbf16, #tpu.memory_space<vmem>>, vector<128x128xbf16>,
    %24 = vector.extract_strided_slice %3 {offsets = [1, 2, 0], sizes = [8, 16, 128], strides = [1, 1, 1]} : vector<10x18x128xbf16> to vector<8x16x128xbf16>
    %25 = vector.shape_cast %24 : vector<8x16x128xbf16> to vector<128x128xbf16>
    %c0_15 = arith.constant 0 : index
    %c256_16 = arith.constant 256 : index
    %26 = vector.load %arg6[%c0_15, %c256_16] : memref<128x384xbf16, #tpu.memory_space<vmem>>, vector<128x128xbf16>
    tpu.vector_store %arg6[%c0_15, %c256_16], %25 {strides = array<i32>} : memref<128x384xbf16, #tpu.memory_space<vmem>>, vector<128x128xbf16>,
    %c0_17 = arith.constant 0 : index
    %c0_18 = arith.constant 0 : index
    %27 = vector.load %arg6[%c0_17, %c0_18] : memref<128x384xbf16, #tpu.memory_space<vmem>>, vector<128x384xbf16>
    %c384 = arith.constant 384 : index
    %c0_19 = arith.constant 0 : index
    %28 = vector.load %arg3[%c384, %c0_19] : memref<1152x128xbf16, #tpu.memory_space<vmem>>, vector<384x128xbf16>
    %cst_20 = arith.constant dense<0.000000e+00> : vector<128x128xf32>
    %29 = tpu.matmul %27, %28, %cst_20 {dimension_numbers = #tpu.dot_dimension_numbers<[1], [0], [0], [1], [0, 0, 1, 1], [], []>} : vector<128x384xbf16>, vector<384x128xbf16>, vector<128x128xf32> -> vector<128x128xf32>
    %30 = arith.addf %17, %29 : vector<128x128xf32>
    %31 = vector.extract_strided_slice %3 {offsets = [2, 0, 0], sizes = [8, 16, 128], strides = [1, 1, 1]} : vector<10x18x128xbf16> to vector<8x16x128xbf16>
    %32 = vector.shape_cast %31 : vector<8x16x128xbf16> to vector<128x128xbf16>
    %c0_21 = arith.constant 0 : index
    %c0_22 = arith.constant 0 : index
    %33 = vector.load %arg6[%c0_21, %c0_22] : memref<128x384xbf16, #tpu.memory_space<vmem>>, vector<128x128xbf16>
    tpu.vector_store %arg6[%c0_21, %c0_22], %32 {strides = array<i32>} : memref<128x384xbf16, #tpu.memory_space<vmem>>, vector<128x128xbf16>,
    %34 = vector.extract_strided_slice %3 {offsets = [2, 1, 0], sizes = [8, 16, 128], strides = [1, 1, 1]} : vector<10x18x128xbf16> to vector<8x16x128xbf16>
    %35 = vector.shape_cast %34 : vector<8x16x128xbf16> to vector<128x128xbf16>
    %c0_23 = arith.constant 0 : index
    %c128_24 = arith.constant 128 : index
    %36 = vector.load %arg6[%c0_23, %c128_24] : memref<128x384xbf16, #tpu.memory_space<vmem>>, vector<128x128xbf16>
    tpu.vector_store %arg6[%c0_23, %c128_24], %35 {strides = array<i32>} : memref<128x384xbf16, #tpu.memory_space<vmem>>, vector<128x128xbf16>,
    %37 = vector.extract_strided_slice %3 {offsets = [2, 2, 0], sizes = [8, 16, 128], strides = [1, 1, 1]} : vector<10x18x128xbf16> to vector<8x16x128xbf16>
    %38 = vector.shape_cast %37 : vector<8x16x128xbf16> to vector<128x128xbf16>
    %c0_25 = arith.constant 0 : index
    %c256_26 = arith.constant 256 : index
    %39 = vector.load %arg6[%c0_25, %c256_26] : memref<128x384xbf16, #tpu.memory_space<vmem>>, vector<128x128xbf16>
    tpu.vector_store %arg6[%c0_25, %c256_26], %38 {strides = array<i32>} : memref<128x384xbf16, #tpu.memory_space<vmem>>, vector<128x128xbf16>,
    %c0_27 = arith.constant 0 : index
    %c0_28 = arith.constant 0 : index
    %40 = vector.load %arg6[%c0_27, %c0_28] : memref<128x384xbf16, #tpu.memory_space<vmem>>, vector<128x384xbf16>
    %c768 = arith.constant 768 : index
    %c0_29 = arith.constant 0 : index
    %41 = vector.load %arg3[%c768, %c0_29] : memref<1152x128xbf16, #tpu.memory_space<vmem>>, vector<384x128xbf16>
    %cst_30 = arith.constant dense<0.000000e+00> : vector<128x128xf32>
    %42 = tpu.matmul %40, %41, %cst_30 {dimension_numbers = #tpu.dot_dimension_numbers<[1], [0], [0], [1], [0, 0, 1, 1], [], []>} : vector<128x384xbf16>, vector<384x128xbf16>, vector<128x128xf32> -> vector<128x128xf32>
    %43 = arith.addf %30, %42 : vector<128x128xf32>
    %cst_31 = arith.constant dense<0.000000e+00> : vector<128xf32>
    %44 = vector.multi_reduction <add>, %43, %cst_31 [0] : vector<128x128xf32> to vector<128xf32>
    %45 = vector.shape_cast %44 : vector<128xf32> to vector<1x128xf32>
    %cst_32 = arith.constant 1.280000e+02 : f32
    %46 = vector.broadcast %cst_32 : f32 to vector<1x128xf32>
    %47 = arith.divf %45, %46 : vector<1x128xf32>
    %cst_33 = arith.constant dense<0.000000e+00> : vector<128xf32>
    %48 = vector.multi_reduction <add>, %43, %cst_33 [0] : vector<128x128xf32> to vector<128xf32>
    %49 = vector.shape_cast %48 : vector<128xf32> to vector<1x128xf32>
    %c0_34 = arith.constant 0 : index
    %c0_35 = arith.constant 0 : index
    %c0_36 = arith.constant 0 : index
    %c0_37 = arith.constant 0 : index
    %50 = vector.load %arg5[%c0_34, %c0_35, %c0_36, %c0_37] : memref<1x1x2x128xf32, #tpu.memory_space<vmem>>, vector<1x1x1x128xf32>
    %51 = vector.shape_cast %50 : vector<1x1x1x128xf32> to vector<1x128xf32>
    %52 = vector.shape_cast %49 : vector<1x128xf32> to vector<1x1x1x128xf32>
    tpu.vector_store %arg5[%c0_34, %c0_35, %c0_36, %c0_37], %52 {strides = array<i32>} : memref<1x1x2x128xf32, #tpu.memory_space<vmem>>, vector<1x1x1x128xf32>,
    %53 = vector.broadcast %47 : vector<1x128xf32> to vector<128x128xf32>
    %54 = arith.subf %43, %53 : vector<128x128xf32>
    %55 = arith.mulf %54, %54 : vector<128x128xf32>
    %cst_38 = arith.constant dense<0.000000e+00> : vector<128xf32>
    %56 = vector.multi_reduction <add>, %55, %cst_38 [0] : vector<128x128xf32> to vector<128xf32>
    %57 = vector.shape_cast %56 : vector<128xf32> to vector<1x128xf32>
    %c0_39 = arith.constant 0 : index
    %c0_40 = arith.constant 0 : index
    %c1 = arith.constant 1 : index
    %c0_41 = arith.constant 0 : index
    %58 = vector.load %arg5[%c0_39, %c0_40, %c1, %c0_41] : memref<1x1x2x128xf32, #tpu.memory_space<vmem>>, vector<1x1x1x128xf32>
    %59 = vector.shape_cast %58 : vector<1x1x1x128xf32> to vector<1x128xf32>
    %60 = vector.shape_cast %57 : vector<1x128xf32> to vector<1x1x1x128xf32>
    tpu.vector_store %arg5[%c0_39, %c0_40, %c1, %c0_41], %60 {strides = array<i32>} : memref<1x1x2x128xf32, #tpu.memory_space<vmem>>, vector<1x1x1x128xf32>,
    %61 = vector.shape_cast %43 : vector<128x128xf32> to vector<8x16x128xf32>
    %62 = arith.truncf %61 : vector<8x16x128xf32> to vector<8x16x128xbf16>
    %cst_42 = arith.constant 0.000000e+00 : bf16
    %63 = vector.broadcast %cst_42 : bf16 to vector<8x1x128xbf16>
    %c8_i32_43 = arith.constant 8 : i32
    %64 = arith.muli %arg1, %c8_i32_43 : i32
    %c1_i32 = arith.constant 1 : i32
    %65 = arith.addi %64, %c1_i32 : i32
    %c0_44 = arith.constant 0 : index
    %66 = arith.index_cast %65 : i32 to index
    %c1_45 = arith.constant 1 : index
    %c0_46 = arith.constant 0 : index
    %67 = vector.load %arg4[%c0_44, %66, %c1_45, %c0_46] : memref<1x18x18x128xbf16, #tpu.memory_space<vmem>>, vector<1x8x16x128xbf16>
    %68 = vector.shape_cast %67 : vector<1x8x16x128xbf16> to vector<8x16x128xbf16>
    %69 = vector.shape_cast %62 : vector<8x16x128xbf16> to vector<1x8x16x128xbf16>
    tpu.vector_store %arg4[%c0_44, %66, %c1_45, %c0_46], %69 {strides = array<i32>} : memref<1x18x18x128xbf16, #tpu.memory_space<vmem>>, vector<1x8x16x128xbf16>,
    %c8_i32_47 = arith.constant 8 : i32
    %70 = arith.muli %arg1, %c8_i32_47 : i32
    %c1_i32_48 = arith.constant 1 : i32
    %71 = arith.addi %70, %c1_i32_48 : i32
    %c0_49 = arith.constant 0 : index
    %72 = arith.index_cast %71 : i32 to index
    %c0_50 = arith.constant 0 : index
    %c0_51 = arith.constant 0 : index
    %73 = vector.load %arg4[%c0_49, %72, %c0_50, %c0_51] : memref<1x18x18x128xbf16, #tpu.memory_space<vmem>>, vector<1x8x1x128xbf16>
    %74 = vector.shape_cast %73 : vector<1x8x1x128xbf16> to vector<8x1x128xbf16>
    %75 = vector.shape_cast %63 : vector<8x1x128xbf16> to vector<1x8x1x128xbf16>
    tpu.vector_store %arg4[%c0_49, %72, %c0_50, %c0_51], %75 {strides = array<i32>} : memref<1x18x18x128xbf16, #tpu.memory_space<vmem>>, vector<1x8x1x128xbf16>,
    %c8_i32_52 = arith.constant 8 : i32
    %76 = arith.muli %arg1, %c8_i32_52 : i32
    %c1_i32_53 = arith.constant 1 : i32
    %77 = arith.addi %76, %c1_i32_53 : i32
    %c0_54 = arith.constant 0 : index
    %78 = arith.index_cast %77 : i32 to index
    %c17 = arith.constant 17 : index
    %c0_55 = arith.constant 0 : index
    %79 = vector.load %arg4[%c0_54, %78, %c17, %c0_55] : memref<1x18x18x128xbf16, #tpu.memory_space<vmem>>, vector<1x8x1x128xbf16>
    %80 = vector.shape_cast %79 : vector<1x8x1x128xbf16> to vector<8x1x128xbf16>
    %81 = vector.shape_cast %63 : vector<8x1x128xbf16> to vector<1x8x1x128xbf16>
    tpu.vector_store %arg4[%c0_54, %78, %c17, %c0_55], %81 {strides = array<i32>} : memref<1x18x18x128xbf16, #tpu.memory_space<vmem>>, vector<1x8x1x128xbf16>,
    return
  }
  func.func @transform_0(%arg0: i32, %arg1: i32) -> (i32, i32, i32, i32) {
    %c0_i32 = arith.constant 0 : i32
    %c0_i32_0 = arith.constant 0 : i32
    %c0_i32_1 = arith.constant 0 : i32
    %c0_i32_2 = arith.constant 0 : i32
    return %arg0, %c0_i32, %c0_i32_0, %c0_i32_1 : i32, i32, i32, i32
  }
  func.func @transform_1(%arg0: i32, %arg1: i32) -> (i32, i32) {
    %c0_i32 = arith.constant 0 : i32
    %c0_i32_0 = arith.constant 0 : i32
    %c0_i32_1 = arith.constant 0 : i32
    return %c0_i32, %c0_i32_0 : i32, i32
  }
  func.func @transform_2(%arg0: i32, %arg1: i32) -> (i32, i32, i32, i32) {
    %c0_i32 = arith.constant 0 : i32
    %c0_i32_0 = arith.constant 0 : i32
    %c0_i32_1 = arith.constant 0 : i32
    %c0_i32_2 = arith.constant 0 : i32
    return %arg0, %c0_i32, %c0_i32_0, %c0_i32_1 : i32, i32, i32, i32
  }
  func.func @transform_3(%arg0: i32, %arg1: i32) -> (i32, i32, i32, i32) {
    %c0_i32 = arith.constant 0 : i32
    %c0_i32_0 = arith.constant 0 : i32
    %c0_i32_1 = arith.constant 0 : i32
    return %arg0, %arg1, %c0_i32, %c0_i32_0 : i32, i32, i32, i32
  }
}

module attributes {stable_mosaic.version = 11 : i64} {
  func.func @_conv2_fused_kernel(%arg0: i32, %arg1: i32, %arg2: memref<1x18x18x128xbf16, #tpu.memory_space<vmem>>, %arg3: memref<1x128xf32, #tpu.memory_space<vmem>>, %arg4: memref<1x128xf32, #tpu.memory_space<vmem>>, %arg5: memref<1152x128xbf16, #tpu.memory_space<vmem>>, %arg6: memref<1x8x16x128xbf16, #tpu.memory_space<vmem>>, %arg7: memref<1x1x2x128xf32, #tpu.memory_space<vmem>>, %arg8: memref<128x384xbf16, #tpu.memory_space<vmem>>) attributes {dimension_semantics = [#tpu.dimension_semantics<parallel>, #tpu.dimension_semantics<arbitrary>], iteration_bounds = array<i64: 2, 2>, scalar_prefetch = 0 : i64, scratch_operands = 1 : i64, tpu.core_type = #tpu.core_type<tc>, window_params = [{transform_indices = @transform_0, window_bounds = array<i64: 1, 18, 18, 128>}, {pipeline_mode = #tpu.pipeline_mode<synchronous>, transform_indices = @transform_1, window_bounds = array<i64: 1, 128>}, {pipeline_mode = #tpu.pipeline_mode<synchronous>, transform_indices = @transform_2, window_bounds = array<i64: 1, 128>}, {pipeline_mode = #tpu.pipeline_mode<synchronous>, transform_indices = @transform_3, window_bounds = array<i64: 1152, 128>}, {transform_indices = @transform_4, window_bounds = array<i64: 1, 8, 16, 128>}, {transform_indices = @transform_5, window_bounds = array<i64: 1, 1, 2, 128>}]} {
    %c8_i32 = arith.constant 8 : i32
    %0 = arith.muli %arg1, %c8_i32 : i32
    %c0 = arith.constant 0 : index
    %1 = arith.index_cast %0 : i32 to index
    %c0_0 = arith.constant 0 : index
    %c0_1 = arith.constant 0 : index
    %2 = vector.load %arg2[%c0, %1, %c0_0, %c0_1] : memref<1x18x18x128xbf16, #tpu.memory_space<vmem>>, vector<1x10x18x128xbf16>
    %3 = vector.shape_cast %2 : vector<1x10x18x128xbf16> to vector<10x18x128xbf16>
    %c0_2 = arith.constant 0 : index
    %c0_3 = arith.constant 0 : index
    %4 = vector.load %arg3[%c0_2, %c0_3] : memref<1x128xf32, #tpu.memory_space<vmem>>, vector<1x128xf32>
    %5 = vector.shape_cast %4 : vector<1x128xf32> to vector<1x1x128xf32>
    %c0_4 = arith.constant 0 : index
    %c0_5 = arith.constant 0 : index
    %6 = vector.load %arg4[%c0_4, %c0_5] : memref<1x128xf32, #tpu.memory_space<vmem>>, vector<1x128xf32>
    %7 = vector.shape_cast %6 : vector<1x128xf32> to vector<1x1x128xf32>
    %8 = arith.extf %3 : vector<10x18x128xbf16> to vector<10x18x128xf32>
    %9 = vector.broadcast %5 : vector<1x1x128xf32> to vector<10x18x128xf32>
    %10 = arith.mulf %8, %9 : vector<10x18x128xf32>
    %11 = vector.broadcast %7 : vector<1x1x128xf32> to vector<10x18x128xf32>
    %12 = arith.addf %10, %11 : vector<10x18x128xf32>
    %cst = arith.constant 0.000000e+00 : f32
    %13 = vector.broadcast %cst : f32 to vector<10x18x128xf32>
    %14 = arith.maximumf %12, %13 : vector<10x18x128xf32>
    %15 = tpu.iota {dimensions = array<i32: 0>} : vector<10x18x128xi32>
    %c8_i32_6 = arith.constant 8 : i32
    %16 = arith.muli %arg1, %c8_i32_6 : i32
    %17 = vector.broadcast %16 : i32 to vector<10x18x128xi32>
    %18 = arith.addi %15, %17 : vector<10x18x128xi32>
    %19 = tpu.iota {dimensions = array<i32: 1>} : vector<10x18x128xi32>
    %c1_i32 = arith.constant 1 : i32
    %20 = vector.broadcast %c1_i32 : i32 to vector<10x18x128xi32>
    %21 = arith.cmpi sge, %18, %20 : vector<10x18x128xi32>
    %c16_i32 = arith.constant 16 : i32
    %22 = vector.broadcast %c16_i32 : i32 to vector<10x18x128xi32>
    %23 = arith.cmpi sle, %18, %22 : vector<10x18x128xi32>
    %24 = arith.andi %21, %23 : vector<10x18x128xi1>
    %c1_i32_7 = arith.constant 1 : i32
    %25 = vector.broadcast %c1_i32_7 : i32 to vector<10x18x128xi32>
    %26 = arith.cmpi sge, %19, %25 : vector<10x18x128xi32>
    %27 = arith.andi %24, %26 : vector<10x18x128xi1>
    %c16_i32_8 = arith.constant 16 : i32
    %28 = vector.broadcast %c16_i32_8 : i32 to vector<10x18x128xi32>
    %29 = arith.cmpi sle, %19, %28 : vector<10x18x128xi32>
    %30 = arith.andi %27, %29 : vector<10x18x128xi1>
    %cst_9 = arith.constant 0.000000e+00 : f32
    %31 = vector.broadcast %cst_9 : f32 to vector<10x18x128xf32>
    %32 = arith.select %30, %14, %31 : vector<10x18x128xi1>, vector<10x18x128xf32>
    %33 = arith.truncf %32 : vector<10x18x128xf32> to vector<10x18x128xbf16>
    %cst_10 = arith.constant 0.000000e+00 : f32
    %34 = vector.broadcast %cst_10 : f32 to vector<128x128xf32>
    %35 = vector.extract_strided_slice %33 {offsets = [0, 0, 0], sizes = [8, 16, 128], strides = [1, 1, 1]} : vector<10x18x128xbf16> to vector<8x16x128xbf16>
    %36 = vector.shape_cast %35 : vector<8x16x128xbf16> to vector<128x128xbf16>
    %c0_11 = arith.constant 0 : index
    %c0_12 = arith.constant 0 : index
    %37 = vector.load %arg8[%c0_11, %c0_12] : memref<128x384xbf16, #tpu.memory_space<vmem>>, vector<128x128xbf16>
    tpu.vector_store %arg8[%c0_11, %c0_12], %36 {strides = array<i32>} : memref<128x384xbf16, #tpu.memory_space<vmem>>, vector<128x128xbf16>,
    %38 = vector.extract_strided_slice %33 {offsets = [0, 1, 0], sizes = [8, 16, 128], strides = [1, 1, 1]} : vector<10x18x128xbf16> to vector<8x16x128xbf16>
    %39 = vector.shape_cast %38 : vector<8x16x128xbf16> to vector<128x128xbf16>
    %c0_13 = arith.constant 0 : index
    %c128 = arith.constant 128 : index
    %40 = vector.load %arg8[%c0_13, %c128] : memref<128x384xbf16, #tpu.memory_space<vmem>>, vector<128x128xbf16>
    tpu.vector_store %arg8[%c0_13, %c128], %39 {strides = array<i32>} : memref<128x384xbf16, #tpu.memory_space<vmem>>, vector<128x128xbf16>,
    %41 = vector.extract_strided_slice %33 {offsets = [0, 2, 0], sizes = [8, 16, 128], strides = [1, 1, 1]} : vector<10x18x128xbf16> to vector<8x16x128xbf16>
    %42 = vector.shape_cast %41 : vector<8x16x128xbf16> to vector<128x128xbf16>
    %c0_14 = arith.constant 0 : index
    %c256 = arith.constant 256 : index
    %43 = vector.load %arg8[%c0_14, %c256] : memref<128x384xbf16, #tpu.memory_space<vmem>>, vector<128x128xbf16>
    tpu.vector_store %arg8[%c0_14, %c256], %42 {strides = array<i32>} : memref<128x384xbf16, #tpu.memory_space<vmem>>, vector<128x128xbf16>,
    %c0_15 = arith.constant 0 : index
    %c0_16 = arith.constant 0 : index
    %44 = vector.load %arg8[%c0_15, %c0_16] : memref<128x384xbf16, #tpu.memory_space<vmem>>, vector<128x384xbf16>
    %c0_17 = arith.constant 0 : index
    %c0_18 = arith.constant 0 : index
    %45 = vector.load %arg5[%c0_17, %c0_18] : memref<1152x128xbf16, #tpu.memory_space<vmem>>, vector<384x128xbf16>
    %cst_19 = arith.constant dense<0.000000e+00> : vector<128x128xf32>
    %46 = tpu.matmul %44, %45, %cst_19 {dimension_numbers = #tpu.dot_dimension_numbers<[1], [0], [0], [1], [0, 0, 1, 1], [], []>} : vector<128x384xbf16>, vector<384x128xbf16>, vector<128x128xf32> -> vector<128x128xf32>
    %47 = arith.addf %34, %46 : vector<128x128xf32>
    %48 = vector.extract_strided_slice %33 {offsets = [1, 0, 0], sizes = [8, 16, 128], strides = [1, 1, 1]} : vector<10x18x128xbf16> to vector<8x16x128xbf16>
    %49 = vector.shape_cast %48 : vector<8x16x128xbf16> to vector<128x128xbf16>
    %c0_20 = arith.constant 0 : index
    %c0_21 = arith.constant 0 : index
    %50 = vector.load %arg8[%c0_20, %c0_21] : memref<128x384xbf16, #tpu.memory_space<vmem>>, vector<128x128xbf16>
    tpu.vector_store %arg8[%c0_20, %c0_21], %49 {strides = array<i32>} : memref<128x384xbf16, #tpu.memory_space<vmem>>, vector<128x128xbf16>,
    %51 = vector.extract_strided_slice %33 {offsets = [1, 1, 0], sizes = [8, 16, 128], strides = [1, 1, 1]} : vector<10x18x128xbf16> to vector<8x16x128xbf16>
    %52 = vector.shape_cast %51 : vector<8x16x128xbf16> to vector<128x128xbf16>
    %c0_22 = arith.constant 0 : index
    %c128_23 = arith.constant 128 : index
    %53 = vector.load %arg8[%c0_22, %c128_23] : memref<128x384xbf16, #tpu.memory_space<vmem>>, vector<128x128xbf16>
    tpu.vector_store %arg8[%c0_22, %c128_23], %52 {strides = array<i32>} : memref<128x384xbf16, #tpu.memory_space<vmem>>, vector<128x128xbf16>,
    %54 = vector.extract_strided_slice %33 {offsets = [1, 2, 0], sizes = [8, 16, 128], strides = [1, 1, 1]} : vector<10x18x128xbf16> to vector<8x16x128xbf16>
    %55 = vector.shape_cast %54 : vector<8x16x128xbf16> to vector<128x128xbf16>
    %c0_24 = arith.constant 0 : index
    %c256_25 = arith.constant 256 : index
    %56 = vector.load %arg8[%c0_24, %c256_25] : memref<128x384xbf16, #tpu.memory_space<vmem>>, vector<128x128xbf16>
    tpu.vector_store %arg8[%c0_24, %c256_25], %55 {strides = array<i32>} : memref<128x384xbf16, #tpu.memory_space<vmem>>, vector<128x128xbf16>,
    %c0_26 = arith.constant 0 : index
    %c0_27 = arith.constant 0 : index
    %57 = vector.load %arg8[%c0_26, %c0_27] : memref<128x384xbf16, #tpu.memory_space<vmem>>, vector<128x384xbf16>
    %c384 = arith.constant 384 : index
    %c0_28 = arith.constant 0 : index
    %58 = vector.load %arg5[%c384, %c0_28] : memref<1152x128xbf16, #tpu.memory_space<vmem>>, vector<384x128xbf16>
    %cst_29 = arith.constant dense<0.000000e+00> : vector<128x128xf32>
    %59 = tpu.matmul %57, %58, %cst_29 {dimension_numbers = #tpu.dot_dimension_numbers<[1], [0], [0], [1], [0, 0, 1, 1], [], []>} : vector<128x384xbf16>, vector<384x128xbf16>, vector<128x128xf32> -> vector<128x128xf32>
    %60 = arith.addf %47, %59 : vector<128x128xf32>
    %61 = vector.extract_strided_slice %33 {offsets = [2, 0, 0], sizes = [8, 16, 128], strides = [1, 1, 1]} : vector<10x18x128xbf16> to vector<8x16x128xbf16>
    %62 = vector.shape_cast %61 : vector<8x16x128xbf16> to vector<128x128xbf16>
    %c0_30 = arith.constant 0 : index
    %c0_31 = arith.constant 0 : index
    %63 = vector.load %arg8[%c0_30, %c0_31] : memref<128x384xbf16, #tpu.memory_space<vmem>>, vector<128x128xbf16>
    tpu.vector_store %arg8[%c0_30, %c0_31], %62 {strides = array<i32>} : memref<128x384xbf16, #tpu.memory_space<vmem>>, vector<128x128xbf16>,
    %64 = vector.extract_strided_slice %33 {offsets = [2, 1, 0], sizes = [8, 16, 128], strides = [1, 1, 1]} : vector<10x18x128xbf16> to vector<8x16x128xbf16>
    %65 = vector.shape_cast %64 : vector<8x16x128xbf16> to vector<128x128xbf16>
    %c0_32 = arith.constant 0 : index
    %c128_33 = arith.constant 128 : index
    %66 = vector.load %arg8[%c0_32, %c128_33] : memref<128x384xbf16, #tpu.memory_space<vmem>>, vector<128x128xbf16>
    tpu.vector_store %arg8[%c0_32, %c128_33], %65 {strides = array<i32>} : memref<128x384xbf16, #tpu.memory_space<vmem>>, vector<128x128xbf16>,
    %67 = vector.extract_strided_slice %33 {offsets = [2, 2, 0], sizes = [8, 16, 128], strides = [1, 1, 1]} : vector<10x18x128xbf16> to vector<8x16x128xbf16>
    %68 = vector.shape_cast %67 : vector<8x16x128xbf16> to vector<128x128xbf16>
    %c0_34 = arith.constant 0 : index
    %c256_35 = arith.constant 256 : index
    %69 = vector.load %arg8[%c0_34, %c256_35] : memref<128x384xbf16, #tpu.memory_space<vmem>>, vector<128x128xbf16>
    tpu.vector_store %arg8[%c0_34, %c256_35], %68 {strides = array<i32>} : memref<128x384xbf16, #tpu.memory_space<vmem>>, vector<128x128xbf16>,
    %c0_36 = arith.constant 0 : index
    %c0_37 = arith.constant 0 : index
    %70 = vector.load %arg8[%c0_36, %c0_37] : memref<128x384xbf16, #tpu.memory_space<vmem>>, vector<128x384xbf16>
    %c768 = arith.constant 768 : index
    %c0_38 = arith.constant 0 : index
    %71 = vector.load %arg5[%c768, %c0_38] : memref<1152x128xbf16, #tpu.memory_space<vmem>>, vector<384x128xbf16>
    %cst_39 = arith.constant dense<0.000000e+00> : vector<128x128xf32>
    %72 = tpu.matmul %70, %71, %cst_39 {dimension_numbers = #tpu.dot_dimension_numbers<[1], [0], [0], [1], [0, 0, 1, 1], [], []>} : vector<128x384xbf16>, vector<384x128xbf16>, vector<128x128xf32> -> vector<128x128xf32>
    %73 = arith.addf %60, %72 : vector<128x128xf32>
    %cst_40 = arith.constant dense<0.000000e+00> : vector<128xf32>
    %74 = vector.multi_reduction <add>, %73, %cst_40 [0] : vector<128x128xf32> to vector<128xf32>
    %75 = vector.shape_cast %74 : vector<128xf32> to vector<1x128xf32>
    %cst_41 = arith.constant 1.280000e+02 : f32
    %76 = vector.broadcast %cst_41 : f32 to vector<1x128xf32>
    %77 = arith.divf %75, %76 : vector<1x128xf32>
    %cst_42 = arith.constant dense<0.000000e+00> : vector<128xf32>
    %78 = vector.multi_reduction <add>, %73, %cst_42 [0] : vector<128x128xf32> to vector<128xf32>
    %79 = vector.shape_cast %78 : vector<128xf32> to vector<1x128xf32>
    %c0_43 = arith.constant 0 : index
    %c0_44 = arith.constant 0 : index
    %c0_45 = arith.constant 0 : index
    %c0_46 = arith.constant 0 : index
    %80 = vector.load %arg7[%c0_43, %c0_44, %c0_45, %c0_46] : memref<1x1x2x128xf32, #tpu.memory_space<vmem>>, vector<1x1x1x128xf32>
    %81 = vector.shape_cast %80 : vector<1x1x1x128xf32> to vector<1x128xf32>
    %82 = vector.shape_cast %79 : vector<1x128xf32> to vector<1x1x1x128xf32>
    tpu.vector_store %arg7[%c0_43, %c0_44, %c0_45, %c0_46], %82 {strides = array<i32>} : memref<1x1x2x128xf32, #tpu.memory_space<vmem>>, vector<1x1x1x128xf32>,
    %83 = vector.broadcast %77 : vector<1x128xf32> to vector<128x128xf32>
    %84 = arith.subf %73, %83 : vector<128x128xf32>
    %85 = arith.mulf %84, %84 : vector<128x128xf32>
    %cst_47 = arith.constant dense<0.000000e+00> : vector<128xf32>
    %86 = vector.multi_reduction <add>, %85, %cst_47 [0] : vector<128x128xf32> to vector<128xf32>
    %87 = vector.shape_cast %86 : vector<128xf32> to vector<1x128xf32>
    %c0_48 = arith.constant 0 : index
    %c0_49 = arith.constant 0 : index
    %c1 = arith.constant 1 : index
    %c0_50 = arith.constant 0 : index
    %88 = vector.load %arg7[%c0_48, %c0_49, %c1, %c0_50] : memref<1x1x2x128xf32, #tpu.memory_space<vmem>>, vector<1x1x1x128xf32>
    %89 = vector.shape_cast %88 : vector<1x1x1x128xf32> to vector<1x128xf32>
    %90 = vector.shape_cast %87 : vector<1x128xf32> to vector<1x1x1x128xf32>
    tpu.vector_store %arg7[%c0_48, %c0_49, %c1, %c0_50], %90 {strides = array<i32>} : memref<1x1x2x128xf32, #tpu.memory_space<vmem>>, vector<1x1x1x128xf32>,
    %91 = vector.shape_cast %73 : vector<128x128xf32> to vector<8x16x128xf32>
    %92 = arith.truncf %91 : vector<8x16x128xf32> to vector<8x16x128xbf16>
    %c0_51 = arith.constant 0 : index
    %c0_52 = arith.constant 0 : index
    %c0_53 = arith.constant 0 : index
    %c0_54 = arith.constant 0 : index
    %93 = vector.load %arg6[%c0_51, %c0_52, %c0_53, %c0_54] : memref<1x8x16x128xbf16, #tpu.memory_space<vmem>>, vector<1x8x16x128xbf16>
    %94 = vector.shape_cast %93 : vector<1x8x16x128xbf16> to vector<8x16x128xbf16>
    %95 = vector.shape_cast %92 : vector<8x16x128xbf16> to vector<1x8x16x128xbf16>
    tpu.vector_store %arg6[%c0_51, %c0_52, %c0_53, %c0_54], %95 {strides = array<i32>} : memref<1x8x16x128xbf16, #tpu.memory_space<vmem>>, vector<1x8x16x128xbf16>,
    return
  }
  func.func @transform_0(%arg0: i32, %arg1: i32) -> (i32, i32, i32, i32) {
    %c0_i32 = arith.constant 0 : i32
    %c0_i32_0 = arith.constant 0 : i32
    %c0_i32_1 = arith.constant 0 : i32
    %c0_i32_2 = arith.constant 0 : i32
    return %arg0, %c0_i32, %c0_i32_0, %c0_i32_1 : i32, i32, i32, i32
  }
  func.func @transform_1(%arg0: i32, %arg1: i32) -> (i32, i32) {
    %c0_i32 = arith.constant 0 : i32
    %c0_i32_0 = arith.constant 0 : i32
    %c0_i32_1 = arith.constant 0 : i32
    return %c0_i32, %c0_i32_0 : i32, i32
  }
  func.func @transform_2(%arg0: i32, %arg1: i32) -> (i32, i32) {
    %c0_i32 = arith.constant 0 : i32
    %c0_i32_0 = arith.constant 0 : i32
    %c0_i32_1 = arith.constant 0 : i32
    return %c0_i32, %c0_i32_0 : i32, i32
  }
  func.func @transform_3(%arg0: i32, %arg1: i32) -> (i32, i32) {
    %c0_i32 = arith.constant 0 : i32
    %c0_i32_0 = arith.constant 0 : i32
    %c0_i32_1 = arith.constant 0 : i32
    return %c0_i32, %c0_i32_0 : i32, i32
  }
  func.func @transform_4(%arg0: i32, %arg1: i32) -> (i32, i32, i32, i32) {
    %c0_i32 = arith.constant 0 : i32
    %c0_i32_0 = arith.constant 0 : i32
    %c0_i32_1 = arith.constant 0 : i32
    return %arg0, %arg1, %c0_i32, %c0_i32_0 : i32, i32, i32, i32
  }
  func.func @transform_5(%arg0: i32, %arg1: i32) -> (i32, i32, i32, i32) {
    %c0_i32 = arith.constant 0 : i32
    %c0_i32_0 = arith.constant 0 : i32
    %c0_i32_1 = arith.constant 0 : i32
    return %arg0, %arg1, %c0_i32, %c0_i32_0 : i32, i32, i32, i32
  }
}

module attributes {stable_mosaic.version = 11 : i64} {
  func.func @_bn_relu_kernel(%arg0: i32, %arg1: i32, %arg2: memref<1x8x16x128xbf16, #tpu.memory_space<vmem>>, %arg3: memref<1x128xf32, #tpu.memory_space<vmem>>, %arg4: memref<1x128xf32, #tpu.memory_space<vmem>>, %arg5: memref<1x8x16x128xf32, #tpu.memory_space<vmem>>) attributes {dimension_semantics = [#tpu.dimension_semantics<parallel>, #tpu.dimension_semantics<parallel>], iteration_bounds = array<i64: 2, 2>, scalar_prefetch = 0 : i64, scratch_operands = 0 : i64, tpu.core_type = #tpu.core_type<tc>, window_params = [{transform_indices = @transform_0, window_bounds = array<i64: 1, 8, 16, 128>}, {pipeline_mode = #tpu.pipeline_mode<synchronous>, transform_indices = @transform_1, window_bounds = array<i64: 1, 128>}, {pipeline_mode = #tpu.pipeline_mode<synchronous>, transform_indices = @transform_2, window_bounds = array<i64: 1, 128>}, {transform_indices = @transform_3, window_bounds = array<i64: 1, 8, 16, 128>}]} {
    %c0 = arith.constant 0 : index
    %c0_0 = arith.constant 0 : index
    %0 = vector.load %arg3[%c0, %c0_0] : memref<1x128xf32, #tpu.memory_space<vmem>>, vector<1x128xf32>
    %1 = vector.shape_cast %0 : vector<1x128xf32> to vector<1x1x128xf32>
    %c0_1 = arith.constant 0 : index
    %c0_2 = arith.constant 0 : index
    %2 = vector.load %arg4[%c0_1, %c0_2] : memref<1x128xf32, #tpu.memory_space<vmem>>, vector<1x128xf32>
    %3 = vector.shape_cast %2 : vector<1x128xf32> to vector<1x1x128xf32>
    %c0_3 = arith.constant 0 : index
    %c0_4 = arith.constant 0 : index
    %c0_5 = arith.constant 0 : index
    %c0_6 = arith.constant 0 : index
    %4 = vector.load %arg2[%c0_3, %c0_4, %c0_5, %c0_6] : memref<1x8x16x128xbf16, #tpu.memory_space<vmem>>, vector<1x8x16x128xbf16>
    %5 = vector.shape_cast %4 : vector<1x8x16x128xbf16> to vector<8x16x128xbf16>
    %6 = arith.extf %5 : vector<8x16x128xbf16> to vector<8x16x128xf32>
    %7 = vector.broadcast %1 : vector<1x1x128xf32> to vector<8x16x128xf32>
    %8 = arith.mulf %6, %7 : vector<8x16x128xf32>
    %9 = vector.broadcast %3 : vector<1x1x128xf32> to vector<8x16x128xf32>
    %10 = arith.addf %8, %9 : vector<8x16x128xf32>
    %cst = arith.constant 0.000000e+00 : f32
    %11 = vector.broadcast %cst : f32 to vector<8x16x128xf32>
    %12 = arith.maximumf %10, %11 : vector<8x16x128xf32>
    %c0_7 = arith.constant 0 : index
    %c0_8 = arith.constant 0 : index
    %c0_9 = arith.constant 0 : index
    %c0_10 = arith.constant 0 : index
    %13 = vector.load %arg5[%c0_7, %c0_8, %c0_9, %c0_10] : memref<1x8x16x128xf32, #tpu.memory_space<vmem>>, vector<1x8x16x128xf32>
    %14 = vector.shape_cast %13 : vector<1x8x16x128xf32> to vector<8x16x128xf32>
    %15 = vector.shape_cast %12 : vector<8x16x128xf32> to vector<1x8x16x128xf32>
    tpu.vector_store %arg5[%c0_7, %c0_8, %c0_9, %c0_10], %15 {strides = array<i32>} : memref<1x8x16x128xf32, #tpu.memory_space<vmem>>, vector<1x8x16x128xf32>,
    return
  }
  func.func @transform_0(%arg0: i32, %arg1: i32) -> (i32, i32, i32, i32) {
    %c0_i32 = arith.constant 0 : i32
    %c0_i32_0 = arith.constant 0 : i32
    %c0_i32_1 = arith.constant 0 : i32
    return %arg0, %arg1, %c0_i32, %c0_i32_0 : i32, i32, i32, i32
  }
  func.func @transform_1(%arg0: i32, %arg1: i32) -> (i32, i32) {
    %c0_i32 = arith.constant 0 : i32
    %c0_i32_0 = arith.constant 0 : i32
    %c0_i32_1 = arith.constant 0 : i32
    return %c0_i32, %c0_i32_0 : i32, i32
  }
  func.func @transform_2(%arg0: i32, %arg1: i32) -> (i32, i32) {
    %c0_i32 = arith.constant 0 : i32
    %c0_i32_0 = arith.constant 0 : i32
    %c0_i32_1 = arith.constant 0 : i32
    return %c0_i32, %c0_i32_0 : i32, i32
  }
  func.func @transform_3(%arg0: i32, %arg1: i32) -> (i32, i32, i32, i32) {
    %c0_i32 = arith.constant 0 : i32
    %c0_i32_0 = arith.constant 0 : i32
    %c0_i32_1 = arith.constant 0 : i32
    return %arg0, %arg1, %c0_i32, %c0_i32_0 : i32, i32, i32, i32
  }
}

</mosaic_0001>

<bundles_post_ra>
// kernel: double_conv_pallas.5
= control target key start
LH: loop header
LB: loop body
LE: loop exit
PB: predicated region body
PF: predicated region fallthrough
CT: control target
= control target key end

     0   :  { %s580_s12 = smov 0   ;;  %s582_s13 = smov 0   ;;  %s705_s0 = inlined_call_operand.vmem [shape: bf16[2,16,16,128], index: 0, kind: input, shape index: {}]   ;;  %s706_s1 = inlined_call_operand.vmem [shape: f32[1,128], index: 1, kind: input, shape index: {}]   ;;  %s707_s2 = inlined_call_operand.vmem [shape: f32[1,128], index: 2, kind: input, shape index: {}]   ;;  %s708_s3 = inlined_call_operand.vmem [shape: f32[2,16,16,128], index: 3, kind: output, shape index: {}]  }
   0x1   :  { %s584_s14 = smov 0   ;;  %s586_s15 = smov 0  }
   0x2   :  { %s588_s16 = smov 0  }
   0x3 LB: > { %s22_s17 = sadd.s32 1, %s550_s14  ;;  %s25_s18 = sadd.s32 1, %s554_s15  ;;  %s558_s16 = sphi %s588_s16, %s13_s16   ;;  %s554_s15 = sphi %s586_s15, %s712_s15   ;;  %s550_s14 = sphi %s584_s14, %s711_s14   ;;  %s546_s13 = sphi %s582_s13, %s710_s13   ;;  %s542_s12 = sphi %s580_s12, %s709_s12  }
   0x4   : > { %p23_p0 = scmp.ge.s32.totalorder %s22_s17, 2  ;;  %p428_p1 = scmp.ge.s32.totalorder %s558_s16, 1 }
   0x5   : > { %p159_p2 = scmp.lt.s32.totalorder %s558_s16, 5 }
   0x6   : > { %s714_s17 = smov (%p23_p0, %s22_s17), 0  ;;  %s716_s18 = smov (!%p23_p0, %s25_s18), %s554_s15 }
   0x7   : > { %p160_p3 = pnand %p428_p1, %p159_p2  ;;  %p27_p4 = scmp.ge.s32.totalorder %s716_s18, 2 }
   0x8   : > { %s429_s19 = sshll.u32 (!%p160_p3), %s542_s12, 3  ;;  %p194_p5 = scmp.lt.s32.totalorder (!%p160_p3), %s546_s13, 1  ;;  %v621_v0 = vld [vmem:[%s706_s1] ss:$0 sm:$0xff] (!%p160_p3) }
   0x9   : > { %s718_s18 = smov (%p27_p4, %s716_s18), 0  ;;  %163 = sbr.rel (%p160_p3) target bundleno = 42 (0x2a), region = 32 }
   0xa   : > { %p196_p6 = scmp.lt.s32.totalorder (!%p160_p3), %s429_s19, 15  ;;  %v630_v9 = vld [vmem:[%s707_s2] ss:$0 sm:$0xff] (!%p160_p3) }
  0x10   : > { %s720_s13 = smov (!%p194_p5, %s546_s13), 1  ;;  %s722_s19 = smov (!%p196_p6, %s429_s19), 15 }
  0x11   : > { %s431_s20 = sshll.u32 %s720_s13, 5  ;;  %s430_s21 = sshll.u32 %s722_s19, 1 }
  0x12   : > { %s610_s22 = sadd.s32 %s431_s20, %s430_s21 }
  0x13   : > { %s432_s23 = sshll.u32 %s610_s22, 2  ;;  %s436_s4 = sshll.u32 %s610_s22, 3 }
  0x14   : > { %s616_s26 = scalar_lea.vmem %s705_s0, %s432_s23  ;;  %s648_s7 = scalar_lea.vmem %s708_s3, %s436_s4 }
  0x15   : > { %v442_v1 = vld [vmem:[%s616_s26] sm:$0xff]   ;;  %v473_v2 = vld [vmem:[%s616_s26 + $0x8] sm:$0xff]   ;;  %v474_v3 = vld [vmem:[%s616_s26 + $0x10] sm:$0xff]  }
  0x16   : > { %v443_v4 = vunpack.c.l.bf16 %v442_v1  ;;  %v444_v5 = vunpack.c.h.bf16 %v442_v1  ;;  %v447_v6 = vunpack.c.l.bf16 %v473_v2  ;;  %v448_v7 = vunpack.c.h.bf16 %v473_v2  ;;  %v475_v8 = vld [vmem:[%s616_s26 + $0x18] sm:$0xff]   ;;  %v476_v30 = vld [vmem:[%s616_s26 + $0x20] sm:$0xff]   ;;  %v477_v31 = vld [vmem:[%s616_s26 + $0x28] sm:$0xff]  }
  0x17   : > { %v451_v10 = vunpack.c.l.bf16 %v474_v3  ;;  %v452_v11 = vunpack.c.h.bf16 %v474_v3  ;;  %v455_v12 = vunpack.c.l.bf16 %v475_v8  ;;  %v456_v13 = vunpack.c.h.bf16 %v475_v8  ;;  %v478_v36 = vld [vmem:[%s616_s26 + $0x30] sm:$0xff]   ;;  %v479_v37 = vld [vmem:[%s616_s26 + $0x38] sm:$0xff]  }
  0x18   : > { %v255_v14 = vmul.f32 %v443_v4, %v621_v0  ;;  %v256_v15 = vmul.f32 %v444_v5, %v621_v0  ;;  %v257_v16 = vmul.f32 %v447_v6, %v621_v0  ;;  %v258_v17 = vmul.f32 %v448_v7, %v621_v0 }
  0x19   : > { %v259_v18 = vmul.f32 %v451_v10, %v621_v0  ;;  %v260_v19 = vmul.f32 %v452_v11, %v621_v0  ;;  %v261_v20 = vmul.f32 %v455_v12, %v621_v0  ;;  %v262_v21 = vmul.f32 %v456_v13, %v621_v0 }
  0x1a   : > { %v277_v22 = vadd.f32 %v630_v9, %v255_v14  ;;  %v278_v23 = vadd.f32 %v630_v9, %v256_v15  ;;  %v279_v24 = vadd.f32 %v630_v9, %v257_v16  ;;  %v280_v25 = vadd.f32 %v630_v9, %v258_v17 }
  0x1b   : > { %v281_v26 = vadd.f32 %v630_v9, %v259_v18  ;;  %v282_v27 = vadd.f32 %v630_v9, %v260_v19  ;;  %v283_v28 = vadd.f32 %v630_v9, %v261_v20  ;;  %v284_v29 = vadd.f32 %v630_v9, %v262_v21 }
  0x1c   : > { %v293_v32 = vmax.f32 %v277_v22, 0.0  ;;  %v294_v33 = vmax.f32 %v278_v23, 0.0  ;;  %v295_v34 = vmax.f32 %v279_v24, 0.0  ;;  %v296_v35 = vmax.f32 %v280_v25, 0.0 }
  0x1d   : > { %v297_v38 = vmax.f32 %v281_v26, 0.0  ;;  %v298_v39 = vmax.f32 %v282_v27, 0.0  ;;  %v299_v40 = vmax.f32 %v283_v28, 0.0  ;;  %v300_v41 = vmax.f32 %v284_v29, 0.0 }
  0x1e   : > { %309 = vst [vmem:[%s648_s7] sm:$0xff] %v293_v32  ;;  %310 = vst [vmem:[%s648_s7 + $0x8] sm:$0xff] %v294_v33  ;;  %v459_v42 = vunpack.c.l.bf16 %v476_v30  ;;  %v460_v43 = vunpack.c.h.bf16 %v476_v30  ;;  %v463_v44 = vunpack.c.l.bf16 %v477_v31  ;;  %v464_v45 = vunpack.c.h.bf16 %v477_v31 }
  0x1f   : > { %311 = vst [vmem:[%s648_s7 + $0x10] sm:$0xff] %v295_v34  ;;  %312 = vst [vmem:[%s648_s7 + $0x18] sm:$0xff] %v296_v35  ;;  %v467_v46 = vunpack.c.l.bf16 %v478_v36  ;;  %v468_v47 = vunpack.c.h.bf16 %v478_v36  ;;  %v471_v48 = vunpack.c.l.bf16 %v479_v37  ;;  %v472_v49 = vunpack.c.h.bf16 %v479_v37 }
  0x20   : > { %313 = vst [vmem:[%s648_s7 + $0x20] sm:$0xff] %v297_v38  ;;  %314 = vst [vmem:[%s648_s7 + $0x28] sm:$0xff] %v298_v39  ;;  %v263_v50 = vmul.f32 %v459_v42, %v621_v0  ;;  %v264_v51 = vmul.f32 %v460_v43, %v621_v0  ;;  %v265_v52 = vmul.f32 %v463_v44, %v621_v0 }
  0x21   : > { %315 = vst [vmem:[%s648_s7 + $0x30] sm:$0xff] %v299_v40  ;;  %316 = vst [vmem:[%s648_s7 + $0x38] sm:$0xff] %v300_v41  ;;  %v266_v53 = vmul.f32 %v464_v45, %v621_v0  ;;  %v267_v54 = vmul.f32 %v467_v46, %v621_v0  ;;  %v268_v55 = vmul.f32 %v468_v47, %v621_v0 }
  0x22   : > { %v269_v56 = vmul.f32 %v471_v48, %v621_v0  ;;  %v270_v57 = vmul.f32 %v472_v49, %v621_v0  ;;  %v285_v58 = vadd.f32 %v630_v9, %v263_v50  ;;  %v286_v59 = vadd.f32 %v630_v9, %v264_v51 }
  0x23   : > { %v287_v60 = vadd.f32 %v630_v9, %v265_v52  ;;  %v288_v61 = vadd.f32 %v630_v9, %v266_v53  ;;  %v289_v62 = vadd.f32 %v630_v9, %v267_v54  ;;  %v290_v63 = vadd.f32 %v630_v9, %v268_v55 }
  0x24   : > { %v291_v0 = vadd.f32 %v630_v9, %v269_v56  ;;  %v292_v1 = vadd.f32 %v630_v9, %v270_v57  ;;  %v301_v2 = vmax.f32 %v285_v58, 0.0  ;;  %v302_v3 = vmax.f32 %v286_v59, 0.0 }
  0x25   : > { %v303_v4 = vmax.f32 %v287_v60, 0.0  ;;  %v304_v5 = vmax.f32 %v288_v61, 0.0  ;;  %v305_v6 = vmax.f32 %v289_v62, 0.0  ;;  %v306_v7 = vmax.f32 %v290_v63, 0.0 }
  0x26   : > { %v307_v8 = vmax.f32 %v291_v0, 0.0  ;;  %v308_v10 = vmax.f32 %v292_v1, 0.0  ;;  %317 = vst [vmem:[%s648_s7 + $0x40] sm:$0xff] %v301_v2  ;;  %318 = vst [vmem:[%s648_s7 + $0x48] sm:$0xff] %v302_v3 }
  0x27   : > { %319 = vst [vmem:[%s648_s7 + $0x50] sm:$0xff] %v303_v4  ;;  %320 = vst [vmem:[%s648_s7 + $0x58] sm:$0xff] %v304_v5 }
  0x28   : > { %321 = vst [vmem:[%s648_s7 + $0x60] sm:$0xff] %v305_v6  ;;  %322 = vst [vmem:[%s648_s7 + $0x68] sm:$0xff] %v306_v7 }
  0x29   : > { %323 = vst [vmem:[%s648_s7 + $0x70] sm:$0xff] %v307_v8  ;;  %324 = vst [vmem:[%s648_s7 + $0x78] sm:$0xff] %v308_v10 }
  0x2a PF: > { %s13_s16 = sadd.s32 1, %s558_s16   ;;  %s709_s12 = smov %s550_s14 }
  0x2b   : > { %p10_p7 = scmp.ge.s32.totalorder %s13_s16, 6   ;;  %s710_s13 = smov %s554_s15 }
  0x2c   : > { %s711_s14 = smov %s714_s17  ;;  %s712_s15 = smov %s718_s18 }
  0x2d   :  { %12 = sbr.rel (!%p10_p7) target bundleno = 3 (0x3), region = 62 }

// kernel: double_conv_pallas.4
= control target key start
LH: loop header
LB: loop body
LE: loop exit
PB: predicated region body
PF: predicated region fallthrough
CT: control target
= control target key end

     0   :  { %s3291_s18 = smov 0   ;;  %s3293_s19 = smov 0   ;;  %s4568_s0 = inlined_call_operand.vmem [shape: bf16[2,18,18,128], index: 0, kind: input, shape index: {}]   ;;  %s4569_s1 = inlined_call_operand.vmem [shape: f32[1,128], index: 1, kind: input, shape index: {}]   ;;  %s4570_s2 = inlined_call_operand.vmem [shape: f32[1,128], index: 2, kind: input, shape index: {}]   ;;  %s4571_s3 = inlined_call_operand.vmem [shape: bf16[1152,128], index: 3, kind: input, shape index: {}]   ;;  %s4572_s4 = inlined_call_operand.vmem [shape: bf16[2,16,16,128], index: 4, kind: output, shape index: {0}]   ;;  %s4573_s5 = inlined_call_operand.vmem [shape: f32[2,2,2,128], index: 5, kind: output, shape index: {1}]  }
   0x1   :  { %s3295_s20 = smov 0   ;;  %s3297_s21 = smov 0  }
   0x2   :  { %s3299_s22 = smov 0  }
   0x3 LB: > { %s25_s23 = sadd.s32 1, %s3251_s20  ;;  %s28_s24 = sadd.s32 1, %s3255_s21  ;;  %s3259_s22 = sphi %s3299_s22, %s16_s22   ;;  %s3255_s21 = sphi %s3297_s21, %s4707_s21   ;;  %s3251_s20 = sphi %s3295_s20, %s4706_s20   ;;  %s3247_s19 = sphi %s3293_s19, %s4705_s19   ;;  %s3243_s18 = sphi %s3291_s18, %s4704_s18  }
   0x4   : > { %p26_p0 = scmp.ge.s32.totalorder %s25_s23, 2  ;;  %p2411_p1 = scmp.ge.s32.totalorder %s3259_s22, 1 }
   0x5   : > { %p206_p2 = scmp.lt.s32.totalorder %s3259_s22, 5 }
   0x6   : > { %s4709_s23 = smov (%p26_p0, %s25_s23), 0  ;;  %s4711_s24 = smov (!%p26_p0, %s28_s24), %s3255_s21 }
   0x7   : > { %p207_p3 = pnand %p2411_p1, %p206_p2  ;;  %p30_p4 = scmp.ge.s32.totalorder %s4711_s24, 2 }
   0x9   : > { %s4713_s24 = smov (%p30_p4, %s4711_s24), 0  ;;  %210 = sbr.rel (%p207_p3) target bundleno = 498 (0x1f2), region = 36 }
  0x10   : > { %v3147_v0 = vld [vmem:[%s4571_s3 + $0x100] sm:$0xff]   ;;  %v3150_v3 = vld [vmem:[%s4571_s3 + $0x108] sm:$0xff]   ;;  %p247_p5 = scmp.lt.s32.totalorder %s3247_s19, 1  ;;  %v3153_v6 = vld [vmem:[%s4571_s3 + $0x110] sm:$0xff]   ;;  %s3354_s25 = sshll.u32 %s3243_s18, 3  ;;  %v450_v11 = vlaneseq  ;;  %vm4574_vm8 = vcmask 1046528  }
  0x11   : > { %v3148_v1 = vld [vmem:[%s4571_s3 + $0x140] sm:$0xff]   ;;  %2674 = vmatprep.subr.bf16.mxu0 %v3147_v0  ;;  %v3151_v4 = vld [vmem:[%s4571_s3 + $0x148] sm:$0xff]   ;;  %v3154_v7 = vld [vmem:[%s4571_s3 + $0x150] sm:$0xff]   ;;  %v3369_v13 = vstv %s3354_s25  ;;  %s2514_s26 = smul.u32 96, %s3243_s18  ;;  %vm4576_vm13 = vsmask.f32 7424 }
  0x12   : > { %v3149_v2 = vld [vmem:[%s4571_s3 + $0xc0] sm:$0xff]   ;;  %2914 = vmatprep.subr.bf16.mxu1 %v3148_v1  ;;  %v3152_v5 = vld [vmem:[%s4571_s3 + $0xc8] sm:$0xff]   ;;  %v3155_v8 = vld [vmem:[%s4571_s3 + $0xd0] sm:$0xff]   ;;  %s4715_s19 = smov (!%p247_p5, %s3247_s19), 1  ;;  %v441_v16 = vadd.s32 1, %v3369_v13  ;;  %v3379_v17 = vshrl.u32 %v450_v11, 7 }
  0x13   : > { %2675 = vmatpush3.bf16.msra.mxu0 %v3149_v2  ;;  %2915 = vmatpush3.bf16.msra.mxu1 %v3148_v1  ;;  %v3156_v9 = vld [vmem:[%s4571_s3 + $0x118] sm:$0xff]   ;;  %v3159_v14 = vld [vmem:[%s4571_s3 + $0x120] sm:$0xff]   ;;  %s3106_s11 = smul.u32 216, %s4715_s19  ;;  %v3162_v19 = vld [vmem:[%s4571_s3 + $0x128] sm:$0xff]   ;;  %v442_v24 = vadd.s32 2, %v3369_v13  ;;  %v3418_v28 = vadd.s32 3, %v3369_v13 }
  0x14   : > { %2676 = vmatprep.subr.bf16.mxu0 %v3150_v3  ;;  %2916 = vmatprep.subr.bf16.mxu1 %v3151_v4  ;;  %v3157_v10 = vld [vmem:[%s4571_s3 + $0x158] sm:$0xff]   ;;  %v3160_v15 = vld [vmem:[%s4571_s3 + $0x160] sm:$0xff]   ;;  %v3163_v20 = vld [vmem:[%s4571_s3 + $0x168] sm:$0xff]   ;;  %v3395_v21 = vadd.s32 16, %v3379_v17  ;;  %vm455_vm0 = vcmp.ge.s32.totalorder %v441_v16, 1  ;;  %vm465_vm1 = vcmp.le.s32.totalorder %v441_v16, 16 }
  0x15   : > { %v3158_v12 = vld [vmem:[%s4571_s3 + $0xd8] sm:$0xff]   ;;  %v3161_v18 = vld [vmem:[%s4571_s3 + $0xe0] sm:$0xff]   ;;  %s251_s29 = scalar_lea.vmem %s4568_s0, %s3106_s11  ;;  %v3164_v22 = vld [vmem:[%s4571_s3 + $0xe8] sm:$0xff]   ;;  %vm4578_vm2 = vcmp.ge.s32.totalorder %v3379_v17, 1  ;;  %vm456_vm4 = vcmp.ge.s32.totalorder %v442_v24, 1  ;;  %vm466_vm6 = vcmp.le.s32.totalorder %v442_v24, 16 }
  0x16   : > { %v3165_v23 = vld [vmem:[%s4571_s3 + $0x130] sm:$0xff]   ;;  %s3407_s11 = scalar_lea.vmem %s251_s29, %s2514_s26  ;;  %vm4577_vm3 = vcmp.le.s32.totalorder %v3395_v21, 16  ;;  %v3168_v27 = vld [vmem:[%s4571_s3 + $0x138] sm:$0xff]   ;;  %v3425_v31 = vld [vmem:[%s4569_s1] ss:$0 sm:$0xff]  ;;  %v3463_v51 = vadd.s32 4, %v3369_v13 }
  0x17   : > { %2677 = vmatpush3.bf16.msra.mxu0 %v3152_v5  ;;  %2917 = vmatpush3.bf16.msra.mxu1 %v3151_v4  ;;  %v3166_v25 = vld [vmem:[%s4571_s3 + $0x170] sm:$0xff]   ;;  %v3169_v32 = vld [vmem:[%s4571_s3 + $0x178] sm:$0xff]   ;;  %vm3432_vm5 = vmand %vm455_vm0, %vm465_vm1  ;;  %vm457_vm10 = vcmp.ge.s32.totalorder %v3418_v28, 1  ;;  %vm467_vm12 = vcmp.le.s32.totalorder %v3418_v28, 16  ;;  %v3499_v1 = vadd.s32 5, %v3369_v13  ;;  %p255_p6 = scmp.lt.s32.totalorder %s3354_s25, 15 }
  0x18   : > { %2678 = vmatprep.subr.bf16.mxu0 %v3153_v6  ;;  %2918 = vmatprep.subr.bf16.mxu1 %v3154_v7  ;;  %v3167_v26 = vld [vmem:[%s4571_s3 + $0xf0] sm:$0xff]   ;;  %v2591_v37 = vld [vmem:[%s3407_s11 + $0x18] sm:$0xff]   ;;  %v3440_v38 = vld [vmem:[%s4570_s2] ss:$0 sm:$0xff]  ;;  %vm458_vm15 = vcmp.ge.s32.totalorder %v3463_v51, 1  ;;  %vm468_vm0 = vcmp.le.s32.totalorder %v3463_v51, 16 }
  0x19   : > { %v279_v29 = vld [vmem:[%s3407_s11 + $0xc] sm:$0xff]   ;;  %v281_v30 = vld [vmem:[%s3407_s11 + $0x14] sm:$0x1]  ;;  %v2537_v39 = vunpack.c.l.bf16 %v2591_v37  ;;  %v2538_v40 = vunpack.c.h.bf16 %v2591_v37  ;;  %v284_v41 = vld [vmem:[%s3407_s11 + $0x20] sm:$0x1]  ;;  %s4717_s25 = smov (!%p255_p6, %s3354_s25), 15 }
  0x1a   : > { %v311_v33 = vunpack.c.l.bf16 %v279_v29  ;;  %v312_v34 = vunpack.c.h.bf16 %v279_v29  ;;  %v313_v35 = vunpack.c.l.bf16 %v281_v30  ;;  %v3170_v42 = vld [vmem:[%s4571_s3 + $0xf8] sm:$0xff]   ;;  %vm3453_vm7 = vmand %vm3432_vm5, %vm4578_vm2  ;;  %v316_v47 = vunpack.c.l.bf16 %v284_v41  ;;  %v3171_v50 = vld [vmem:[%s4571_s3 + $0x40] sm:$0xff]   ;;  %s2414_s10 = sshll.u32 %s4717_s25, 1  ;;  %s2415_s12 = sshll.u32 %s4715_s19, 5 }
  0x1b   : > { %2679 = vmatpush3.bf16.msra.mxu0 %v3155_v8  ;;  %2919 = vmatpush3.bf16.msra.mxu1 %v3154_v7  ;;  %v350_v48 = vmul.f32 %v2537_v39, %v3425_v31  ;;  %v351_v49 = vmul.f32 %v2538_v40, %v3425_v31  ;;  %vm3470_vm9 = vmand %vm456_vm4, %vm466_vm6  ;;  %v3172_v56 = vld [vmem:[%s4571_s3 + $0x1c0] sm:$0xff]   ;;  %v3511_v8 = vadd.s32 6, %v3369_v13  ;;  %v3211_v36 = vld [vmem:[%s4571_s3 + $0xa8] sm:$0xff]   ;;  %s259_s13 = sadd.s32 %s2415_s12, %s2414_s10  ;;  %p265_p7 = scmp.lt.s32.totalorder %s3243_s18, 1 }
  0x1c   : > { %2680 = vmatprep.subr.bf16.mxu0 %v3156_v9  ;;  %2920 = vmatprep.subr.bf16.mxu1 %v3157_v10  ;;  %v347_v43 = vmul.f32 %v3425_v31, %v311_v33  ;;  %v348_v44 = vmul.f32 %v3425_v31, %v312_v34  ;;  %v349_v45 = vmul.f32 %v3425_v31, %v313_v35  ;;  %vm3482_vm11 = vmand %vm3432_vm5, %vm4577_vm3  ;;  %v285_v16 = vld [vmem:[%s3407_s11 + $0x24] sm:$0xff]   ;;  %v2592_v33 = vld [vmem:[%s3407_s11 + $0x30] sm:$0xff]   ;;  %s2416_s14 = sshll.u32 %s259_s13, 2  ;;  %s2417_s17 = sshll.u32 %s4715_s19, 1 }
  0x1d   : > { %v352_v58 = vmul.f32 %v3425_v31, %v316_v47  ;;  %v386_v59 = vadd.f32 %v3440_v38, %v350_v48  ;;  %v387_v60 = vadd.f32 %v3440_v38, %v351_v49  ;;  %vm3494_vm14 = vmand %vm3470_vm9, %vm4578_vm2  ;;  %v317_v30 = vunpack.c.l.bf16 %v285_v16  ;;  %v3173_v39 = vld [vmem:[%s4571_s3] sm:$0xff]   ;;  %v290_v47 = vld [vmem:[%s3407_s11 + $0x38] sm:$0x1]  ;;  %s4498_s16 = scalar_lea.vmem %s4572_s4, %s2416_s14  ;;  %s4719_s18 = smov (!%p265_p7, %s3243_s18), 1 }
  0x1e   : > { %v383_v52 = vadd.f32 %v3440_v38, %v347_v43  ;;  %v384_v53 = vadd.f32 %v3440_v38, %v348_v44  ;;  %v385_v54 = vadd.f32 %v3440_v38, %v349_v45  ;;  %vm528_vm1 = vmand %vm3470_vm9, %vm4577_vm3  ;;  %v318_v40 = vunpack.c.h.bf16 %v285_v16  ;;  %v3175_v43 = vld [vmem:[%s4571_s3 + $0x48] sm:$0xff]   ;;  %s268_s26 = sadd.s32 %s2417_s17, %s4719_s18 }
  0x1f   : > { %2681 = vmatpush3.bf16.msra.mxu0 %v3158_v12  ;;  %2921 = vmatpush3.bf16.msra.mxu1 %v3157_v10  ;;  %v388_v2 = vadd.f32 %v3440_v38, %v352_v58  ;;  %v416_v3 = vmax.f32 %v386_v59, 0.0  ;;  %v417_v4 = vmax.f32 %v387_v60, 0.0  ;;  %vm3534_vm4 = vmand %vm457_vm10, %vm467_vm12  ;;  %vm459_vm10 = vcmp.ge.s32.totalorder %v3499_v1, 1  ;;  %v4226_v46 = vld [vmem:[%s4571_s3 + $0x208] sm:$0xff]   ;;  %s2418_s27 = sshll.u32 %s268_s26, 1 }
  0x20   : > { %2682 = vmatprep.subr.bf16.mxu0 %v3159_v14  ;;  %2922 = vmatprep.subr.bf16.mxu1 %v3160_v15  ;;  %v413_v61 = vmax.f32 %v383_v52, 0.0  ;;  %v414_v62 = vmax.f32 %v384_v53, 0.0  ;;  %v415_v63 = vmax.f32 %v385_v54, 0.0  ;;  %vm4575_vm6 = vmpackc.low %vm3432_vm5, %vm3453_vm7  ;;  %v354_v57 = vmul.f32 %v3425_v31, %v318_v40  ;;  %v303_v51 = vld [vmem:[%s3407_s11 + $0x6c] sm:$0xff]   ;;  %s4542_s29 = scalar_lea.vmem %s4573_s5, %s2418_s27 }
  0x21   : > { %v418_v11 = vmax.f32 %v388_v2, 0.0  ;;  %v556_v12 = vsel %vm3494_vm14, %v416_v3, 0.0  ;;  %vm3563_vm12 = vmand %vm3534_vm4, %vm4578_vm2  ;;  %v2541_v59 = vunpack.c.l.bf16 %v2592_v33  ;;  %v3178_v2 = vld [vmem:[%s4571_s3 + $0x1c8] sm:$0xff]   ;;  %v3624_v16 = vadd.s32 8, %v3369_v13 }
  0x22   : > { %v553_v5 = vsel %vm3453_vm7, %v413_v61, 0.0  ;;  %v554_v6 = vsel %vm3432_vm5, %v414_v62, 0.0  ;;  %v555_v7 = vsel %vm3482_vm11, %v415_v63, 0.0  ;;  %v3519_v14 = vpack.c.bf16 %v414_v62, %v413_v61 }
  0x23   : > { %2683 = vmatpush3.bf16.msra.mxu0 %v3161_v18  ;;  %2923 = vmatpush3.bf16.msra.mxu1 %v3160_v15  ;;  %v582_v9 = vpack.c.bf16 %v554_v6, %v553_v5  ;;  %v583_v10 = vpack.c.bf16 %v555_v7, %v555_v7  ;;  %v557_v15 = vsel %vm3470_vm9, %v417_v4, 0.0  ;;  %v3524_v18 = vpack.c.bf16 %v417_v4, %v416_v3  ;;  %v3191_v7 = vld [vmem:[%s4571_s3 + $0x30] sm:$0xff]  }
  0x24   : > { %2684 = vmatprep.subr.bf16.mxu0 %v3162_v19  ;;  %2924 = vmatprep.subr.bf16.mxu1 %v3163_v20  ;;  %v3527_v19 = vadd.s32 7, %v3369_v13  ;;  %v584_v29 = vpack.c.bf16 %v557_v15, %v556_v12  ;;  %vm469_vm11 = vcmp.le.s32.totalorder %v3499_v1, 16  ;;  %v3593_v5 = vadd.f32 %v3440_v38, %v354_v57  ;;  %v291_v15 = vld [vmem:[%s3407_s11 + $0x3c] sm:$0xff]  }
  0x25   : > { %v741_v24 = vrot.slane %v582_v9, 1  ;;  %v2542_v6 = vunpack.c.h.bf16 %v2592_v33  ;;  %v356_v12 = vmul.f32 %v2541_v59, %v3425_v31  ;;  %v323_v33 = vunpack.c.l.bf16 %v291_v15  ;;  %v3182_v59 = vld [vmem:[%s4571_s3 + $0x18] sm:$0xff]  }
  0x26   : > { %v744_v28 = vrot.slane %v584_v29, 1  ;;  %v634_v44 = vshrl.u32 %v584_v29, 16  ;;  %v636_v45 = vshll.u32 %v584_v29, 16  ;;  %v420_v55 = vmax.f32 %v3593_v5, 0.0  ;;  %v3187_v5 = vld [vmem:[%s4571_s3 + $0x68] sm:$0xff]  }
  0x27   : > { %2685 = vmatpush3.bf16.msra.mxu0 %v3164_v22  ;;  %2925 = vmatpush3.bf16.msra.mxu1 %v3163_v20  ;;  %v622_v20 = vshrl.u32 %v582_v9, 16  ;;  %v624_v22 = vshll.u32 %v582_v9, 16  ;;  %v3176_v9 = vld [vmem:[%s4571_s3 + $0x8] sm:$0xff]   ;;  %v3644_v29 = vadd.f32 %v3440_v38, %v356_v12  ;;  %v324_v40 = vunpack.c.h.bf16 %v291_v15 }
  0x28   : > { %2686 = vmatprep.subr.bf16.mxu0 %v3165_v23  ;;  %2926 = vmatprep.subr.bf16.mxu1 %v3166_v25  ;;  %v629_v23 = vshll.u32 %v583_v10, 16  ;;  %v638_v54 = vrot.slane %v636_v45, 1  ;;  %v3179_v45 = vld [vmem:[%s4571_s3 + $0x10] sm:$0xff]  }
  0x29   : > { %v626_v34 = vrot.slane %v624_v22, 1  ;;  %v357_v22 = vmul.f32 %v2542_v6, %v3425_v31  ;;  %v360_v15 = vmul.f32 %v3425_v31, %v324_v40 }
  0x2a   : > { %v631_v35 = vrot.slane %v629_v23, 1  ;;  %v639_v3 = vor.u32 %v638_v54, %v634_v44  ;;  %v3177_v23 = vld [vmem:[%s4571_s3 + $0x50] sm:$0xff]   ;;  %v422_v44 = vmax.f32 %v3644_v29, 0.0  ;;  %v359_v54 = vmul.f32 %v3425_v31, %v323_v33  ;;  %v3194_v29 = vld [vmem:[%s4571_s3 + $0x38] sm:$0xff]  }
  0x2b   : > { %2687 = vmatpush3.bf16.msra.mxu0 %v3167_v26  ;;  %2927 = vmatpush3.bf16.msra.mxu1 %v3166_v25  ;;  %v287_v25 = vld [vmem:[%s3407_s11 + $0x2c] sm:$0x1]  ;;  %v742_v26 = vrot.slane %v583_v10, 1  ;;  %v627_v48 = vor.u32 %v626_v34, %v622_v20 }
  0x2c   : > { %2688 = vmatprep.subr.bf16.mxu0 %v3168_v27  ;;  %2928 = vmatprep.subr.bf16.mxu1 %v3169_v32  ;;  %v558_v27 = vsel %vm528_vm1, %v418_v11, 0.0  ;;  %v319_v52 = vunpack.c.l.bf16 %v287_v25  ;;  %vm3573_vm1 = vmand %vm3534_vm4, %vm4577_vm3  ;;  %v322_v11 = vunpack.c.l.bf16 %v290_v47  ;;  %v293_v25 = vld [vmem:[%s3407_s11 + $0x44] sm:$0x1]  ;;  %v3184_v47 = vld [vmem:[%s4571_s3 + $0x1d0] sm:$0xff]  }
  0x2d   : > { %v585_v37 = vpack.c.bf16 %v558_v27, %v558_v27  ;;  %v3543_v41 = vsel %vm4574_vm8, %v741_v24, %v742_v26  ;;  %v3578_v60 = vsel %vm4576_vm13, %v627_v48, %v631_v35  ;;  %v3180_v24 = vld [vmem:[%s4571_s3 + $0x188] sm:$0xff]   ;;  %v560_v35 = vsel %vm3534_vm4, %v420_v55, 0.0 }
  0x2e   : > { %2930 = vmatprep.mubr.bf16.mxu1 %v3543_v41  ;;  %v355_v63 = vmul.f32 %v3425_v31, %v319_v52  ;;  %1141 = vmatprep.mubr.bf16.mxu0 %v3578_v60  ;;  %v358_v27 = vmul.f32 %v3425_v31, %v322_v11  ;;  %v325_v52 = vunpack.c.l.bf16 %v293_v25 }
  0x2f   : > { %2689 = vmatpush3.bf16.msra.mxu0 %v3170_v42  ;;  %2929 = vmatpush3.bf16.msra.mxu1 %v3169_v32  ;;  %v3174_v42 = vld [vmem:[%s4571_s3 + $0x180] sm:$0xff]   ;;  %v745_v49 = vrot.slane %v585_v37, 1 }
  0x30   : > { %2754 = vmatprep.subr.bf16.mxu1 %v3171_v50  ;;  %2834 = vmatprep.subr.bf16.mxu0 %v3172_v56  ;;  %v641_v50 = vshll.u32 %v585_v37, 16  ;;  %v353_v56 = vmul.f32 %v3425_v31, %v317_v30  ;;  %v391_v10 = vadd.f32 %v3440_v38, %v355_v63  ;;  %v3663_v37 = vadd.f32 %v3440_v38, %v357_v22  ;;  %v3193_v30 = vld [vmem:[%s4571_s3 + $0x78] sm:$0xff]  }
  0x31   : > { %v3581_v61 = vsel %vm4574_vm8, %v744_v28, %v745_v49  ;;  %vm3599_vm8 = vmand %vm458_vm15, %vm468_vm0  ;;  %v361_v22 = vmul.f32 %v3425_v31, %v325_v52 }
  0x32   : > { %v643_v62 = vrot.slane %v641_v50, 1  ;;  %2931 = vmatmul.mubr.bf16.vlgmr.msra.gmra.mrb[0].mxu1 %v3581_v61  ;;  %v3590_v4 = vadd.f32 %v3440_v38, %v353_v56  ;;  %2604 = vmatmul.mubr.msk.bf16.vlgmr.msra.gmra.mrb[0].mxu0 %vm4575_vm6, %v3519_v14  ;;  %vm3617_vm15 = vmpackc.low %vm3470_vm9, %vm3494_vm14  ;;  %vm470_vm14 = vcmp.le.s32.totalorder %v3511_v8, 16  ;;  %v421_v26 = vmax.f32 %v391_v10, 0.0  ;;  %v3181_v50 = vld [vmem:[%s4571_s3 + $0x58] sm:$0xff]  }
  0x33   : > { %2755 = vmatpush3.bf16.msra.mxu1 %v3173_v39  ;;  %2835 = vmatpush3.bf16.msra.mxu0 %v3174_v42  ;;  %vm3650_vm0 = vmand %vm3599_vm8, %vm4578_vm2  ;;  %vm471_vm9 = vcmp.le.s32.totalorder %v3527_v19, 16  ;;  %v423_v49 = vmax.f32 %v3663_v37, 0.0  ;;  %v3744_v39 = vadd.f32 %v3440_v38, %v360_v15  ;;  %v397_v40 = vadd.f32 %v3440_v38, %v361_v22  ;;  %v3196_v37 = vld [vmem:[%s4571_s3 + $0x1a0] sm:$0xff]  }
  0x34   : > { %2756 = vmatprep.subr.bf16.mxu1 %v3175_v43  ;;  %v3627_v20 = vsel %vm4576_vm13, %v639_v3, %v643_v62  ;;  %v419_v0 = vmax.f32 %v3590_v4, 0.0  ;;  %2836 = vmatprep.subr.bf16.mxu0 %v3178_v2  ;;  %vm3669_vm6 = vmand %vm3599_vm8, %vm4577_vm3  ;;  %vm461_vm13 = vcmp.ge.s32.totalorder %v3527_v19, 1  ;;  %v561_v28 = vsel %vm3573_vm1, %v421_v26, 0.0  ;;  %v2593_v2 = vld [vmem:[%s3407_s11 + $0x48] sm:$0xff]   ;;  %v3186_v3 = vld [vmem:[%s4571_s3 + $0x190] sm:$0xff]  }
  0x35   : > { %1149 = vmatprep.mubr.bf16.mxu0 %v3627_v20  ;;  %v394_v43 = vadd.f32 %v3440_v38, %v358_v27  ;;  %v587_v48 = vpack.c.bf16 %v561_v28, %v561_v28  ;;  %v562_v58 = vsel %vm3650_vm0, %v422_v44, 0.0  ;;  %vm3701_vm1 = vmand %vm459_vm10, %vm469_vm11  ;;  %vm4622_vm10 = vcmask 1046528   ;;  %v3185_v4 = vld [vmem:[%s4571_s3 + $0x20] sm:$0xff]   ;;  %v3192_v28 = vld [vmem:[%s4571_s3 + $0x198] sm:$0xff]  }
  0x36   : > { %v559_v34 = vsel %vm3563_vm12, %v419_v0, 0.0  ;;  %vm3751_vm11 = vmand %vm3701_vm1, %vm4577_vm3  ;;  %v427_v53 = vmax.f32 %v397_v40, 0.0  ;;  %vm4633_vm3 = vcmask 1046528  }
  0x37   : > { %2757 = vmatpush3.bf16.msra.mxu1 %v3176_v9  ;;  %v586_v42 = vpack.c.bf16 %v560_v35, %v559_v34  ;;  %2837 = vmatpush3.bf16.msra.mxu0 %v3180_v24  ;;  %v424_v57 = vmax.f32 %v394_v43, 0.0  ;;  %v748_v6 = vrot.slane %v587_v48, 1  ;;  %v563_v9 = vsel %vm3599_vm8, %v423_v49, 0.0 }
  0x38   : > { %2758 = vmatprep.subr.bf16.mxu1 %v3177_v23  ;;  %2838 = vmatprep.subr.bf16.mxu0 %v3184_v47  ;;  %v653_v11 = vshll.u32 %v587_v48, 16  ;;  %v3718_v12 = vpack.c.bf16 %v563_v9, %v562_v58  ;;  %v3183_v23 = vld [vmem:[%s4571_s3 + $0x60] sm:$0xff]   ;;  %v3741_v35 = vadd.f32 %v3440_v38, %v359_v54  ;;  %v3769_v48 = vpack.c.bf16 %v420_v55, %v419_v0  ;;  %v297_v58 = vld [vmem:[%s3407_s11 + $0x54] sm:$0xff]  }
  0x39   : > { %v747_v56 = vrot.slane %v586_v42, 1  ;;  %v646_v62 = vshrl.u32 %v586_v42, 16  ;;  %v648_v10 = vshll.u32 %v586_v42, 16  ;;  %v564_v1 = vsel %vm3669_vm6, %v424_v57, 0.0  ;;  %vm3734_vm6 = vmand %vm3701_vm1, %vm4578_vm2  ;;  %v296_v42 = vld [vmem:[%s3407_s11 + $0x50] sm:$0x1] }
  0x3a   : > { %2607 = vmatmul.mubr.msk.bf16.gmra.mrb[4].mxu0 %vm3617_vm15, %v3524_v18  ;;  %v3728_v25 = vpack.c.bf16 %v564_v1, %v564_v1  ;;  %v655_v27 = vrot.slane %v653_v11, 1  ;;  %v750_v34 = vrot.slane %v3718_v12, 1  ;;  %v4584_v52 = vmax.f32 %v3741_v35, 0.0  ;;  %v305_v47 = vld [vmem:[%s3407_s11 + $0x74] sm:$0x1] }
  0x3b   : > { %2759 = vmatpush3.bf16.msra.mxu1 %v3179_v45  ;;  %v3726_v24 = vsel %vm4622_vm10, %v747_v56, %v748_v6  ;;  %v650_v26 = vrot.slane %v648_v10, 1  ;;  %2839 = vmatpush3.bf16.msra.mxu0 %v3186_v3  ;;  %vm3761_vm10 = vmpackc.low %vm3534_vm4, %vm3563_vm12  ;;  %v4583_v54 = vmax.f32 %v3744_v39, 0.0  ;;  %v2546_v56 = vunpack.c.h.bf16 %v2593_v2  ;;  %v3188_v6 = vld [vmem:[%s4571_s3 + $0x28] sm:$0xff]   ;;  %v3190_v10 = vld [vmem:[%s4571_s3 + $0x1d8] sm:$0xff]  }
  0x3c   : > { %4623 = vst [vmem:[#allocation3_spill] sm:$0xff] %v3726_v24  ;;  %2760 = vmatprep.subr.bf16.mxu1 %v3181_v50  ;;  %2934 = vmatprep.mubr.bf16.mxu1 %v3726_v24  ;;  %v751_v43 = vrot.slane %v3728_v25, 1  ;;  %v2545_v50 = vunpack.c.l.bf16 %v2593_v2  ;;  %vm4630_vm4 = vcmp.ge.s32.totalorder %v3511_v8, 1  ;;  %vm4635_vm2 = vsmask.f32 7424 }
  0x3d   : > { %v651_v45 = vor.u32 %v650_v26, %v646_v62  ;;  %vm3777_vm12 = vmand %vm4630_vm4, %vm470_vm14  ;;  %v328_v57 = vunpack.c.l.bf16 %v296_v42  ;;  %v566_v62 = vsel %vm3701_vm1, %v4583_v54, 0.0  ;;  %v567_v2 = vsel %vm3751_vm11, %v427_v53, 0.0  ;;  %2840 = vmatprep.subr.bf16.mxu0 %v3190_v10 }
  0x3e   : > { %v3788_v0 = vsel %vm4633_vm3, %v750_v34, %v751_v43  ;;  %v362_v8 = vmul.f32 %v2545_v50, %v3425_v31  ;;  %v363_v3 = vmul.f32 %v2546_v56, %v3425_v31  ;;  %v3824_v1 = vpack.c.bf16 %v567_v2, %v567_v2 }
  0x3f   : > { %2761 = vmatpush3.bf16.msra.mxu1 %v3182_v59  ;;  %4634 = vst [vmem:[#allocation4_spill] sm:$0xff] %v3788_v0  ;;  %v3791_v55 = vsel %vm4635_vm2, %v651_v45, %v655_v27  ;;  %v565_v59 = vsel %vm3734_vm6, %v4584_v52, 0.0  ;;  %vm3815_vm2 = vmand %vm461_vm13, %vm471_vm9  ;;  %v364_v15 = vmul.f32 %v3425_v31, %v328_v57  ;;  %vm462_vm3 = vcmp.ge.s32.totalorder %v3624_v16, 1  ;;  %2841 = vmatpush3.bf16.msra.mxu0 %v3192_v28 }
  0x40   : > { %2762 = vmatprep.subr.bf16.mxu1 %v3183_v23  ;;  %2935 = vmatmul.mubr.bf16.gmra.mrb[4].mxu1 %v3788_v0  ;;  %v3822_v11 = vpack.c.bf16 %v566_v62, %v565_v59  ;;  %v3828_v22 = vadd.f32 %v3440_v38, %v362_v8  ;;  %v299_v23 = vld [vmem:[%s3407_s11 + $0x5c] sm:$0x1]  ;;  %v3836_v19 = vadd.f32 %v3440_v38, %v363_v3  ;;  %vm4638_vm13 = vcmp.ge.s32.totalorder %v3379_v17, 1  ;;  %v2594_v59 = vld [vmem:[%s3407_s11 + $0x60] sm:$0xff]  }
  0x41   : > { %1157 = vmatprep.mubr.bf16.mxu0 %v3791_v55  ;;  %vm3842_vm9 = vmand %vm3777_vm12, %vm4638_vm13  ;;  %v658_v27 = vshrl.u32 %v3718_v12, 16  ;;  %v660_v34 = vshll.u32 %v3718_v12, 16  ;;  %v665_v40 = vshll.u32 %v3728_v25, 16  ;;  %v754_v43 = vrot.slane %v3824_v1, 1  ;;  %v3189_v25 = vld [vmem:[%s4571_s3 + $0x70] sm:$0xff]  }
  0x42   : > { %2610 = vmatmul.mubr.msk.bf16.gmra.mrb[8].mxu0 %vm3761_vm10, %v3769_v48  ;;  %v753_v42 = vrot.slane %v3822_v11, 1  ;;  %v400_v45 = vadd.f32 %v3440_v38, %v364_v15  ;;  %v4582_v50 = vmax.f32 %v3828_v22, 0.0  ;;  %vm4641_vm14 = vcmp.le.s32.totalorder %v3395_v21, 16  ;;  %vm4644_vm4 = vmmov %vm4638_vm13  ;;  %v302_v15 = vld [vmem:[%s3407_s11 + $0x68] sm:$0x1] }
  0x43   : > { %2763 = vmatpush3.bf16.msra.mxu1 %v3185_v4  ;;  %vm3860_vm11 = vmand %vm3777_vm12, %vm4641_vm14  ;;  %v4581_v53 = vmax.f32 %v3836_v19, 0.0  ;;  %v662_v56 = vrot.slane %v660_v34, 1  ;;  %v667_v4 = vrot.slane %v665_v40, 1  ;;  %v329_v57 = vunpack.c.l.bf16 %v297_v58 }
  0x44   : > { %2764 = vmatprep.subr.bf16.mxu1 %v3187_v5  ;;  %vm3872_vm13 = vmand %vm3815_vm2, %vm4644_vm4  ;;  %vm4647_vm14 = vcmask 1046528   ;;  %v430_v62 = vmax.f32 %v400_v45, 0.0  ;;  %v568_v2 = vsel %vm3842_vm9, %v4582_v50, 0.0  ;;  %v330_v3 = vunpack.c.h.bf16 %v297_v58 }
  0x45   : > { %v3878_v5 = vsel %vm4647_vm14, %v753_v42, %v754_v43  ;;  %vm3888_vm4 = vmpackc.low %vm3599_vm8, %vm3650_vm0  ;;  %v4649_v10 = vmov 0  ;;  %v569_v34 = vsel %vm3777_vm12, %v4581_v53, 0.0  ;;  %v663_v40 = vor.u32 %v662_v56, %v658_v27 }
  0x46   : > { %4648 = vst [vmem:[#allocation5_spill] sm:$0xff] %v3878_v5  ;;  %v4650_v10 = vsel %vm3888_vm4, 4294967295, %v4649_v10  ;;  %2938 = vmatprep.mubr.bf16.mxu1 %v3878_v5  ;;  %v331_v28 = vunpack.c.l.bf16 %v299_v23  ;;  %v365_v58 = vmul.f32 %v3425_v31, %v329_v57  ;;  %v570_v42 = vsel %vm3860_vm11, %v430_v62, 0.0  ;;  %v3195_v23 = vld [vmem:[%s4571_s3 + $0x1e0] sm:$0xff]   ;;  %v3197_v62 = vld [vmem:[%s4571_s3 + $0x1e8] sm:$0xff]  }
  0x47   : > { %2765 = vmatpush3.bf16.msra.mxu1 %v3188_v6  ;;  %v3907_v43 = vpack.c.bf16 %v569_v34, %v568_v2  ;;  %v366_v45 = vmul.f32 %v3425_v31, %v330_v3  ;;  %v3914_v6 = vpack.c.bf16 %v423_v49, %v422_v44  ;;  %v3919_v27 = vpack.c.bf16 %v570_v42, %v570_v42 }
  0x48   : > { %2766 = vmatprep.subr.bf16.mxu1 %v3189_v25  ;;  %vm4651_vm8 = vsmask.f32 7424  ;;  %v367_v56 = vmul.f32 %v3425_v31, %v331_v28  ;;  %v3926_v57 = vadd.f32 %v3440_v38, %v365_v58  ;;  %v2549_v25 = vunpack.c.l.bf16 %v2594_v59  ;;  %2842 = vmatprep.subr.bf16.mxu0 %v3195_v23 }
  0x49   : > { %v3922_v12 = vsel %vm4651_vm8, %v663_v40, %v667_v4  ;;  %v756_v44 = vrot.slane %v3907_v43, 1  ;;  %v3937_v49 = vadd.f32 %v3440_v38, %v366_v45  ;;  %v2550_v4 = vunpack.c.h.bf16 %v2594_v59  ;;  %2843 = vmatpush3.bf16.msra.mxu0 %v3196_v37  ;;  %v3198_v45 = vld [vmem:[%s4571_s3 + $0x1a8] sm:$0xff]  }
  0x4a   : > { %1165 = vmatprep.mubr.bf16.mxu0 %v3922_v12  ;;  %v757_v2 = vrot.slane %v3919_v27, 1  ;;  %v403_v3 = vadd.f32 %v3440_v38, %v367_v56  ;;  %v4580_v34 = vmax.f32 %v3926_v57, 0.0  ;;  %vm4652_vm0 = vcmp.le.s32.totalorder %v3395_v21, 16  ;;  %2844 = vmatprep.subr.bf16.mxu0 %v3197_v62  ;;  %v3200_v62 = vld [vmem:[%s4571_s3 + $0x1f0] sm:$0xff]   ;;  %v4700_v37 = vld [vmem:[#allocation4_spill] sm:$0xff] }
  0x4b   : > { %vm3949_vm11 = vmand %vm3815_vm2, %vm4652_vm0  ;;  %2613 = vmatmul.mubr.msk.bf16.gmra.mrb[12].mxu0 %vm3888_vm4, %v3914_v6  ;;  %v334_v59 = vunpack.c.l.bf16 %v302_v15  ;;  %2767 = vmatpush3.bf16.msra.mxu1 %v3191_v7  ;;  %v4579_v28 = vmax.f32 %v3937_v49, 0.0  ;;  %v368_v58 = vmul.f32 %v2549_v25, %v3425_v31  ;;  %v369_v42 = vmul.f32 %v2550_v4, %v3425_v31  ;;  %v3966_v15 = vld [vmem:[%s4571_s3 + $0x80] sm:$0xff]  }
  0x4c   : > { %vm472_vm14 = vcmp.le.s32.totalorder %v3624_v16, 16  ;;  %2768 = vmatprep.subr.bf16.mxu1 %v3193_v30  ;;  %vm4655_vm8 = vcmask 1046528   ;;  %v433_v23 = vmax.f32 %v403_v3, 0.0  ;;  %v571_v56 = vsel %vm3872_vm13, %v4580_v34, 0.0  ;;  %v278_v34 = vld [vmem:[%s3407_s11 + $0x8] sm:$0x1] }
  0x4d   : > { %v3969_v7 = vsel %vm4655_vm8, %v756_v44, %v757_v2  ;;  %v370_v30 = vmul.f32 %v3425_v31, %v334_v59  ;;  %vm3978_vm0 = vmand %vm462_vm3, %vm472_vm14  ;;  %v572_v44 = vsel %vm3815_vm2, %v4579_v28, 0.0  ;;  %v3988_v25 = vadd.f32 %v3440_v38, %v368_v58  ;;  %v2532_v2 = vld [vmem:[%s3407_s11] sm:$0xff]   ;;  %2845 = vmatpush3.bf16.msra.mxu0 %v3198_v45  ;;  %v4701_v58 = vld [vmem:[#allocation5_spill] sm:$0xff] }
  0x4e   : > { %4656 = vst [vmem:[#allocation6_spill] sm:$0xff] %v3969_v7  ;;  %2939 = vmatmul.mubr.bf16.gmra.mrb[8].mxu1 %v3969_v7  ;;  %v3991_v4 = vadd.f32 %v3440_v38, %v369_v42  ;;  %v670_v16 = vshrl.u32 %v3822_v11, 16  ;;  %v573_v3 = vsel %vm3949_vm11, %v433_v23, 0.0  ;;  %v4000_v59 = vpack.c.bf16 %v572_v44, %v571_v56  ;;  %2846 = vmatprep.subr.bf16.mxu0 %v3200_v62  ;;  %v3203_v62 = vld [vmem:[%s4571_s3 + $0x1f8] sm:$0xff]  }
  0x4f   : > { %v406_v28 = vadd.f32 %v3440_v38, %v370_v30  ;;  %vm4659_vm3 = vcmp.ge.s32.totalorder %v3379_v17, 1  ;;  %2769 = vmatpush3.bf16.msra.mxu1 %v3194_v29  ;;  %v672_v42 = vshll.u32 %v3822_v11, 16  ;;  %v4013_v53 = vpack.c.bf16 %v573_v3, %v573_v3  ;;  %v3201_v11 = vld [vmem:[%s4571_s3 + $0x1b0] sm:$0xff]  }
  0x50   : > { %vm4007_vm14 = vmand %vm3978_vm0, %vm4659_vm3  ;;  %v4591_v40 = vmax.f32 %v3988_v25, 0.0  ;;  %v435_v23 = vmax.f32 %v3991_v4, 0.0  ;;  %vm4662_vm11 = vcmp.le.s32.totalorder %v3395_v21, 16  ;;  %v677_v56 = vshll.u32 %v3824_v1, 16  ;;  %2946 = vmatprep.subr.bf16.mxu1 %v3966_v15 }
  0x51   : > { %vm546_vm8 = vmand %vm3978_vm0, %vm4662_vm11  ;;  %v759_v29 = vrot.slane %v4000_v59, 1  ;;  %v436_v30 = vmax.f32 %v406_v28, 0.0  ;;  %v674_v44 = vrot.slane %v672_v42, 1  ;;  %v2533_v3 = vunpack.c.l.bf16 %v2532_v2  ;;  %2847 = vmatpush3.bf16.msra.mxu0 %v3201_v11 }
  0x52   : > { %v760_v50 = vrot.slane %v4013_v53, 1  ;;  %v574_v1 = vsel %vm4007_vm14, %v4591_v40, 0.0  ;;  %v575_v45 = vsel %vm3978_vm0, %v435_v23, 0.0  ;;  %v679_v54 = vrot.slane %v677_v56, 1  ;;  %v3204_v56 = vld [vmem:[%s4571_s3 + $0x1b8] sm:$0xff]   ;;  %2848 = vmatprep.subr.bf16.mxu0 %v3203_v62 }
  0x53   : > { %v576_v52 = vsel %vm546_vm8, %v436_v30, 0.0  ;;  %v4036_v7 = vpack.c.bf16 %v575_v45, %v574_v1  ;;  %v675_v28 = vor.u32 %v674_v44, %v670_v16  ;;  %v2534_v42 = vunpack.c.h.bf16 %v2532_v2 }
  0x54   : > { %vm4663_vm3 = vcmask 1046528   ;;  %v4044_v0 = vpack.c.bf16 %v576_v52, %v576_v52  ;;  %v310_v40 = vunpack.c.l.bf16 %v278_v34  ;;  %v344_v24 = vmul.f32 %v2533_v3, %v3425_v31  ;;  %v4060_v52 = vld [vmem:[%s4571_s3 + $0x200] sm:$0xff]  }
  0x55   : > { %v4042_v5 = vsel %vm4663_vm3, %v759_v29, %v760_v50  ;;  %v881_v16 = vrot.slane %v4036_v7, 1  ;;  %vm4664_vm11 = vsmask.f32 7424  ;;  %v345_v50 = vmul.f32 %v2534_v42, %v3425_v31  ;;  %2849 = vmatpush3.bf16.msra.mxu0 %v3204_v56 }
  0x56   : > { %2942 = vmatprep.mubr.bf16.mxu1 %v4042_v5  ;;  %v4053_v2 = vsel %vm4664_vm11, %v675_v28, %v679_v54  ;;  %vm454_vm8 = vcmp.ge.s32.totalorder %v3369_v13, 1  ;;  %v882_v34 = vrot.slane %v4044_v0, 1  ;;  %v346_v11 = vmul.f32 %v3425_v31, %v310_v40  ;;  %vm4071_vm11 = vmpackc.low %vm3701_vm1, %vm3734_vm6  ;;  %2978 = vmatprep.subr.bf16.mxu0 %v4060_v52 }
  0x57   : > { %1173 = vmatprep.mubr.bf16.mxu0 %v4053_v2  ;;  %v380_v29 = vadd.f32 %v3440_v38, %v344_v24  ;;  %vm464_vm3 = vcmp.le.s32.totalorder %v3369_v13, 16  ;;  %v381_v30 = vadd.f32 %v3440_v38, %v345_v50  ;;  %v4669_v31 = vmax.f32 %v3741_v35, 0.0 }
  0x58   : > { %vm4076_vm4 = vmand %vm454_vm8, %vm464_vm3  ;;  %v4670_v24 = vmax.f32 %v3744_v39, 0.0  ;;  %v682_v33 = vshrl.u32 %v3907_v43, 16  ;;  %v684_v63 = vshll.u32 %v3907_v43, 16  ;;  %vm4671_vm1 = vcmask 1046528  }
  0x59   : > { %v4089_v3 = vsel %vm4671_vm1, %v881_v16, %v882_v34  ;;  %v382_v1 = vadd.f32 %v3440_v38, %v346_v11  ;;  %v410_v45 = vmax.f32 %v380_v29, 0.0  ;;  %vm4672_vm6 = vcmp.ge.s32.totalorder %v3379_v17, 1 }
  0x5a   : > { %v4084_v40 = vpack.c.bf16 %v4670_v24, %v4669_v31  ;;  %vm4096_vm8 = vmand %vm4076_vm4, %vm4672_vm6  ;;  %v689_v39 = vshll.u32 %v3919_v27, 16  ;;  %2943 = vmatmul.mubr.bf16.gmra.mrb[12].mxu1 %v4089_v3  ;;  %v411_v43 = vmax.f32 %v381_v30, 0.0  ;;  %vm4675_vm3 = vcmp.le.s32.totalorder %v3395_v21, 16 }
  0x5b   : > { %vm522_vm1 = vmand %vm4076_vm4, %vm4675_vm3  ;;  %v686_v38 = vrot.slane %v684_v63, 1  ;;  %v694_v28 = vshrl.u32 %v4000_v59, 16  ;;  %v412_v42 = vmax.f32 %v382_v1, 0.0  ;;  %v550_v27 = vsel %vm4096_vm8, %v410_v45, 0.0 }
  0x5c   : > { %2616 = vmatmul.mubr.msk.bf16.gmra.mrb[16].mxu0 %vm4071_vm11, %v4084_v40  ;;  %v691_v62 = vrot.slane %v689_v39, 1  ;;  %v696_v56 = vshll.u32 %v4000_v59, 16  ;;  %v551_v16 = vsel %vm4076_vm4, %v411_v43, 0.0  ;;  %v701_v34 = vshll.u32 %v4013_v53, 16  ;;  %vm4137_vm3 = vmpackc.low %vm3777_vm12, %vm3842_vm9 }
  0x5d   : > { %v687_v50 = vor.u32 %v686_v38, %v682_v33  ;;  %v552_v11 = vsel %vm522_vm1, %v412_v42, 0.0  ;;  %v4117_v29 = vpack.c.bf16 %v551_v16, %v550_v27  ;;  %vm4676_vm6 = vsmask.f32 7424  ;;  %vm2626_vm12 = vmpackc.low %vm4076_vm4, %vm4096_vm8 }
  0x5e   : > { %v698_v30 = vrot.slane %v696_v56, 1  ;;  %v4119_v31 = vpack.c.bf16 %v552_v11, %v552_v11  ;;  %v4677_v63 = vmax.f32 %v3828_v22, 0.0  ;;  %v4678_v59 = vmax.f32 %v3836_v19, 0.0  ;;  %vm4681_vm1 = vmmov %vm4676_vm6  ;;  %v3202_v11 = vld [vmem:[%s4571_s3 + $0x88] sm:$0xff]  }
  0x5f   : > { %v4122_v24 = vsel %vm4676_vm6, %v687_v50, %v691_v62  ;;  %v703_v39 = vrot.slane %v701_v34, 1  ;;  %v610_v33 = vshrl.u32 %v4117_v29, 16  ;;  %v612_v53 = vshll.u32 %v4117_v29, 16  ;;  %vm4682_vm9 = vmmov %vm4681_vm1 }
  0x60   : > { %v4128_v1 = vpack.c.bf16 %v4678_v59, %v4677_v63  ;;  %1181 = vmatprep.mubr.bf16.mxu0 %v4122_v24  ;;  %v699_v22 = vor.u32 %v698_v30, %v694_v28  ;;  %v861_v19 = vshll.u32 %v4036_v7, 16  ;;  %v617_v42 = vshll.u32 %v4119_v31, 16  ;;  %vm4170_vm4 = vmpackc.low %vm3815_vm2, %vm3872_vm13 }
  0x61   : > { %v859_v27 = vshrl.u32 %v4036_v7, 16  ;;  %v866_v62 = vshll.u32 %v4044_v0, 16  ;;  %v614_v56 = vrot.slane %v612_v53, 1  ;;  %v2627_v28 = vpack.c.bf16 %v411_v43, %v410_v45  ;;  %vm4687_vm8 = vmmov %vm4681_vm1  ;;  %v3219_v43 = vld [vmem:[%s4569_s1] ss:$0 sm:$0xff] }
  0x62   : > { %v4146_v16 = vsel %vm4681_vm1, %v699_v22, %v703_v39  ;;  %v863_v26 = vrot.slane %v861_v19, 1  ;;  %v619_v50 = vrot.slane %v617_v42, 1  ;;  %v4683_v30 = vmax.f32 %v3926_v57, 0.0  ;;  %v3205_v57 = vld [vmem:[%s4571_s3 + $0x90] sm:$0xff]   ;;  %vm4689_vm2 = vmpackc.low %vm3432_vm5, %vm3453_vm7  ;;  %v3220_v53 = vld [vmem:[%s4570_s2] ss:$0 sm:$0xff] }
  0x63   : > { %v615_v32 = vor.u32 %v614_v56, %v610_v33  ;;  %v868_v0 = vrot.slane %v866_v62, 1  ;;  %v4684_v63 = vmax.f32 %v3937_v49, 0.0  ;;  %v4688_v9 = vmax.f32 %v3988_v25, 0.0  ;;  %vm2623_vm13 = vmpackc.low %vm3978_vm0, %vm4007_vm14  ;;  %v3209_v49 = vld [vmem:[%s4571_s3 + $0xa0] sm:$0xff]   ;;  %v4312_v22 = vld [vmem:[%s4571_s3 + $0x238] sm:$0xff]  }
  0x64   : > { %2619 = vmatmul.mubr.msk.bf16.gmra.mrb[20].mxu0 %vm4137_vm3, %v4128_v1  ;;  %v864_v7 = vor.u32 %v863_v26, %v859_v27  ;;  %v335_v25 = vunpack.c.l.bf16 %v303_v51  ;;  %v336_v4 = vunpack.c.h.bf16 %v303_v51  ;;  %vm4690_vm5 = vnez %v4650_v10 }
  0x65   : > { %1189 = vmatprep.mubr.bf16.mxu0 %v4146_v16  ;;  %v620_v34 = vsel %vm4682_vm9, %v615_v32, %v619_v50  ;;  %v4164_v35 = vpack.c.bf16 %v4684_v63, %v4683_v30  ;;  %v4193_v8 = vpack.c.bf16 %v435_v23, %v4688_v9  ;;  %v337_v23 = vunpack.c.l.bf16 %v305_v47 }
  0x66   : > { %1479 = vmatprep.mubr.bf16.mxu1 %v620_v34  ;;  %v4177_v45 = vsel %vm4687_vm8, %v864_v7, %v868_v0  ;;  %v371_v59 = vmul.f32 %v3219_v43, %v335_v25  ;;  %v372_v39 = vmul.f32 %v3219_v43, %v336_v4  ;;  %vm4693_vm6 = vcmp.ge.s32.totalorder %v3379_v17, 1 }
  0x67   : > { %2628 = vmatmul.mubr.msk.bf16.vlgmr.msra.gmra.mrb[16].mxu1 %vm2626_vm12, %v2627_v28  ;;  %v373_v33 = vmul.f32 %v3219_v43, %v337_v23  ;;  %vm4697_vm9 = vcmask 1046528  }
  0x68   : > { %1487 = vmatprep.mubr.bf16.mxu1 %v3578_v60  ;;  %2947 = vmatpush3.bf16.msra.mxu1 %v3966_v15  ;;  %v3207_v60 = vld [vmem:[%s4571_s3 + $0x98] sm:$0xff]   ;;  %v407_v10 = vadd.f32 %v3220_v53, %v371_v59  ;;  %vm4703_vm0 = vmmov %vm4697_vm9 }
  0x69   : > { %2948 = vmatprep.subr.bf16.mxu1 %v3202_v11  ;;  %v3214_v15 = vld [vmem:[%s4571_s3 + $0xb8] sm:$0xff]   ;;  %v409_v19 = vadd.f32 %v3220_v53, %v373_v33 }
  0x6a   : > { %v437_v42 = vmax.f32 %v407_v10, 0.0 }
  0x6b   : > { %v439_v56 = vmax.f32 %v409_v19, 0.0 }
  0x6c   : > { %2622 = vmatmul.mubr.msk.bf16.gmra.mrb[24].mxu0 %vm4170_vm4, %v4164_v35  ;;  %2949 = vmatpush3.bf16.msra.mxu1 %v3202_v11 }
  0x6d   : > { %1197 = vmatprep.mubr.bf16.mxu0 %v4177_v45  ;;  %2950 = vmatprep.subr.bf16.mxu1 %v3205_v57 }
  0x6f   : > { %2631 = vmatmul.mubr.msk.bf16.gmra.mrb[20].mxu1 %vm4689_vm2, %v3519_v14  ;;  %v3212_v14 = vld [vmem:[%s4571_s3 + $0xb0] sm:$0xff]  }
  0x70   : > { %1495 = vmatprep.mubr.bf16.mxu1 %v3627_v20  ;;  %2951 = vmatpush3.bf16.msra.mxu1 %v3205_v57 }
  0x71   : > { %2952 = vmatprep.subr.bf16.mxu1 %v3207_v60 }
  0x74   : > { %2625 = vmatmul.mubr.msk.bf16.gmra.mrb[28].mxu0 %vm2623_vm13, %v4193_v8  ;;  %2953 = vmatpush3.bf16.msra.mxu1 %v3207_v60 }
  0x75   : > { %1932 = vmatprep.mubr.bf16.mxu0 %v3627_v20  ;;  %2954 = vmatprep.subr.bf16.mxu1 %v3209_v49  ;;  %v4240_v20 = vld [vmem:[%s4571_s3 + $0x210] sm:$0xff]  }
  0x77   : > { %2634 = vmatmul.mubr.msk.bf16.gmra.mrb[24].mxu1 %vm3617_vm15, %v3524_v18 }
  0x78   : > { %1503 = vmatprep.mubr.bf16.mxu1 %v3791_v55  ;;  %2955 = vmatpush3.bf16.msra.mxu1 %v3209_v49 }
  0x79   : > { %2956 = vmatprep.subr.bf16.mxu1 %v3211_v36 }
  0x7c   : > { %2652 = vmatmul.mubr.msk.bf16.vlgmr.msra.gmra.mrb[32].mxu0 %vm3617_vm15, %v3524_v18  ;;  %2957 = vmatpush3.bf16.msra.mxu1 %v3211_v36  ;;  %v4254_v18 = vld [vmem:[%s4571_s3 + $0x218] sm:$0xff]  }
  0x7d   : > { %2979 = vmatpush3.bf16.msra.mxu0 %v4060_v52  ;;  %1940 = vmatprep.mubr.bf16.mxu0 %v3791_v55  ;;  %v4266_v55 = vld [vmem:[%s4571_s3 + $0x220] sm:$0xff]  }
  0x7e   : > { %2980 = vmatprep.subr.bf16.mxu0 %v4226_v46  ;;  %2958 = vmatprep.subr.bf16.mxu1 %v3212_v14 }
  0x7f   : > { %2637 = vmatmul.mubr.msk.bf16.gmra.mrb[28].mxu1 %vm3761_vm10, %v3769_v48 }
  0x80   : > { %1511 = vmatprep.mubr.bf16.mxu1 %v3922_v12  ;;  %2959 = vmatpush3.bf16.msra.mxu1 %v3212_v14 }
  0x81   : > { %2981 = vmatpush3.bf16.msra.mxu0 %v4226_v46  ;;  %2960 = vmatprep.subr.bf16.mxu1 %v3214_v15 }
  0x82   : > { %2982 = vmatprep.subr.bf16.mxu0 %v4240_v20 }
  0x84   : > { %2655 = vmatmul.mubr.msk.bf16.gmra.mrb[36].mxu0 %vm3761_vm10, %v3769_v48  ;;  %2961 = vmatpush3.bf16.msra.mxu1 %v3214_v15  ;;  %v4279_v48 = vld [vmem:[%s4571_s3 + $0x228] sm:$0xff]  }
  0x85   : > { %1948 = vmatprep.mubr.bf16.mxu0 %v3922_v12  ;;  %2983 = vmatpush3.bf16.msra.mxu0 %v4240_v20  ;;  %v449_v12 = vadd.s32 9, %v3369_v13  ;;  %v4294_v13 = vld [vmem:[%s4571_s3 + $0x230] sm:$0xff]  }
  0x86   : > { %2984 = vmatprep.subr.bf16.mxu0 %v4254_v18  ;;  %3010 = vmatprep.subr.bf16.mxu1 %v4060_v52 }
  0x87   : > { %2640 = vmatmul.mubr.msk.bf16.gmra.mrb[32].mxu1 %vm4690_vm5, %v3914_v6  ;;  %vm463_vm7 = vcmp.ge.s32.totalorder %v449_v12, 1  ;;  %vm473_vm15 = vcmp.le.s32.totalorder %v449_v12, 16 }
  0x88   : > { %1519 = vmatprep.mubr.bf16.mxu1 %v4053_v2  ;;  %vm4303_vm10 = vmand %vm463_vm7, %vm473_vm15 }
  0x89   : > { %2985 = vmatpush3.bf16.msra.mxu0 %v4254_v18  ;;  %vm4321_vm1 = vmand %vm4303_vm10, %vm4693_vm6 }
  0x8a   : > { %2986 = vmatprep.subr.bf16.mxu0 %v4266_v55  ;;  %v577_v26 = vsel %vm4321_vm1, %v437_v42, 0.0 }
  0x8c   : > { %2658 = vmatmul.mubr.msk.bf16.gmra.mrb[40].mxu0 %vm4690_vm5, %v3914_v6  ;;  %v408_v6 = vadd.f32 %v3220_v53, %v372_v39 }
  0x8d   : > { %1956 = vmatprep.mubr.bf16.mxu0 %v4053_v2  ;;  %2987 = vmatpush3.bf16.msra.mxu0 %v4266_v55 }
  0x8e   : > { %2988 = vmatprep.subr.bf16.mxu0 %v4279_v48  ;;  %v438_v27 = vmax.f32 %v408_v6, 0.0 }
  0x8f   : > { %2643 = vmatmul.mubr.msk.bf16.gmra.mrb[36].mxu1 %vm4071_vm11, %v4084_v40 }
  0x90   : > { %1527 = vmatprep.mubr.bf16.mxu1 %v4122_v24  ;;  %v578_v54 = vsel %vm4303_vm10, %v438_v27, 0.0 }
  0x91   : > { %2989 = vmatpush3.bf16.msra.mxu0 %v4279_v48  ;;  %v598_v17 = vpack.c.bf16 %v578_v54, %v577_v26 }
  0x92   : > { %2990 = vmatprep.subr.bf16.mxu0 %v4294_v13 }
  0x93   : > { %v1652_v32 = vshll.u32 %v598_v17, 16  ;;  %v1650_v0 = vshrl.u32 %v598_v17, 16 }
  0x94   : > { %2661 = vmatmul.mubr.msk.bf16.gmra.mrb[44].mxu0 %vm4071_vm11, %v4084_v40  ;;  %vm4696_vm11 = vcmp.le.s32.totalorder %v3395_v21, 16  ;;  %v738_v40 = vrot.slane %v4117_v29, 1 }
  0x95   : > { %1964 = vmatprep.mubr.bf16.mxu0 %v4122_v24  ;;  %2991 = vmatpush3.bf16.msra.mxu0 %v4294_v13  ;;  %vm549_vm12 = vmand %vm4303_vm10, %vm4696_vm11  ;;  %v739_v24 = vrot.slane %v4119_v31, 1  ;;  %v1654_v29 = vrot.slane %v1652_v32, 1 }
  0x96   : > { %2992 = vmatprep.subr.bf16.mxu0 %v4312_v22  ;;  %v579_v50 = vsel %vm549_vm12, %v439_v56, 0.0 }
  0x97   : > { %2646 = vmatmul.mubr.msk.bf16.gmra.mrb[40].mxu1 %vm4137_vm3, %v4128_v1  ;;  %v599_v21 = vpack.c.bf16 %v579_v50, %v579_v50  ;;  %v740_v28 = vsel %vm4697_vm9, %v738_v40, %v739_v24  ;;  %v1655_v31 = vor.u32 %v1654_v29, %v1650_v0 }
  0x98   : > { %1535 = vmatprep.mubr.bf16.mxu1 %v4146_v16 }
  0x99   : > { %2993 = vmatpush3.bf16.msra.mxu0 %v4312_v22  ;;  %v1657_v7 = vshll.u32 %v599_v21, 16  ;;  %v1673_v34 = vrot.slane %v599_v21, 1 }
  0x9c   : > { %2664 = vmatmul.mubr.msk.bf16.gmra.mrb[48].mxu0 %vm4137_vm3, %v4128_v1  ;;  %v1659_v1 = vrot.slane %v1657_v7, 1  ;;  %vm4698_vm3 = vmmov %vm4687_vm8 }
  0x9d   : > { %1972 = vmatprep.mubr.bf16.mxu0 %v4146_v16  ;;  %v4702_v16 = vld [vmem:[#allocation6_spill] sm:$0xff] }
  0x9e   : > { %v1660_v38 = vsel %vm4698_vm3, %v1655_v31, %v1659_v1 }
  0x9f   : > { %2649 = vmatmul.mubr.msk.bf16.gmra.mrb[44].mxu1 %vm4170_vm4, %v4164_v35 }
  0xa0   : > { %2962 = vmatprep.mubr.bf16.mxu1 %v740_v28 }
  0xa4   : > { %2667 = vmatmul.mubr.msk.bf16.gmra.mrb[52].mxu0 %vm4170_vm4, %v4164_v35  ;;  %vm2671_vm4 = vmpackc.low %vm4303_vm10, %vm4321_vm1 }
  0xa5   : > { %1980 = vmatprep.mubr.bf16.mxu0 %v4177_v45 }
  0xa7   : > { %2963 = vmatmul.mubr.bf16.vlgmr.msra.gmra.mrb[0].mxu1 %v3543_v41  ;;  %v2672_v41 = vpack.c.bf16 %v438_v27, %v437_v42 }
  0xa8   : > { %3018 = vmatpush3.bf16.msra.mxu1 %v4060_v52  ;;  %2966 = vmatprep.mubr.bf16.mxu1 %v3581_v61  ;;  %v4699_v52 = vld [vmem:[#allocation3_spill] sm:$0xff] }
  0xa9   : > { %3011 = vmatprep.subr.bf16.mxu1 %v4226_v46 }
  0xac   : > { %2670 = vmatmul.mubr.msk.bf16.gmra.mrb[56].mxu0 %vm2623_vm13, %v4193_v8  ;;  %3019 = vmatpush3.bf16.msra.mxu1 %v4226_v46 }
  0xad   : > { %1988 = vmatprep.mubr.bf16.mxu0 %v1660_v38  ;;  %3012 = vmatprep.subr.bf16.mxu1 %v4240_v20 }
  0xaf   : > { %2967 = vmatmul.mubr.bf16.gmra.mrb[4].mxu1 %v4699_v52 }
  0xb0   : > { %3020 = vmatpush3.bf16.msra.mxu1 %v4240_v20  ;;  %2970 = vmatprep.mubr.bf16.mxu1 %v4700_v37 }
  0xb1   : > { %3013 = vmatprep.subr.bf16.mxu1 %v4254_v18 }
  0xb4   : > { %2673 = vmatmul.mubr.msk.bf16.gmra.mrb[60].mxu0 %vm2671_vm4, %v2672_v41  ;;  %3021 = vmatpush3.bf16.msra.mxu1 %v4254_v18 }
  0xb5   : > { %2994 = vmatprep.mubr.bf16.mxu0 %v3581_v61  ;;  %3014 = vmatprep.subr.bf16.mxu1 %v4266_v55  ;;  %v1672_v61 = vrot.slane %v598_v17, 1 }
  0xb7   : > { %2971 = vmatmul.mubr.bf16.gmra.mrb[8].mxu1 %v4701_v58  ;;  %v1674_v11 = vsel %vm4703_vm0, %v1672_v61, %v1673_v34 }
  0xb8   : > { %3022 = vmatpush3.bf16.msra.mxu1 %v4266_v55  ;;  %2974 = vmatprep.mubr.bf16.mxu1 %v4702_v16 }
  0xb9   : > { %3015 = vmatprep.subr.bf16.mxu1 %v4279_v48 }
  0xbc   : > { %2995 = vmatmul.mubr.bf16.vlgmr.msra.gmra.mrb[64].mxu0 %v4699_v52  ;;  %3023 = vmatpush3.bf16.msra.mxu1 %v4279_v48 }
  0xbd   : > { %2998 = vmatprep.mubr.bf16.mxu0 %v4700_v37  ;;  %3016 = vmatprep.subr.bf16.mxu1 %v4294_v13 }
  0xbf   : > { %2975 = vmatmul.mubr.bf16.gmra.mrb[12].mxu1 %v4042_v5 }
  0xc0   : > { %3024 = vmatpush3.bf16.msra.mxu1 %v4294_v13  ;;  %3002 = vmatprep.mubr.bf16.mxu1 %v4702_v16 }
  0xc1   : > { %3017 = vmatprep.subr.bf16.mxu1 %v4312_v22 }
  0xc4   : > { %2999 = vmatmul.mubr.bf16.gmra.mrb[68].mxu0 %v4701_v58  ;;  %3025 = vmatpush3.bf16.msra.mxu1 %v4312_v22 }
  0xc7   : > { %3003 = vmatmul.mubr.bf16.vlgmr.msra.gmra.mrb[8].mxu1 %v4042_v5 }
  0xc8   : > { %3006 = vmatprep.mubr.bf16.mxu1 %v4089_v3 }
  0xcf   : > { %3007 = vmatmul.mubr.bf16.gmra.mrb[12].mxu1 %v1674_v11 }
 0x105   : > { %v2690_v30 = vpop.f32.mrb[0].mxu0 }
 0x106   : > { %v2691_v63 = vpop.f32.mrb[1].mxu0 }
 0x107   : > { %v2692_v35 = vadd.f32 %v2691_v63, %v2690_v30  ;;  %v2693_v44 = vpop.f32.mrb[2].mxu0 }
 0x108   : > { %v2694_v45 = vpop.f32.mrb[3].mxu0 }
 0x109   : > { %v2695_v57 = vadd.f32 %v2694_v45, %v2693_v44 }
 0x10d   : > { %v2696_v60 = vpop.f32.mrb[4].mxu0 }
 0x10e   : > { %v2697_v9 = vpop.f32.mrb[5].mxu0 }
 0x10f   : > { %v2698_v8 = vadd.f32 %v2697_v9, %v2696_v60  ;;  %v2699_v49 = vpop.f32.mrb[6].mxu0 }
 0x110   : > { %v2700_v36 = vpop.f32.mrb[7].mxu0 }
 0x111   : > { %v2701_v46 = vadd.f32 %v2700_v36, %v2699_v49 }
 0x115   : > { %v2702_v5 = vpop.f32.mrb[8].mxu0 }
 0x116   : > { %v2703_v14 = vpop.f32.mrb[9].mxu0 }
 0x117   : > { %v2704_v3 = vadd.f32 %v2703_v14, %v2702_v5  ;;  %v2705_v20 = vpop.f32.mrb[10].mxu0 }
 0x118   : > { %v2706_v15 = vpop.f32.mrb[11].mxu0 }
 0x119   : > { %v2707_v18 = vadd.f32 %v2706_v15, %v2705_v20 }
 0x11e   : > { %v2708_v51 = vpop.f32.mrb[12].mxu0 }
 0x11f   : > { %v2709_v55 = vpop.f32.mrb[13].mxu0 }
 0x120   : > { %v4396_v25 = vadd.f32 %v2709_v55, %v2708_v51  ;;  %v2711_v4 = vpop.f32.mrb[14].mxu0 }
 0x121   : > { %v2712_v47 = vpop.f32.mrb[15].mxu0 }
 0x122   : > { %v4398_v48 = vadd.f32 %v2712_v47, %v2711_v4 }
 0x12f   : > { %v2714_v12 = vpop.f32.mrb[16].mxu0 }
 0x130   : > { %v2715_v23 = vpop.f32.mrb[17].mxu0 }
 0x131   : > { %v4400_v43 = vadd.f32 %v2715_v23, %v2714_v12  ;;  %v2717_v59 = vpop.f32.mrb[18].mxu0 }
 0x132   : > { %v2718_v39 = vpop.f32.mrb[19].mxu0 }
 0x133   : > { %v4402_v13 = vadd.f32 %v2718_v39, %v2717_v59 }
 0x137   : > { %v2720_v33 = vpop.f32.mrb[20].mxu0 }
 0x138   : > { %v2721_v53 = vpop.f32.mrb[21].mxu0 }
 0x139   : > { %v4404_v10 = vadd.f32 %v2721_v53, %v2720_v33  ;;  %v2723_v6 = vpop.f32.mrb[22].mxu0 }
 0x13a   : > { %v2724_v2 = vpop.f32.mrb[23].mxu0  ;;  %v2770_v19 = vpop.f32.mrb[16].mxu1 }
 0x13b   : > { %v4406_v22 = vadd.f32 %v2724_v2, %v2723_v6  ;;  %v2771_v42 = vpop.f32.mrb[17].mxu1 }
 0x13c   : > { %v2772_v27 = vadd.f32 %v2771_v42, %v2770_v19  ;;  %v2773_v62 = vpop.f32.mrb[18].mxu1 }
 0x13d   : > { %v2774_v56 = vpop.f32.mrb[19].mxu1 }
 0x13e   : > { %v2775_v54 = vadd.f32 %v2774_v56, %v2773_v62  ;;  %v4408_v40 = vadd.f32 %v2772_v27, %v2692_v35 }
 0x13f   : > { %v2726_v26 = vpop.f32.mrb[24].mxu0 }
 0x140   : > { %v2727_v17 = vpop.f32.mrb[25].mxu0  ;;  %v4412_v32 = vadd.f32 %v2775_v54, %v2695_v57 }
 0x141   : > { %v4410_v24 = vadd.f32 %v2727_v17, %v2726_v26  ;;  %v2729_v50 = vpop.f32.mrb[26].mxu0 }
 0x142   : > { %v2730_v21 = vpop.f32.mrb[27].mxu0  ;;  %v2776_v0 = vpop.f32.mrb[20].mxu1 }
 0x143   : > { %v4414_v28 = vadd.f32 %v2730_v21, %v2729_v50  ;;  %v2777_v29 = vpop.f32.mrb[21].mxu1 }
 0x144   : > { %v2778_v7 = vadd.f32 %v2777_v29, %v2776_v0  ;;  %v2779_v31 = vpop.f32.mrb[22].mxu1 }
 0x145   : > { %v2780_v1 = vpop.f32.mrb[23].mxu1 }
 0x146   : > { %v2781_v41 = vadd.f32 %v2780_v1, %v2779_v31  ;;  %v4416_v37 = vadd.f32 %v2778_v7, %v2698_v8 }
 0x147   : > { %v2732_v38 = vpop.f32.mrb[28].mxu0 }
 0x148   : > { %v2733_v52 = vpop.f32.mrb[29].mxu0  ;;  %v4420_v34 = vadd.f32 %v2781_v41, %v2701_v46 }
 0x149   : > { %v4418_v58 = vadd.f32 %v2733_v52, %v2732_v38  ;;  %v2735_v16 = vpop.f32.mrb[30].mxu0 }
 0x14a   : > { %v2736_v61 = vpop.f32.mrb[31].mxu0  ;;  %v2782_v30 = vpop.f32.mrb[24].mxu1 }
 0x14b   : > { %v4422_v11 = vadd.f32 %v2736_v61, %v2735_v16  ;;  %v2783_v63 = vpop.f32.mrb[25].mxu1 }
 0x14c   : > { %v2784_v35 = vadd.f32 %v2783_v63, %v2782_v30  ;;  %v2785_v44 = vpop.f32.mrb[26].mxu1 }
 0x14d   : > { %v2786_v45 = vpop.f32.mrb[27].mxu1 }
 0x14e   : > { %v2787_v60 = vadd.f32 %v2786_v45, %v2785_v44  ;;  %v4424_v49 = vadd.f32 %v2784_v35, %v2704_v3 }
 0x14f   : > { %v2850_v57 = vpop.f32.mrb[32].mxu0 }
 0x150   : > { %v2851_v9 = vpop.f32.mrb[33].mxu0  ;;  %v4428_v14 = vadd.f32 %v2787_v60, %v2707_v18 }
 0x151   : > { %v4426_v8 = vadd.f32 %v2851_v9, %v2850_v57  ;;  %v2853_v36 = vpop.f32.mrb[34].mxu0 }
 0x152   : > { %v2854_v5 = vpop.f32.mrb[35].mxu0  ;;  %v2788_v20 = vpop.f32.mrb[28].mxu1 }
 0x153   : > { %v4430_v46 = vadd.f32 %v2854_v5, %v2853_v36  ;;  %v2789_v15 = vpop.f32.mrb[29].mxu1 }
 0x154   : > { %v2790_v51 = vadd.f32 %v2789_v15, %v2788_v20  ;;  %v2791_v55 = vpop.f32.mrb[30].mxu1 }
 0x155   : > { %v2792_v4 = vpop.f32.mrb[31].mxu1 }
 0x156   : > { %v2793_v12 = vadd.f32 %v2792_v4, %v2791_v55  ;;  %v4433_v59 = vadd.f32 %v2790_v51, %v4396_v25 }
 0x157   : > { %v2856_v47 = vpop.f32.mrb[36].mxu0 }
 0x158   : > { %v2857_v23 = vpop.f32.mrb[37].mxu0  ;;  %v4438_v18 = vadd.f32 %v2793_v12, %v4398_v48 }
 0x159   : > { %v4435_v3 = vadd.f32 %v2857_v23, %v2856_v47  ;;  %v2859_v39 = vpop.f32.mrb[38].mxu0 }
 0x15a   : > { %v2860_v33 = vpop.f32.mrb[39].mxu0  ;;  %v2794_v6 = vpop.f32.mrb[32].mxu1 }
 0x15b   : > { %v4440_v53 = vadd.f32 %v2860_v33, %v2859_v39  ;;  %v2795_v2 = vpop.f32.mrb[33].mxu1 }
 0x15c   : > { %v2796_v19 = vadd.f32 %v2795_v2, %v2794_v6  ;;  %v2797_v42 = vpop.f32.mrb[34].mxu1 }
 0x15d   : > { %v2798_v27 = vpop.f32.mrb[35].mxu1 }
 0x15e   : > { %v3061_v56 = vadd.f32 %v2796_v19, %v4400_v43  ;;  %v2799_v26 = vadd.f32 %v2798_v27, %v2797_v42 }
 0x15f   : > { %v2862_v62 = vpop.f32.mrb[40].mxu0 }
 0x160   : > { %v2863_v25 = vpop.f32.mrb[41].mxu0  ;;  %v3067_v50 = vadd.f32 %v2799_v26, %v4402_v13 }
 0x161   : > { %v4443_v54 = vadd.f32 %v2863_v25, %v2862_v62  ;;  %v2865_v17 = vpop.f32.mrb[42].mxu0 }
 0x162   : > { %v2866_v21 = vpop.f32.mrb[43].mxu0  ;;  %v2800_v0 = vpop.f32.mrb[36].mxu1 }
 0x163   : > { %v4446_v48 = vadd.f32 %v2866_v21, %v2865_v17  ;;  %v2801_v29 = vpop.f32.mrb[37].mxu1 }
 0x164   : > { %v2802_v7 = vadd.f32 %v2801_v29, %v2800_v0  ;;  %v2803_v31 = vpop.f32.mrb[38].mxu1 }
 0x165   : > { %v2804_v1 = vpop.f32.mrb[39].mxu1 }
 0x166   : > { %v3058_v41 = vadd.f32 %v2802_v7, %v4404_v10  ;;  %v2805_v52 = vadd.f32 %v2804_v1, %v2803_v31 }
 0x167   : > { %v2868_v38 = vpop.f32.mrb[44].mxu0 }
 0x168   : > { %v2869_v43 = vpop.f32.mrb[45].mxu0  ;;  %v3064_v30 = vadd.f32 %v2805_v52, %v4406_v22 }
 0x169   : > { %v4449_v16 = vadd.f32 %v2869_v43, %v2868_v38  ;;  %v2871_v61 = vpop.f32.mrb[46].mxu0 }
 0x16a   : > { %v2872_v63 = vpop.f32.mrb[47].mxu0  ;;  %v2806_v35 = vpop.f32.mrb[40].mxu1 }
 0x16b   : > { %v4452_v13 = vadd.f32 %v2872_v63, %v2871_v61  ;;  %v2807_v44 = vpop.f32.mrb[41].mxu1 }
 0x16c   : > { %v2808_v45 = vadd.f32 %v2807_v44, %v2806_v35  ;;  %v2809_v57 = vpop.f32.mrb[42].mxu1 }
 0x16d   : > { %v2810_v60 = vpop.f32.mrb[43].mxu1 }
 0x16e   : > { %v3073_v36 = vadd.f32 %v2808_v45, %v4410_v24  ;;  %v2811_v5 = vadd.f32 %v2810_v60, %v2809_v57 }
 0x16f   : > { %v2874_v9 = vpop.f32.mrb[48].mxu0 }
 0x170   : > { %v2875_v10 = vpop.f32.mrb[49].mxu0  ;;  %v3079_v51 = vadd.f32 %v2811_v5, %v4414_v28 }
 0x171   : > { %v2876_v20 = vadd.f32 %v2875_v10, %v2874_v9  ;;  %v2877_v15 = vpop.f32.mrb[50].mxu0 }
 0x172   : > { %v2878_v55 = vpop.f32.mrb[51].mxu0  ;;  %v2812_v47 = vpop.f32.mrb[44].mxu1 }
 0x173   : > { %v2879_v4 = vadd.f32 %v2878_v55, %v2877_v15  ;;  %v4456_v22 = vadd.f32 %v3061_v56, %v2876_v20  ;;  %v2813_v12 = vpop.f32.mrb[45].mxu1 }
 0x174   : > { %v2814_v39 = vadd.f32 %v2813_v12, %v2812_v47  ;;  %v2815_v33 = vpop.f32.mrb[46].mxu1 }
 0x175   : > { %v4458_v23 = vadd.f32 %v3067_v50, %v2879_v4  ;;  %v2816_v6 = vpop.f32.mrb[47].mxu1 }
 0x176   : > { %v3070_v24 = vadd.f32 %v2814_v39, %v4418_v58  ;;  %v2817_v19 = vadd.f32 %v2816_v6, %v2815_v33 }
 0x177   : > { %v2880_v2 = vpop.f32.mrb[52].mxu0 }
 0x178   : > { %v2881_v42 = vpop.f32.mrb[53].mxu0  ;;  %v3076_v28 = vadd.f32 %v2817_v19, %v4422_v11 }
 0x179   : > { %v2882_v27 = vadd.f32 %v2881_v42, %v2880_v2  ;;  %v2883_v62 = vpop.f32.mrb[54].mxu0 }
 0x17a   : > { %v2884_v26 = vpop.f32.mrb[55].mxu0  ;;  %v2964_v17 = vpop.f32.mrb[0].mxu1 }
 0x17b   : > { %v2885_v25 = vadd.f32 %v2884_v26, %v2883_v62  ;;  %v4462_v56 = vadd.f32 %v3058_v41, %v2882_v27  ;;  %v3027_v50 = vadd.f32 %v4416_v37, %v2964_v17  ;;  %v1578_v21 = vpop.f32.mrb[1].mxu1 }
 0x17c   : > { %v3031_v29 = vadd.f32 %v4408_v40, %v1578_v21  ;;  %v2965_v58 = vpop.f32.mrb[2].mxu1 }
 0x17d   : > { %v4465_v0 = vadd.f32 %v3064_v30, %v2885_v25  ;;  %v3035_v7 = vadd.f32 %v4420_v34, %v2965_v58  ;;  %v1581_v31 = vpop.f32.mrb[3].mxu1  ;;  %v3028_v11 = vadd.f32 %v3027_v50, %v4435_v3 }
 0x17e   : > { %v3039_v38 = vadd.f32 %v4412_v32, %v1581_v31  ;;  %v3032_v52 = vadd.f32 %v3031_v29, %v4426_v8 }
 0x17f   : > { %v2886_v1 = vpop.f32.mrb[56].mxu0  ;;  %v3036_v61 = vadd.f32 %v3035_v7, %v4440_v53 }
 0x180   : > { %v2887_v41 = vpop.f32.mrb[57].mxu0  ;;  %v3040_v40 = vadd.f32 %v3039_v38, %v4430_v46 }
 0x181   : > { %v2888_v37 = vadd.f32 %v2887_v41, %v2886_v1  ;;  %v2889_v43 = vpop.f32.mrb[58].mxu0 }
 0x182   : > { %v2890_v30 = vpop.f32.mrb[59].mxu0  ;;  %v2968_v35 = vpop.f32.mrb[4].mxu1 }
 0x183   : > { %v2891_v63 = vadd.f32 %v2890_v30, %v2889_v43  ;;  %v4475_v34 = vadd.f32 %v3073_v36, %v2888_v37  ;;  %v3043_v3 = vadd.f32 %v4433_v59, %v2968_v35  ;;  %v1594_v44 = vpop.f32.mrb[5].mxu1 }
 0x184   : > { %v3047_v8 = vadd.f32 %v4424_v49, %v1594_v44  ;;  %v2969_v45 = vpop.f32.mrb[6].mxu1 }
 0x185   : > { %v4478_v32 = vadd.f32 %v3079_v51, %v2891_v63  ;;  %v3051_v53 = vadd.f32 %v4438_v18, %v2969_v45  ;;  %v1597_v57 = vpop.f32.mrb[7].mxu1  ;;  %v3044_v46 = vadd.f32 %v3043_v3, %v4449_v16 }
 0x186   : > { %v3055_v9 = vadd.f32 %v4428_v14, %v1597_v57  ;;  %v3048_v5 = vadd.f32 %v3047_v8, %v4443_v54 }
 0x187   : > { %v2892_v60 = vpop.f32.mrb[60].mxu0  ;;  %v3052_v20 = vadd.f32 %v3051_v53, %v4452_v13 }
 0x188   : > { %v2893_v36 = vpop.f32.mrb[61].mxu0  ;;  %v3056_v49 = vadd.f32 %v3055_v9, %v4446_v48 }
 0x189   : > { %v2894_v59 = vadd.f32 %v2893_v36, %v2892_v60  ;;  %v2895_v10 = vpop.f32.mrb[62].mxu0 }
 0x18a   : > { %v2896_v15 = vpop.f32.mrb[63].mxu0 }
 0x18b   : > { %v2897_v51 = vadd.f32 %v2896_v15, %v2895_v10  ;;  %v3071_v18 = vadd.f32 %v3070_v24, %v2894_v59 }
 0x18d   : > { %v3077_v55 = vadd.f32 %v3076_v28, %v2897_v51 }
 0x18f   : > { %v2996_v4 = vpop.f32.mrb[64].mxu0 }
 0x190   : > { %v4489_v16 = vadd.f32 %v3028_v11, %v2996_v4  ;;  %v2031_v14 = vpop.f32.mrb[65].mxu0 }
 0x191   : > { %v4491_v47 = vadd.f32 %v3032_v52, %v2031_v14  ;;  %v2997_v54 = vpop.f32.mrb[66].mxu0 }
 0x192   : > { %v4493_v12 = vadd.f32 %v3036_v61, %v2997_v54  ;;  %v2034_v13 = vpop.f32.mrb[67].mxu0 }
 0x193   : > { %v4500_v48 = vadd.f32 %v3040_v40, %v2034_v13 }
 0x194   : > { %v2559_v39 = vpack.c.bf16 %v4493_v12, %v4489_v16 }
 0x195   : > { %v2110_v33 = vadd.f32 %v4500_v48, %v4491_v47  ;;  %v2554_v6 = vpack.c.bf16 %v4500_v48, %v4491_v47 }
 0x196   : > { %2595 = vst [vmem:[%s4498_s16 + $0x8] sm:$0xff] %v2559_v39  }
 0x197   : > { %v2111_v2 = vadd.f32 %v4489_v16, %v2110_v33  ;;  %2555 = vst [vmem:[%s4498_s16] sm:$0xff] %v2554_v6   ;;  %v3000_v24 = vpop.f32.mrb[68].mxu0 }
 0x198   : > { %v4511_v19 = vadd.f32 %v3044_v46, %v3000_v24  ;;  %v2047_v42 = vpop.f32.mrb[69].mxu0 }
 0x199   : > { %v4513_v27 = vadd.f32 %v3048_v5, %v2047_v42  ;;  %v2112_v62 = vadd.f32 %v4493_v12, %v2111_v2  ;;  %v3001_v28 = vpop.f32.mrb[70].mxu0 }
 0x19a   : > { %v4516_v26 = vadd.f32 %v3052_v20, %v3001_v28  ;;  %v2050_v25 = vpop.f32.mrb[71].mxu0  ;;  %v3004_v21 = vpop.f32.mrb[8].mxu1 }
 0x19b   : > { %v2113_v17 = vadd.f32 %v4513_v27, %v2112_v62  ;;  %v3057_v50 = vadd.f32 %v3056_v49, %v2050_v25  ;;  %v3060_v58 = vadd.f32 %v4462_v56, %v3004_v21  ;;  %v2063_v7 = vpop.f32.mrb[9].mxu1 }
 0x19c   : > { %v2569_v29 = vpack.c.bf16 %v4516_v26, %v4511_v19  ;;  %v3063_v11 = vadd.f32 %v4456_v22, %v2063_v7  ;;  %v3005_v38 = vpop.f32.mrb[10].mxu1 }
 0x19d   : > { %v2114_v31 = vadd.f32 %v3057_v50, %v2113_v17  ;;  %v2564_v1 = vpack.c.bf16 %v3057_v50, %v4513_v27  ;;  %v3066_v41 = vadd.f32 %v4465_v0, %v3005_v38  ;;  %v2066_v52 = vpop.f32.mrb[11].mxu1 }
 0x19e   : > { %2597 = vst [vmem:[%s4498_s16 + $0x18] sm:$0xff] %v2569_v29   ;;  %v3069_v43 = vadd.f32 %v4458_v23, %v2066_v52 }
 0x19f   : > { %v2115_v37 = vadd.f32 %v4511_v19, %v2114_v31  ;;  %2596 = vst [vmem:[%s4498_s16 + $0x10] sm:$0xff] %v2564_v1   ;;  %v2579_v61 = vpack.c.bf16 %v3066_v41, %v3060_v58 }
 0x1a0   : > { %v2574_v30 = vpack.c.bf16 %v3069_v43, %v3063_v11 }
 0x1a1   : > { %v2116_v56 = vadd.f32 %v4516_v26, %v2115_v37  ;;  %2599 = vst [vmem:[%s4498_s16 + $0x28] sm:$0xff] %v2579_v61  }
 0x1a2   : > { %2598 = vst [vmem:[%s4498_s16 + $0x20] sm:$0xff] %v2574_v30   ;;  %v3008_v22 = vpop.f32.mrb[12].mxu1 }
 0x1a3   : > { %v2117_v40 = vadd.f32 %v3063_v11, %v2116_v56  ;;  %v3072_v63 = vadd.f32 %v3071_v18, %v3008_v22  ;;  %v2079_v35 = vpop.f32.mrb[13].mxu1 }
 0x1a4   : > { %v3075_v3 = vadd.f32 %v4475_v34, %v2079_v35  ;;  %v3009_v44 = vpop.f32.mrb[14].mxu1 }
 0x1a5   : > { %v2118_v0 = vadd.f32 %v3069_v43, %v2117_v40  ;;  %v3078_v23 = vadd.f32 %v3077_v55, %v3009_v44  ;;  %v2082_v8 = vpop.f32.mrb[15].mxu1 }
 0x1a6   : > { %v3081_v53 = vadd.f32 %v4478_v32, %v2082_v8 }
 0x1a7   : > { %v2119_v45 = vadd.f32 %v3060_v58, %v2118_v0  ;;  %v2589_v57 = vpack.c.bf16 %v3078_v23, %v3072_v63 }
 0x1a8   : > { %v2584_v46 = vpack.c.bf16 %v3081_v53, %v3075_v3 }
 0x1a9   : > { %v2120_v60 = vadd.f32 %v3066_v41, %v2119_v45  ;;  %2601 = vst [vmem:[%s4498_s16 + $0x38] sm:$0xff] %v2589_v57  }
 0x1aa   : > { %2600 = vst [vmem:[%s4498_s16 + $0x30] sm:$0xff] %v2584_v46  }
 0x1ab   : > { %v2121_v9 = vadd.f32 %v3075_v3, %v2120_v60 }
 0x1ad   : > { %v2122_v36 = vadd.f32 %v3081_v53, %v2121_v9 }
 0x1af   : > { %v2123_v5 = vadd.f32 %v3072_v63, %v2122_v36 }
 0x1b1   : > { %v2124_v59 = vadd.f32 %v3078_v23, %v2123_v5 }
 0x1b3   : > { %v2125_v34 = vrot.slane %v2124_v59, 4 }
 0x1b5   : > { %v2126_v10 = vadd.f32 %v2125_v34, %v2124_v59 }
 0x1b7   : > { %v2127_v20 = vrot.slane %v2126_v10, 2 }
 0x1b9   : > { %v2128_v15 = vadd.f32 %v2127_v20, %v2126_v10 }
 0x1bb   : > { %v2129_v49 = vrot.slane %v2128_v15, 1 }
 0x1bd   : > { %v2130_v32 = vadd.f32 %v2129_v49, %v2128_v15 }
 0x1bf   : > { %v2132_v51 = vmul.f32 0.0078125, %v2130_v32  ;;  %2133 = vst [vmem:[%s4542_s29] sm:$0x1] %v2130_v32 }
 0x1c1   : > { %v2134_v18 = vsub.f32 %v4491_v47, %v2132_v51  ;;  %v2135_v55 = vsub.f32 %v4500_v48, %v2132_v51  ;;  %v2136_v4 = vsub.f32 %v4489_v16, %v2132_v51  ;;  %v2137_v14 = vsub.f32 %v4493_v12, %v2132_v51 }
 0x1c2   : > { %v2138_v54 = vsub.f32 %v4513_v27, %v2132_v51  ;;  %v2139_v13 = vsub.f32 %v3057_v50, %v2132_v51  ;;  %v2140_v39 = vsub.f32 %v4511_v19, %v2132_v51  ;;  %v2141_v33 = vsub.f32 %v4516_v26, %v2132_v51 }
 0x1c3   : > { %v2142_v6 = vsub.f32 %v3063_v11, %v2132_v51  ;;  %v2143_v2 = vsub.f32 %v3069_v43, %v2132_v51  ;;  %v2144_v24 = vsub.f32 %v3060_v58, %v2132_v51  ;;  %v2145_v42 = vsub.f32 %v3066_v41, %v2132_v51 }
 0x1c4   : > { %v2146_v62 = vsub.f32 %v3075_v3, %v2132_v51  ;;  %v2147_v28 = vsub.f32 %v3081_v53, %v2132_v51  ;;  %v2148_v47 = vsub.f32 %v3072_v63, %v2132_v51  ;;  %v2149_v25 = vsub.f32 %v3078_v23, %v2132_v51 }
 0x1c5   : > { %v2150_v48 = vmul.f32 %v2134_v18, %v2134_v18  ;;  %v2151_v17 = vmul.f32 %v2135_v55, %v2135_v55  ;;  %v2152_v16 = vmul.f32 %v2136_v4, %v2136_v4  ;;  %v2153_v12 = vmul.f32 %v2137_v14, %v2137_v14 }
 0x1c6   : > { %v2154_v27 = vmul.f32 %v2138_v54, %v2138_v54  ;;  %v2155_v7 = vmul.f32 %v2139_v13, %v2139_v13  ;;  %v2156_v31 = vmul.f32 %v2140_v39, %v2140_v39  ;;  %v2157_v1 = vmul.f32 %v2141_v33, %v2141_v33 }
 0x1c7   : > { %v2166_v21 = vadd.f32 %v2151_v17, %v2150_v48  ;;  %v2158_v58 = vmul.f32 %v2142_v6, %v2142_v6  ;;  %v2159_v41 = vmul.f32 %v2143_v2, %v2143_v2  ;;  %v2160_v37 = vmul.f32 %v2144_v24, %v2144_v24 }
 0x1c8   : > { %v2161_v61 = vmul.f32 %v2145_v42, %v2145_v42  ;;  %v2162_v30 = vmul.f32 %v2146_v62, %v2146_v62  ;;  %v2163_v22 = vmul.f32 %v2147_v28, %v2147_v28  ;;  %v2164_v35 = vmul.f32 %v2148_v47, %v2148_v47 }
 0x1c9   : > { %v2167_v29 = vadd.f32 %v2166_v21, %v2152_v16  ;;  %v2165_v3 = vmul.f32 %v2149_v25, %v2149_v25 }
 0x1cb   : > { %v2168_v50 = vadd.f32 %v2167_v29, %v2153_v12 }
 0x1cd   : > { %v2169_v19 = vadd.f32 %v2168_v50, %v2154_v27 }
 0x1cf   : > { %v2170_v26 = vadd.f32 %v2169_v19, %v2155_v7 }
 0x1d1   : > { %v2171_v11 = vadd.f32 %v2170_v26, %v2156_v31 }
 0x1d3   : > { %v2172_v38 = vadd.f32 %v2171_v11, %v2157_v1 }
 0x1d5   : > { %v2173_v52 = vadd.f32 %v2172_v38, %v2158_v58 }
 0x1d7   : > { %v2174_v43 = vadd.f32 %v2173_v52, %v2159_v41 }
 0x1d9   : > { %v2175_v56 = vadd.f32 %v2174_v43, %v2160_v37 }
 0x1db   : > { %v2176_v40 = vadd.f32 %v2175_v56, %v2161_v61 }
 0x1dd   : > { %v2177_v63 = vadd.f32 %v2176_v40, %v2162_v30 }
 0x1df   : > { %v2178_v0 = vadd.f32 %v2177_v63, %v2163_v22 }
 0x1e1   : > { %v2179_v44 = vadd.f32 %v2178_v0, %v2164_v35 }
 0x1e3   : > { %v2180_v23 = vadd.f32 %v2179_v44, %v2165_v3 }
 0x1e5   : > { %v2181_v8 = vrot.slane %v2180_v23, 4 }
 0x1e7   : > { %v2182_v45 = vadd.f32 %v2181_v8, %v2180_v23 }
 0x1e9   : > { %v2183_v53 = vrot.slane %v2182_v45, 2 }
 0x1eb   : > { %v2184_v57 = vadd.f32 %v2183_v53, %v2182_v45 }
 0x1ed   : > { %v2185_v60 = vrot.slane %v2184_v57, 1 }
 0x1ef   : > { %v2186_v46 = vadd.f32 %v2185_v60, %v2184_v57 }
 0x1f1   : > { %2187 = vst [vmem:[%s4542_s29 + $0x1] sm:$0x1] %v2186_v46 }
 0x1f2 PF: > { %s16_s22 = sadd.s32 1, %s3259_s22   ;;  %s4704_s18 = smov %s3251_s20 }
 0x1f3   : > { %p13_p8 = scmp.ge.s32.totalorder %s16_s22, 6   ;;  %s4705_s19 = smov %s3255_s21 }
 0x1f4   : > { %s4706_s20 = smov %s4709_s23  ;;  %s4707_s21 = smov %s4713_s24 }
 0x1f5   :  { %15 = sbr.rel (!%p13_p8) target bundleno = 3 (0x3), region = 79 }

// kernel: double_conv_pallas.3
= control target key start
LH: loop header
LB: loop body
LE: loop exit
PB: predicated region body
PF: predicated region fallthrough
CT: control target
= control target key end

     0   :  { %s3393_s12 = smov 0   ;;  %s3395_s13 = smov 0   ;;  %s4500_s0 = inlined_call_operand.vmem [shape: bf16[2,18,18,128], index: 0, kind: input, shape index: {}]   ;;  %s4501_s1 = inlined_call_operand.vmem [shape: bf16[1152,128], index: 1, kind: input, shape index: {}]   ;;  %s4502_s2 = inlined_call_operand.vmem [shape: bf16[2,18,18,128], index: 2, kind: output, shape index: {0}]   ;;  %s4503_s3 = inlined_call_operand.vmem [shape: f32[2,2,2,128], index: 3, kind: output, shape index: {1}]  }
   0x1   :  { %s3397_s14 = smov 0   ;;  %s3399_s15 = smov 0  }
   0x2   :  { %s3401_s16 = smov 0  }
   0x3 LB: > { %s23_s17 = sadd.s32 1, %s3363_s14  ;;  %s26_s18 = sadd.s32 1, %s3367_s15  ;;  %s3371_s16 = sphi %s3401_s16, %s14_s16   ;;  %s3367_s15 = sphi %s3399_s15, %s4519_s15   ;;  %s3363_s14 = sphi %s3397_s14, %s4518_s14   ;;  %s3359_s13 = sphi %s3395_s13, %s4517_s13   ;;  %s3355_s12 = sphi %s3393_s12, %s4516_s12  }
   0x4   : > { %p24_p0 = scmp.ge.s32.totalorder %s23_s17, 2  ;;  %p2549_p1 = scmp.ge.s32.totalorder %s3371_s16, 1 }
   0x5   : > { %p154_p2 = scmp.lt.s32.totalorder %s3371_s16, 5 }
   0x6   : > { %s4521_s17 = smov (%p24_p0, %s23_s17), 0  ;;  %s4523_s18 = smov (!%p24_p0, %s26_s18), %s3367_s15 }
   0x7   : > { %p155_p3 = pnand %p2549_p1, %p154_p2  ;;  %p28_p4 = scmp.ge.s32.totalorder %s4523_s18, 2 }
   0x8   : > { %v3251_v0 = vld [vmem:[%s4501_s1 + $0x100] sm:$0xff] (!%p155_p3)   ;;  %p186_p5 = scmp.lt.s32.totalorder (!%p155_p3), %s3359_s13, 1  ;;  %v3254_v3 = vld [vmem:[%s4501_s1 + $0x108] sm:$0xff] (!%p155_p3)   ;;  %s2761_s5 = smul.u32 (!%p155_p3), 96, %s3355_s12  ;;  %v3257_v6 = vld [vmem:[%s4501_s1 + $0x110] sm:$0xff] (!%p155_p3)   ;;  %vm538_vm0 = vcmask (!%p155_p3), 1042432  }
   0x9   : > { %s4525_s18 = smov (%p28_p4, %s4523_s18), 0  ;;  %158 = sbr.rel (%p155_p3) target bundleno = 500 (0x1f4), region = 28 }
   0xa   : > { %v3252_v1 = vld [vmem:[%s4501_s1 + $0x140] sm:$0xff] (!%p155_p3)   ;;  %2778 = vmatprep.subr.bf16.mxu0 (!%p155_p3), %v3251_v0  ;;  %v3255_v4 = vld [vmem:[%s4501_s1 + $0x148] sm:$0xff] (!%p155_p3)   ;;  %v3258_v7 = vld [vmem:[%s4501_s1 + $0x150] sm:$0xff] (!%p155_p3)   ;;  %vm539_vm1 = vcmask (!%p155_p3), 1046532   ;;  %vm295_vm2 = vsmask.f32 (!%p155_p3), 3328 }
   0xb   : > { %v3253_v2 = vld [vmem:[%s4501_s1 + $0xc0] sm:$0xff] (!%p155_p3)   ;;  %3018 = vmatprep.subr.bf16.mxu1 (!%p155_p3), %v3252_v1  ;;  %v3256_v5 = vld [vmem:[%s4501_s1 + $0xc8] sm:$0xff] (!%p155_p3)   ;;  %v3259_v8 = vld [vmem:[%s4501_s1 + $0xd0] sm:$0xff] (!%p155_p3)   ;;  %vm296_vm3 = vsmask.f32 (!%p155_p3), 7440  ;;  %vm2316_vm7 = vcmask (!%p155_p3), 1043456  }
   0xc   : > { %2779 = vmatpush3.bf16.msra.mxu0 (!%p155_p3), %v3253_v2  ;;  %3019 = vmatpush3.bf16.msra.mxu1 (!%p155_p3), %v3252_v1  ;;  %v3260_v9 = vld [vmem:[%s4501_s1 + $0x118] sm:$0xff] (!%p155_p3)   ;;  %v3263_v12 = vld [vmem:[%s4501_s1 + $0x120] sm:$0xff] (!%p155_p3)   ;;  %v3266_v15 = vld [vmem:[%s4501_s1 + $0x128] sm:$0xff] (!%p155_p3)   ;;  %vm2150_vm6 = vsmask.f32 (!%p155_p3), 256  ;;  %vm2323_vm9 = vcmask (!%p155_p3), 1040384  }
   0xd   : > { %2780 = vmatprep.subr.bf16.mxu0 (!%p155_p3), %v3254_v3  ;;  %3020 = vmatprep.subr.bf16.mxu1 (!%p155_p3), %v3255_v4  ;;  %v3261_v10 = vld [vmem:[%s4501_s1 + $0x158] sm:$0xff] (!%p155_p3)   ;;  %v3264_v13 = vld [vmem:[%s4501_s1 + $0x160] sm:$0xff] (!%p155_p3)   ;;  %v3267_v16 = vld [vmem:[%s4501_s1 + $0x168] sm:$0xff] (!%p155_p3)   ;;  %vm2317_vm8 = vsmask.f32 (!%p155_p3), 7938  ;;  %p198_p6 = scmp.lt.s32.totalorder (!%p155_p3), %s3355_s12, 1 }
   0xe   : > { %v3262_v11 = vld [vmem:[%s4501_s1 + $0xd8] sm:$0xff] (!%p155_p3)   ;;  %v3265_v14 = vld [vmem:[%s4501_s1 + $0xe0] sm:$0xff] (!%p155_p3)   ;;  %v3268_v17 = vld [vmem:[%s4501_s1 + $0xe8] sm:$0xff] (!%p155_p3)   ;;  %vm2151_vm10 = vsmask.f32 (!%p155_p3), 4368 }
   0xf   : > { %v3269_v18 = vld [vmem:[%s4501_s1 + $0x130] sm:$0xff] (!%p155_p3)   ;;  %v3272_v21 = vld [vmem:[%s4501_s1 + $0x138] sm:$0xff] (!%p155_p3)   ;;  %vm3524_vm4 = vmor (!%p155_p3), %vm538_vm0, %vm539_vm1 }
  0x10   : > { %s4527_s13 = smov (!%p186_p5, %s3359_s13), 1  ;;  %2781 = vmatpush3.bf16.msra.mxu0 %v3256_v5  ;;  %3021 = vmatpush3.bf16.msra.mxu1 %v3255_v4  ;;  %v3270_v19 = vld [vmem:[%s4501_s1 + $0x170] sm:$0xff]   ;;  %v3273_v22 = vld [vmem:[%s4501_s1 + $0x178] sm:$0xff]   ;;  %v3276_v44 = vld [vmem:[%s4501_s1 + $0x40] sm:$0xff]   ;;  %s4529_s12 = smov (!%p198_p6, %s3355_s12), 1 }
  0x11   : > { %s3210_s29 = smul.u32 216, %s4527_s13  ;;  %2782 = vmatprep.subr.bf16.mxu0 %v3257_v6  ;;  %3022 = vmatprep.subr.bf16.mxu1 %v3258_v7  ;;  %v3271_v20 = vld [vmem:[%s4501_s1 + $0xf0] sm:$0xff]   ;;  %v3274_v28 = vld [vmem:[%s4501_s1 + $0xf8] sm:$0xff]   ;;  %vm3543_vm5 = vmor %vm295_vm2, %vm296_vm3 }
  0x12   : > { %v3277_v55 = vld [vmem:[%s4501_s1 + $0x1c0] sm:$0xff]   ;;  %v3280_v5 = vld [vmem:[%s4501_s1 + $0x48] sm:$0xff]   ;;  %vm4182_vm11 = vmand %vm2316_vm7, %vm2317_vm8 }
  0x13   : > { %s195_s10 = scalar_lea.vmem %s4502_s2, %s3210_s29  ;;  %s190_s24 = scalar_lea.vmem %s4500_s0, %s3210_s29  ;;  %v3278_v0 = vld [vmem:[%s4501_s1] sm:$0xff]   ;;  %vm4201_vm12 = vmor %vm2150_vm6, %vm2151_vm10 }
  0x14   : > { %s3460_s20 = scalar_lea.vmem %s195_s10, %s2761_s5  ;;  %2783 = vmatpush3.bf16.msra.mxu0 %v3259_v8  ;;  %3023 = vmatpush3.bf16.msra.mxu1 %v3258_v7  ;;  %s3505_s6 = scalar_lea.vmem %s190_s24, %s2761_s5  ;;  %v3279_v4 = vld [vmem:[%s4501_s1 + $0x180] sm:$0xff]   ;;  %vm4209_vm13 = vmand %vm2323_vm9, %vm2150_vm6 }
  0x15   : > { %2784 = vmatprep.subr.bf16.mxu0 %v3260_v9  ;;  %3024 = vmatprep.subr.bf16.mxu1 %v3261_v10  ;;  %v212_v23 = vld [vmem:[%s3505_s6 + $0xc] sm:$0xf]  ;;  %v213_v24 = vld [vmem:[%s3505_s6 + $0x10] sm:$0xf]  ;;  %v214_v25 = vld [vmem:[%s3505_s6 + $0x14] sm:$0x1] }
  0x16   : > { %v323_v26 = vshrl.u32 %v212_v23, 16  ;;  %v326_v27 = vshll.u32 %v212_v23, 16  ;;  %v332_v29 = vshll.u32 %v213_v24, 16  ;;  %v336_v30 = vshrl.u32 %v213_v24, 16  ;;  %v3529_v34 = vld [vmem:[%s3505_s6 + $0x18] sm:$0xf]  ;;  %vm4283_vm14 = vmand %vm2323_vm9, %vm2317_vm8 }
  0x17   : > { %v342_v31 = vshll.u32 %v214_v25, 16  ;;  %v2574_v33 = vrot.slane %v212_v23, 9  ;;  %v550_v37 = vrot.slane %v213_v24, 5  ;;  %v553_v38 = vrot.slane %v214_v25, 5  ;;  %v3532_v39 = vld [vmem:[%s3505_s6 + $0x1c] sm:$0xf] }
  0x18   : > { %2785 = vmatpush3.bf16.msra.mxu0 %v3262_v11  ;;  %3025 = vmatpush3.bf16.msra.mxu1 %v3261_v10  ;;  %v325_v35 = vrot.slane %v323_v26, 4  ;;  %v328_v36 = vrot.slane %v326_v27, 5  ;;  %v334_v40 = vrot.slane %v332_v29, 5  ;;  %v338_v41 = vrot.slane %v336_v30, 4  ;;  %v217_v43 = vld [vmem:[%s3505_s6 + $0x20] sm:$0x1] }
  0x19   : > { %2786 = vmatprep.subr.bf16.mxu0 %v3263_v12  ;;  %3026 = vmatprep.subr.bf16.mxu1 %v3264_v13  ;;  %v344_v42 = vrot.slane %v342_v31, 5  ;;  %v551_v46 = vsel %vm3524_vm4, %v2574_v33, %v550_v37  ;;  %v552_v47 = vrot.slane %v550_v37, 4  ;;  %v2575_v48 = vrot.slane %v3529_v34, 9  ;;  %v3583_v8 = vld [vmem:[%s3505_s6 + $0x24] sm:$0xf]  ;;  %v3281_v9 = vld [vmem:[%s4501_s1 + $0x8] sm:$0xff]  }
  0x1a   : > { %v329_v45 = vor.u32 %v328_v36, %v325_v35  ;;  %v339_v50 = vor.u32 %v338_v41, %v334_v40  ;;  %v557_v51 = vrot.slane %v3532_v39, 5  ;;  %v560_v52 = vrot.slane %v217_v43, 5  ;;  %v3613_v29 = vld [vmem:[%s3505_s6 + $0x38] sm:$0x1]  ;;  %v3285_v36 = vld [vmem:[%s4501_s1 + $0x10] sm:$0xff]  }
  0x1b   : > { %v554_v54 = vsel %vm3524_vm4, %v552_v47, %v553_v38  ;;  %v3562_v62 = vcombine.low %v212_v23, %v213_v24  ;;  %v347_v1 = vshrl.u32 %v3529_v34, 16  ;;  %v350_v6 = vshll.u32 %v3529_v34, 16  ;;  %v3602_v23 = vld [vmem:[%s3505_s6 + $0x30] sm:$0xf] }
  0x1c   : > { %2787 = vmatpush3.bf16.msra.mxu0 %v3265_v14  ;;  %3027 = vmatpush3.bf16.msra.mxu1 %v3264_v13  ;;  %v330_v53 = vrot.slane %v329_v45, 4  ;;  %v340_v56 = vrot.slane %v339_v50, 4  ;;  %v3553_v57 = vcombine.low %v551_v46, %v554_v54  ;;  %v558_v58 = vsel %vm3524_vm4, %v2575_v48, %v557_v51  ;;  %v3590_v13 = vld [vmem:[%s3505_s6 + $0x28] sm:$0xf]  ;;  %v3283_v24 = vld [vmem:[%s4501_s1 + $0x50] sm:$0xff]   ;;  %v3287_v50 = vld [vmem:[%s4501_s1 + $0x58] sm:$0xff]  }
  0x1d   : > { %2788 = vmatprep.subr.bf16.mxu0 %v3266_v15  ;;  %3028 = vmatprep.subr.bf16.mxu1 %v3267_v16  ;;  %v559_v59 = vrot.slane %v557_v51, 4  ;;  %v356_v7 = vshll.u32 %v3532_v39, 16  ;;  %v349_v10 = vrot.slane %v347_v1, 4  ;;  %v360_v11 = vshrl.u32 %v3532_v39, 16  ;;  %v3667_v1 = vld [vmem:[%s3505_s6 + $0x40] sm:$0xf] }
  0x1e   : > { %v335_v60 = vsel %vm3543_vm5, %v330_v53, %v334_v40  ;;  %v345_v61 = vsel %vm3543_vm5, %v340_v56, %v344_v42  ;;  %3034 = vmatprep.mubr.bf16.mxu1 %v3553_v57  ;;  %v366_v12 = vshll.u32 %v217_v43, 16  ;;  %v2576_v14 = vrot.slane %v3583_v8, 9  ;;  %v3286_v40 = vld [vmem:[%s4501_s1 + $0x188] sm:$0xff]  }
  0x1f   : > { %v561_v63 = vsel %vm3524_vm4, %v559_v59, %v560_v52  ;;  %v3570_v2 = vcombine.low %v335_v60, %v345_v61  ;;  %v352_v15 = vrot.slane %v350_v6, 5  ;;  %v2577_v30 = vrot.slane %v3602_v23, 9  ;;  %v3659_v60 = vld [vmem:[%s3505_s6 + $0x3c] sm:$0xf]  ;;  %v3291_v61 = vld [vmem:[%s4501_s1 + $0x1d0] sm:$0xff]  }
  0x20   : > { %2789 = vmatpush3.bf16.msra.mxu0 %v3268_v17  ;;  %3029 = vmatpush3.bf16.msra.mxu1 %v3267_v16  ;;  %v3572_v3 = vcombine.low %v558_v58, %v561_v63  ;;  %v358_v16 = vrot.slane %v356_v7, 5  ;;  %v220_v17 = vld [vmem:[%s3505_s6 + $0x2c] sm:$0x1]  ;;  %v574_v35 = vrot.slane %v3613_v29, 5  ;;  %v3637_v47 = vcombine.low %v3529_v34, %v3532_v39  ;;  %v3288_v34 = vld [vmem:[%s4501_s1 + $0x18] sm:$0xff]  }
  0x21   : > { %2790 = vmatprep.subr.bf16.mxu0 %v3269_v18  ;;  %3030 = vmatprep.subr.bf16.mxu1 %v3270_v19  ;;  %v564_v18 = vrot.slane %v3590_v13, 5  ;;  %v353_v25 = vor.u32 %v352_v15, %v349_v10  ;;  %v371_v51 = vshrl.u32 %v3583_v8, 16  ;;  %v374_v39 = vshll.u32 %v3583_v8, 16  ;;  %v3676_v10 = vld [vmem:[%s3505_s6 + $0x48] sm:$0xf] }
  0x22   : > { %1027 = vmatprep.mubr.bf16.mxu0 %v3570_v2  ;;  %v380_v54 = vshll.u32 %v3590_v13, 16  ;;  %v384_v58 = vshrl.u32 %v3590_v13, 16  ;;  %v390_v59 = vshll.u32 %v220_v17, 16  ;;  %v2578_v7 = vrot.slane %v3659_v60, 9  ;;  %v3683_v15 = vld [vmem:[%s3505_s6 + $0x50] sm:$0x1] }
  0x23   : > { %v565_v26 = vsel %vm3524_vm4, %v2576_v14, %v564_v18  ;;  %v566_v27 = vrot.slane %v564_v18, 4  ;;  %v354_v37 = vrot.slane %v353_v25, 4  ;;  %v373_v56 = vrot.slane %v371_v51, 4  ;;  %v3680_v14 = vld [vmem:[%s3505_s6 + $0x4c] sm:$0xf] }
  0x24   : > { %2791 = vmatpush3.bf16.msra.mxu0 %v3271_v20  ;;  %3031 = vmatpush3.bf16.msra.mxu1 %v3270_v19  ;;  %v3284_v19 = vld [vmem:[%s4501_s1 + $0x1c8] sm:$0xff]   ;;  %v362_v20 = vrot.slane %v360_v11, 4  ;;  %v376_v63 = vrot.slane %v374_v39, 5  ;;  %v392_v6 = vrot.slane %v390_v59, 5  ;;  %v414_v51 = vshll.u32 %v3613_v29, 16 }
  0x25   : > { %2792 = vmatprep.subr.bf16.mxu0 %v3272_v21  ;;  %3032 = vmatprep.subr.bf16.mxu1 %v3273_v22  ;;  %v368_v21 = vrot.slane %v366_v12, 5  ;;  %v359_v45 = vsel %vm3543_vm5, %v354_v37, %v358_v16  ;;  %v3706_v37 = vcombine.low %v3583_v8, %v3590_v13  ;;  %v3294_v8 = vld [vmem:[%s4501_s1 + $0x68] sm:$0xff]   ;;  %v3734_v39 = vld [vmem:[%s3505_s6 + $0x54] sm:$0xf] }
  0x26   : > { %v363_v31 = vor.u32 %v362_v20, %v358_v16  ;;  %v377_v11 = vor.u32 %v376_v63, %v373_v56  ;;  %v2579_v16 = vrot.slane %v3676_v10, 9  ;;  %v585_v20 = vrot.slane %v3680_v14, 5  ;;  %v3298_v63 = vld [vmem:[%s4501_s1 + $0x1d8] sm:$0xff]  }
  0x27   : > { %v416_v59 = vrot.slane %v414_v51, 5 }
  0x28   : > { %2793 = vmatpush3.bf16.msra.mxu0 %v3274_v28  ;;  %3033 = vmatpush3.bf16.msra.mxu1 %v3273_v22  ;;  %v567_v22 = vrot.slane %v220_v17, 5  ;;  %v3610_v28 = vld [vmem:[%s3505_s6 + $0x34] sm:$0xf]  ;;  %v364_v41 = vrot.slane %v363_v31, 4 }
  0x29   : > { %2858 = vmatprep.subr.bf16.mxu1 %v3276_v44  ;;  %2938 = vmatprep.subr.bf16.mxu0 %v3277_v55  ;;  %v571_v33 = vrot.slane %v3610_v28, 5  ;;  %v3290_v55 = vld [vmem:[%s4501_s1 + $0x60] sm:$0xff]  }
  0x2a   : > { %v568_v38 = vsel %vm3524_vm4, %v566_v27, %v567_v22  ;;  %v369_v46 = vsel %vm3543_vm5, %v364_v41, %v368_v21  ;;  %v378_v21 = vrot.slane %v377_v11, 4  ;;  %v588_v22 = vrot.slane %v3683_v15, 5 }
  0x2b   : > { %3035 = vmatmul.mubr.bf16.vlgmr.msra.gmra.mrb[0].mxu1 %v3572_v3  ;;  %1028 = vmatmul.mubr.bf16.vlgmr.msra.gmra.mrb[0].mxu0 %v3562_v62  ;;  %v3626_v42 = vcombine.low %v565_v26, %v568_v38  ;;  %v572_v43 = vsel %vm3524_vm4, %v2577_v30, %v571_v33  ;;  %v573_v44 = vrot.slane %v571_v33, 4  ;;  %v3645_v52 = vcombine.low %v359_v45, %v369_v46  ;;  %v3292_v33 = vld [vmem:[%s4501_s1 + $0x20] sm:$0xff]   ;;  %v3295_v45 = vld [vmem:[%s4501_s1 + $0x28] sm:$0xff]  }
  0x2c   : > { %2859 = vmatpush3.bf16.msra.mxu1 %v3278_v0  ;;  %2939 = vmatpush3.bf16.msra.mxu0 %v3279_v4  ;;  %v382_v0 = vrot.slane %v380_v54, 5  ;;  %v3670_v4 = vld [vmem:[%s3505_s6 + $0x44] sm:$0x1]  ;;  %v586_v26 = vsel %vm3524_vm4, %v2579_v16, %v585_v20  ;;  %v587_v27 = vrot.slane %v585_v20, 4  ;;  %v398_v41 = vshll.u32 %v3602_v23, 16 }
  0x2d   : > { %2860 = vmatprep.subr.bf16.mxu1 %v3280_v5  ;;  %2940 = vmatprep.subr.bf16.mxu0 %v3284_v19  ;;  %v575_v48 = vsel %vm3524_vm4, %v573_v44, %v574_v35  ;;  %v386_v5 = vrot.slane %v384_v58, 4  ;;  %v581_v12 = vrot.slane %v3670_v4, 5  ;;  %v395_v35 = vshrl.u32 %v3602_v23, 16  ;;  %v3737_v54 = vld [vmem:[%s3505_s6 + $0x58] sm:$0xf] }
  0x2e   : > { %3038 = vmatprep.mubr.bf16.mxu1 %v3626_v42  ;;  %v3647_v53 = vcombine.low %v572_v43, %v575_v48  ;;  %1035 = vmatprep.mubr.bf16.mxu0 %v3645_v52  ;;  %v383_v30 = vsel %vm3543_vm5, %v378_v21, %v382_v0  ;;  %v589_v38 = vsel %vm3524_vm4, %v587_v27, %v588_v22  ;;  %v400_v46 = vrot.slane %v398_v41, 5  ;;  %v3757_v16 = vld [vmem:[%s3505_s6 + $0x68] sm:$0x1] }
  0x2f   : > { %v387_v17 = vor.u32 %v386_v5, %v382_v0  ;;  %v3717_v44 = vcombine.low %v586_v26, %v589_v38  ;;  %v397_v13 = vrot.slane %v395_v35, 4  ;;  %v404_v48 = vshll.u32 %v3610_v28, 16 }
  0x30   : > { %2861 = vmatpush3.bf16.msra.mxu1 %v3281_v9  ;;  %2941 = vmatpush3.bf16.msra.mxu0 %v3286_v40  ;;  %v578_v9 = vrot.slane %v3667_v1, 5  ;;  %v3293_v40 = vld [vmem:[%s4501_s1 + $0x190] sm:$0xff]   ;;  %v2580_v0 = vrot.slane %v3734_v39, 9  ;;  %v592_v5 = vrot.slane %v3737_v54, 5  ;;  %v765_v20 = vrot.slane %v3757_v16, 5 }
  0x31   : > { %2862 = vmatprep.subr.bf16.mxu1 %v3283_v24  ;;  %2942 = vmatprep.subr.bf16.mxu0 %v3291_v61  ;;  %v388_v24 = vrot.slane %v387_v17, 4  ;;  %v401_v29 = vor.u32 %v400_v46, %v397_v13  ;;  %v406_v56 = vrot.slane %v404_v48, 5  ;;  %v3744_v61 = vld [vmem:[%s3505_s6 + $0x60] sm:$0xf]  ;;  %v3771_v27 = vcombine.low %v3602_v23, %v3610_v28 }
  0x32   : > { %v579_v18 = vsel %vm3524_vm4, %v2578_v7, %v578_v9  ;;  %v580_v19 = vrot.slane %v578_v9, 4  ;;  %v3753_v7 = vld [vmem:[%s3505_s6 + $0x64] sm:$0xf]  ;;  %v2591_v9 = vrot.slane %v3744_v61, 9  ;;  %v422_v23 = vshll.u32 %v3659_v60, 16 }
  0x33   : > { %3039 = vmatmul.mubr.bf16.gmra.mrb[4].mxu1 %v3647_v53  ;;  %1036 = vmatmul.mubr.bf16.gmra.mrb[4].mxu0 %v3637_v47  ;;  %v402_v11 = vrot.slane %v401_v29, 4  ;;  %v762_v17 = vrot.slane %v3753_v7, 5  ;;  %v428_v48 = vshll.u32 %v3667_v1, 16  ;;  %v438_v51 = vshll.u32 %v3670_v4, 16  ;;  %v3807_v29 = vld [vmem:[%s3505_s6 + $0x4] sm:$0xf] }
  0x34   : > { %2863 = vmatpush3.bf16.msra.mxu1 %v3285_v36  ;;  %v582_v25 = vsel %vm3524_vm4, %v580_v19, %v581_v12  ;;  %v393_v36 = vsel %vm3543_vm5, %v388_v24, %v392_v6  ;;  %2943 = vmatpush3.bf16.msra.mxu0 %v3293_v40  ;;  %v594_v19 = vrot.slane %v592_v5, 4  ;;  %v3300_v40 = vld [vmem:[%s4501_s1 + $0x198] sm:$0xff]   ;;  %v424_v46 = vrot.slane %v422_v23, 5  ;;  %v3311_v23 = vld [vmem:[%s4501_s1 + $0x80] sm:$0xff]  }
  0x35   : > { %2864 = vmatprep.subr.bf16.mxu1 %v3287_v50  ;;  %v3696_v31 = vcombine.low %v579_v18, %v582_v25  ;;  %v3714_v43 = vcombine.low %v383_v30, %v393_v36  ;;  %v408_v50 = vshrl.u32 %v3610_v28, 16  ;;  %2944 = vmatprep.subr.bf16.mxu0 %v3298_v63  ;;  %v593_v18 = vsel %vm3524_vm4, %v2580_v0, %v592_v5  ;;  %v3299_v30 = vld [vmem:[%s4501_s1 + $0x30] sm:$0xff]   ;;  %v3822_v5 = vld [vmem:[%s3505_s6 + $0x8] sm:$0x1] }
  0x36   : > { %v407_v21 = vsel %vm3543_vm5, %v402_v11, %v406_v56  ;;  %v763_v24 = vsel %vm3524_vm4, %v2591_v9, %v762_v17  ;;  %v764_v25 = vrot.slane %v762_v17, 4  ;;  %v430_v63 = vrot.slane %v428_v48, 5 }
  0x37   : > { %3042 = vmatprep.mubr.bf16.mxu1 %v3696_v31  ;;  %1043 = vmatprep.mubr.bf16.mxu0 %v3714_v43  ;;  %v410_v58 = vrot.slane %v408_v50, 4  ;;  %v432_v50 = vshrl.u32 %v3667_v1, 16  ;;  %v308_v11 = vshll.u32 %v3807_v29, 16 }
  0x38   : > { %2865 = vmatpush3.bf16.msra.mxu1 %v3288_v34  ;;  %v3297_v34 = vld [vmem:[%s4501_s1 + $0x70] sm:$0xff]   ;;  %v766_v38 = vsel %vm3524_vm4, %v764_v25, %v765_v20  ;;  %2945 = vmatpush3.bf16.msra.mxu0 %v3300_v40  ;;  %v318_v20 = vshll.u32 %v3822_v5, 16  ;;  %v443_v40 = vshrl.u32 %v3676_v10, 16 }
  0x39   : > { %2866 = vmatprep.subr.bf16.mxu1 %v3290_v55  ;;  %v3740_v55 = vld [vmem:[%s3505_s6 + $0x5c] sm:$0x1]  ;;  %v411_v12 = vor.u32 %v410_v58, %v406_v56  ;;  %v3789_v41 = vcombine.low %v763_v24, %v766_v38  ;;  %v3811_v56 = vcombine.low %v3659_v60, %v3667_v1  ;;  %v3305_v58 = vld [vmem:[%s4501_s1 + $0x1e0] sm:$0xff]   ;;  %v434_v0 = vrot.slane %v432_v50, 4 }
  0x3a   : > { %v595_v6 = vrot.slane %v3740_v55, 5  ;;  %v440_v1 = vrot.slane %v438_v51, 5  ;;  %2946 = vmatprep.subr.bf16.mxu0 %v3305_v58  ;;  %v310_v24 = vrot.slane %v308_v11, 5  ;;  %v320_v38 = vrot.slane %v318_v20, 5 }
  0x3b   : > { %3043 = vmatmul.mubr.bf16.gmra.mrb[8].mxu1 %v3717_v44  ;;  %1044 = vmatmul.mubr.bf16.gmra.mrb[8].mxu0 %v3706_v37  ;;  %v412_v22 = vrot.slane %v411_v12, 4  ;;  %v312_v12 = vshrl.u32 %v3807_v29, 16  ;;  %v445_v50 = vrot.slane %v443_v40, 4  ;;  %v456_v51 = vshrl.u32 %v3680_v14, 16 }
  0x3c   : > { %2867 = vmatpush3.bf16.msra.mxu1 %v3292_v33  ;;  %v596_v26 = vsel %vm3524_vm4, %v594_v19, %v595_v6  ;;  %v419_v33 = vshrl.u32 %v3659_v60, 16  ;;  %v3306_v60 = vld [vmem:[%s4501_s1 + $0x1a0] sm:$0xff]   ;;  %v462_v58 = vshll.u32 %v3683_v15, 16  ;;  %v467_v15 = vshrl.u32 %v3734_v39, 16 }
  0x3d   : > { %2868 = vmatprep.subr.bf16.mxu1 %v3294_v8  ;;  %v417_v35 = vsel %vm3543_vm5, %v412_v22, %v416_v59  ;;  %v3779_v36 = vcombine.low %v593_v18, %v596_v26  ;;  %v3301_v8 = vld [vmem:[%s4501_s1 + $0x78] sm:$0xff]   ;;  %v3818_v59 = vcombine.low %v3676_v10, %v3680_v14  ;;  %v435_v18 = vor.u32 %v434_v0, %v430_v63 }
  0x3e   : > { %v3787_v28 = vcombine.low %v407_v21, %v417_v35  ;;  %v421_v13 = vrot.slane %v419_v33, 4  ;;  %2947 = vmatpush3.bf16.msra.mxu0 %v3306_v60  ;;  %v3308_v21 = vld [vmem:[%s4501_s1 + $0x1e8] sm:$0xff]   ;;  %v314_v25 = vrot.slane %v312_v12, 4  ;;  %v3313_v60 = vld [vmem:[%s4501_s1 + $0x1b0] sm:$0xff]  }
  0x3f   : > { %3046 = vmatprep.mubr.bf16.mxu1 %v3779_v36  ;;  %v436_v35 = vrot.slane %v435_v18, 4  ;;  %2948 = vmatprep.subr.bf16.mxu0 %v3308_v21  ;;  %v470_v18 = vshll.u32 %v3734_v39, 16 }
  0x40   : > { %2869 = vmatpush3.bf16.msra.mxu1 %v3295_v45  ;;  %v3302_v45 = vld [vmem:[%s4501_s1 + $0x38] sm:$0xff]   ;;  %1051 = vmatprep.mubr.bf16.mxu0 %v3787_v28  ;;  %v425_v4 = vor.u32 %v424_v46, %v421_v13  ;;  %v315_v13 = vor.u32 %v314_v25, %v310_v24  ;;  %v452_v46 = vshll.u32 %v3680_v14, 16  ;;  %v464_v14 = vrot.slane %v462_v58, 5 }
  0x41   : > { %2870 = vmatprep.subr.bf16.mxu1 %v3297_v34  ;;  %v3804_v34 = vld [vmem:[%s3505_s6] sm:$0xf]  ;;  %v441_v48 = vsel %vm3543_vm5, %v436_v35, %v440_v1  ;;  %v476_v25 = vshll.u32 %v3737_v54, 16  ;;  %v486_v35 = vshll.u32 %v3740_v55, 16 }
  0x42   : > { %v299_v6 = vshrl.u32 %v3804_v34, 16  ;;  %v302_v9 = vshll.u32 %v3804_v34, 16  ;;  %v426_v17 = vrot.slane %v425_v4, 4  ;;  %v2557_v26 = vcombine.low %v3804_v34, %v3807_v29  ;;  %v3312_v4 = vld [vmem:[%s4501_s1 + $0x1f0] sm:$0xff]  }
  0x43   : > { %3047 = vmatmul.mubr.bf16.gmra.mrb[12].mxu1 %v3789_v41  ;;  %1052 = vmatmul.mubr.bf16.gmra.mrb[12].mxu0 %v3771_v27  ;;  %v454_v1 = vrot.slane %v452_v46, 5  ;;  %v478_v40 = vrot.slane %v476_v25, 5  ;;  %v3320_v25 = vld [vmem:[%s4501_s1 + $0x98] sm:$0xff]  }
  0x44   : > { %2871 = vmatpush3.bf16.msra.mxu1 %v3299_v30  ;;  %v301_v19 = vrot.slane %v299_v6, 4  ;;  %v304_v22 = vrot.slane %v302_v9, 5  ;;  %v3309_v30 = vld [vmem:[%s4501_s1 + $0x1a8] sm:$0xff]   ;;  %v431_v33 = vsel %vm3543_vm5, %v426_v17, %v430_v63  ;;  %v458_v9 = vrot.slane %v456_v51, 4 }
  0x45   : > { %2872 = vmatprep.subr.bf16.mxu1 %v3301_v8  ;;  %2949 = vmatpush3.bf16.msra.mxu0 %v3309_v30  ;;  %v3855_v63 = vcombine.low %v431_v33, %v441_v48  ;;  %v472_v33 = vrot.slane %v470_v18, 5  ;;  %v3902_v18 = vld [vmem:[%s4501_s1 + $0x200] sm:$0xff]  }
  0x46   : > { %v305_v8 = vor.u32 %v304_v22, %v301_v19  ;;  %2950 = vmatprep.subr.bf16.mxu0 %v3312_v4  ;;  %v3315_v19 = vld [vmem:[%s4501_s1 + $0x88] sm:$0xff]   ;;  %v459_v21 = vor.u32 %v458_v9, %v454_v1  ;;  %v469_v22 = vrot.slane %v467_v15, 4  ;;  %v733_v4 = vshll.u32 %v3753_v7, 16 }
  0x47   : > { %1059 = vmatprep.mubr.bf16.mxu0 %v3855_v63 }
  0x48   : > { %2873 = vmatpush3.bf16.msra.mxu1 %v3302_v45  ;;  %v446_v45 = vshll.u32 %v3676_v10, 16  ;;  %v306_v0 = vrot.slane %v305_v8, 4  ;;  %v316_v10 = vrot.slane %v315_v13, 4  ;;  %v724_v8 = vshrl.u32 %v3744_v61, 16 }
  0x49   : > { %3050 = vmatprep.subr.bf16.mxu1 %v3311_v23  ;;  %2951 = vmatpush3.bf16.msra.mxu0 %v3313_v60  ;;  %v727_v13 = vshll.u32 %v3744_v61, 16  ;;  %v473_v46 = vor.u32 %v472_v33, %v469_v22  ;;  %v737_v60 = vshrl.u32 %v3753_v7, 16  ;;  %v735_v9 = vrot.slane %v733_v4, 5 }
  0x4a   : > { %v448_v6 = vrot.slane %v446_v45, 5  ;;  %v311_v11 = vsel %vm3543_vm5, %v306_v0, %v310_v24  ;;  %v321_v12 = vsel %vm3543_vm5, %v316_v10, %v320_v38  ;;  %v480_v24 = vshrl.u32 %v3737_v54, 16 }
  0x4b   : > { %v2565_v20 = vcombine.low %v311_v11, %v321_v12  ;;  %1060 = vmatmul.mubr.bf16.gmra.mrb[16].mxu0 %v3811_v56  ;;  %v460_v38 = vrot.slane %v459_v21, 4  ;;  %v726_v55 = vrot.slane %v724_v8, 4  ;;  %v729_v58 = vrot.slane %v727_v13, 5 }
  0x4c   : > { %v449_v17 = vor.u32 %v448_v6, %v445_v50  ;;  %v482_v48 = vrot.slane %v480_v24, 4  ;;  %v488_v50 = vrot.slane %v486_v35, 5  ;;  %v474_v10 = vrot.slane %v473_v46, 4 }
  0x4d   : > { %1365 = vmatprep.mubr.bf16.mxu1 %v2565_v20  ;;  %v465_v51 = vsel %vm3543_vm5, %v460_v38, %v464_v14  ;;  %v3318_v14 = vld [vmem:[%s4501_s1 + $0x90] sm:$0xff]   ;;  %v739_v12 = vrot.slane %v737_v60, 4  ;;  %v3919_v33 = vcombine.low %v3734_v39, %v3737_v54  ;;  %v3324_v39 = vld [vmem:[%s4501_s1 + $0xa8] sm:$0xff]   ;;  %v3937_v54 = vcombine.low %v3744_v61, %v3753_v7 }
  0x4e   : > { %v450_v30 = vrot.slane %v449_v17, 4  ;;  %1366 = vmatmul.mubr.bf16.vlgmr.msra.gmra.mrb[16].mxu1 %v2557_v26  ;;  %v3316_v26 = vld [vmem:[%s4501_s1 + $0x1f8] sm:$0xff]   ;;  %v483_v6 = vor.u32 %v482_v48, %v478_v40  ;;  %v479_v15 = vsel %vm3543_vm5, %v474_v10, %v478_v40  ;;  %v3325_v38 = vld [vmem:[%s4501_s1 + $0xb0] sm:$0xff]   ;;  %v3952_v61 = vld [vmem:[%s4501_s1 + $0x208] sm:$0xff]   ;;  %v543_v7 = vrot.slane %v3807_v29, 5 }
  0x4f   : > { %1373 = vmatprep.mubr.bf16.mxu1 %v3570_v2  ;;  %3051 = vmatpush3.bf16.msra.mxu1 %v3311_v23  ;;  %v743_v2 = vshll.u32 %v3757_v16, 16  ;;  %v3317_v23 = vld [vmem:[%s4501_s1 + $0x1b8] sm:$0xff]   ;;  %v740_v21 = vor.u32 %v739_v12, %v735_v9  ;;  %v546_v13 = vrot.slane %v3822_v5, 5  ;;  %v4001_v29 = vld [vmem:[%s4501_s1 + $0x230] sm:$0xff]  }
  0x50   : > { %v455_v45 = vsel %vm3543_vm5, %v450_v30, %v454_v1  ;;  %3052 = vmatprep.subr.bf16.mxu1 %v3315_v19  ;;  %v730_v1 = vor.u32 %v729_v58, %v726_v55  ;;  %2952 = vmatprep.subr.bf16.mxu0 %v3316_v26  ;;  %v484_v11 = vrot.slane %v483_v6, 4  ;;  %v3327_v40 = vld [vmem:[%s4501_s1 + $0xb8] sm:$0xff]   ;;  %v545_v8 = vrot.slane %v543_v7, 4 }
  0x51   : > { %v3885_v0 = vcombine.low %v455_v45, %v465_v51  ;;  %v745_v16 = vrot.slane %v743_v2, 5  ;;  %2953 = vmatpush3.bf16.msra.mxu0 %v3317_v23  ;;  %v741_v30 = vrot.slane %v740_v21, 4  ;;  %v3332_v5 = vld [vmem:[%s4501_s1 + $0x238] sm:$0xff]   ;;  %v4018_v45 = vld [vmem:[%s3505_s6 + $0x70] sm:$0xf] }
  0x52   : > { %v731_v17 = vrot.slane %v730_v1, 4  ;;  %v489_v20 = vsel %vm3543_vm5, %v484_v11, %v488_v50  ;;  %3082 = vmatprep.subr.bf16.mxu0 %v3902_v18  ;;  %v1551_v51 = vshll.u32 %v4018_v45, 16  ;;  %v1555_v55 = vshrl.u32 %v4018_v45, 16 }
  0x53   : > { %1067 = vmatprep.mubr.bf16.mxu0 %v3885_v0  ;;  %3053 = vmatpush3.bf16.msra.mxu1 %v3315_v19  ;;  %v3906_v22 = vcombine.low %v479_v15, %v489_v20  ;;  %v746_v24 = vsel %vm3543_vm5, %v741_v30, %v745_v16 }
  0x54   : > { %1068 = vmatmul.mubr.bf16.gmra.mrb[20].mxu0 %v3818_v59  ;;  %3054 = vmatprep.subr.bf16.mxu1 %v3318_v14  ;;  %v736_v19 = vsel %vm3543_vm5, %v731_v17, %v735_v9  ;;  %v1553_v4 = vrot.slane %v1551_v51, 5  ;;  %v1557_v26 = vrot.slane %v1555_v55, 4 }
  0x55   : > { %1075 = vmatprep.mubr.bf16.mxu0 %v3906_v22  ;;  %v3923_v35 = vcombine.low %v736_v19, %v746_v24 }
  0x56   : > { %1374 = vmatmul.mubr.bf16.gmra.mrb[20].mxu1 %v3562_v62  ;;  %v3322_v62 = vld [vmem:[%s4501_s1 + $0xa0] sm:$0xff]   ;;  %v1558_v6 = vor.u32 %v1557_v26, %v1553_v4 }
  0x57   : > { %1381 = vmatprep.mubr.bf16.mxu1 %v3645_v52  ;;  %3055 = vmatpush3.bf16.msra.mxu1 %v3318_v14  ;;  %v1580_v14 = vrot.slane %v4018_v45, 5 }
  0x58   : > { %3056 = vmatprep.subr.bf16.mxu1 %v3320_v25  ;;  %v1559_v9 = vrot.slane %v1558_v6, 4 }
  0x59   : > { %v1582_v11 = vrot.slane %v1580_v14, 4 }
  0x5b   : > { %3057 = vmatpush3.bf16.msra.mxu1 %v3320_v25 }
  0x5c   : > { %1076 = vmatmul.mubr.bf16.gmra.mrb[24].mxu0 %v3919_v33  ;;  %3058 = vmatprep.subr.bf16.mxu1 %v3322_v62 }
  0x5d   : > { %1083 = vmatprep.mubr.bf16.mxu0 %v3923_v35 }
  0x5e   : > { %1382 = vmatmul.mubr.bf16.gmra.mrb[24].mxu1 %v3637_v47 }
  0x5f   : > { %1389 = vmatprep.mubr.bf16.mxu1 %v3714_v43  ;;  %3059 = vmatpush3.bf16.msra.mxu1 %v3322_v62 }
  0x60   : > { %3060 = vmatprep.subr.bf16.mxu1 %v3324_v39 }
  0x63   : > { %3061 = vmatpush3.bf16.msra.mxu1 %v3324_v39 }
  0x64   : > { %1084 = vmatmul.mubr.bf16.gmra.mrb[28].mxu0 %v3937_v54  ;;  %3062 = vmatprep.subr.bf16.mxu1 %v3325_v38 }
  0x65   : > { %1845 = vmatprep.mubr.bf16.mxu0 %v3645_v52  ;;  %v3961_v52 = vld [vmem:[%s4501_s1 + $0x210] sm:$0xff]  }
  0x66   : > { %1390 = vmatmul.mubr.bf16.gmra.mrb[28].mxu1 %v3706_v37 }
  0x67   : > { %1397 = vmatprep.mubr.bf16.mxu1 %v3787_v28  ;;  %3063 = vmatpush3.bf16.msra.mxu1 %v3325_v38 }
  0x68   : > { %3064 = vmatprep.subr.bf16.mxu1 %v3327_v40 }
  0x6b   : > { %3065 = vmatpush3.bf16.msra.mxu1 %v3327_v40 }
  0x6c   : > { %1846 = vmatmul.mubr.bf16.vlgmr.msra.gmra.mrb[32].mxu0 %v3637_v47  ;;  %3114 = vmatprep.subr.bf16.mxu1 %v3902_v18  ;;  %v3971_v47 = vld [vmem:[%s4501_s1 + $0x218] sm:$0xff]  }
  0x6d   : > { %3083 = vmatpush3.bf16.msra.mxu0 %v3902_v18  ;;  %1853 = vmatprep.mubr.bf16.mxu0 %v3714_v43  ;;  %v3980_v43 = vld [vmem:[%s4501_s1 + $0x220] sm:$0xff]  }
  0x6e   : > { %3084 = vmatprep.subr.bf16.mxu0 %v3952_v61  ;;  %1398 = vmatmul.mubr.bf16.gmra.mrb[32].mxu1 %v3771_v27 }
  0x6f   : > { %1405 = vmatprep.mubr.bf16.mxu1 %v3855_v63 }
  0x71   : > { %3085 = vmatpush3.bf16.msra.mxu0 %v3952_v61 }
  0x72   : > { %3086 = vmatprep.subr.bf16.mxu0 %v3961_v52 }
  0x74   : > { %1854 = vmatmul.mubr.bf16.gmra.mrb[36].mxu0 %v3706_v37  ;;  %v3990_v37 = vld [vmem:[%s4501_s1 + $0x228] sm:$0xff]  }
  0x75   : > { %1861 = vmatprep.mubr.bf16.mxu0 %v3787_v28  ;;  %3087 = vmatpush3.bf16.msra.mxu0 %v3961_v52  ;;  %v2573_v28 = vrot.slane %v3804_v34, 9  ;;  %v547_v34 = vsel %vm3524_vm4, %v545_v8, %v546_v13 }
  0x76   : > { %3088 = vmatprep.subr.bf16.mxu0 %v3971_v47  ;;  %1406 = vmatmul.mubr.bf16.gmra.mrb[36].mxu1 %v3811_v56 }
  0x77   : > { %1413 = vmatprep.mubr.bf16.mxu1 %v3885_v0 }
  0x79   : > { %3089 = vmatpush3.bf16.msra.mxu0 %v3971_v47 }
  0x7a   : > { %3090 = vmatprep.subr.bf16.mxu0 %v3980_v43 }
  0x7c   : > { %1862 = vmatmul.mubr.bf16.gmra.mrb[40].mxu0 %v3771_v27  ;;  %v544_v27 = vsel %vm3524_vm4, %v2573_v28, %v543_v7 }
  0x7d   : > { %1869 = vmatprep.mubr.bf16.mxu0 %v3855_v63  ;;  %3091 = vmatpush3.bf16.msra.mxu0 %v3980_v43  ;;  %v4015_v63 = vld [vmem:[%s3505_s6 + $0x6c] sm:$0xf]  ;;  %v2581_v46 = vcombine.low %v544_v27, %v547_v34 }
  0x7e   : > { %3092 = vmatprep.subr.bf16.mxu0 %v3990_v37  ;;  %1414 = vmatmul.mubr.bf16.gmra.mrb[40].mxu1 %v3818_v59  ;;  %v1542_v48 = vshrl.u32 %v4015_v63, 16  ;;  %v1545_v50 = vshll.u32 %v4015_v63, 16  ;;  %v2641_v49 = vcombine.low %v4015_v63, %v4018_v45  ;;  %v2643_v15 = vrot.slane %v4015_v63, 9 }
  0x7f   : > { %1421 = vmatprep.mubr.bf16.mxu1 %v3906_v22 }
  0x80   : > { %v1547_v58 = vrot.slane %v1545_v50, 5 }
  0x81   : > { %3093 = vmatpush3.bf16.msra.mxu0 %v3990_v37 }
  0x82   : > { %3094 = vmatprep.subr.bf16.mxu0 %v4001_v29 }
  0x84   : > { %1870 = vmatmul.mubr.bf16.gmra.mrb[44].mxu0 %v3811_v56  ;;  %v1544_v56 = vrot.slane %v1542_v48, 4 }
  0x85   : > { %1877 = vmatprep.mubr.bf16.mxu0 %v3885_v0  ;;  %3095 = vmatpush3.bf16.msra.mxu0 %v4001_v29  ;;  %v238_v0 = vld [vmem:[%s3505_s6 + $0x74] sm:$0x1]  ;;  %s2552_s6 = sshll.u32 %s4527_s13, 1 }
  0x86   : > { %3096 = vmatprep.subr.bf16.mxu0 %v3332_v5  ;;  %1422 = vmatmul.mubr.bf16.gmra.mrb[44].mxu1 %v3919_v33  ;;  %v1548_v10 = vor.u32 %v1547_v58, %v1544_v56  ;;  %v1561_v60 = vshll.u32 %v238_v0, 16  ;;  %v1583_v12 = vrot.slane %v238_v0, 5  ;;  %s201_s27 = sadd.s32 %s2552_s6, %s4529_s12 }
  0x87   : > { %3066 = vmatprep.mubr.bf16.mxu1 %v2581_v46  ;;  %s2553_s28 = sshll.u32 %s201_s27, 1 }
  0x88   : > { %v1549_v1 = vrot.slane %v1548_v10, 4  ;;  %v1563_v2 = vrot.slane %v1561_v60, 5  ;;  %s4465_s29 = scalar_lea.vmem %s4503_s3, %s2553_s28 }
  0x89   : > { %3097 = vmatpush3.bf16.msra.mxu0 %v3332_v5 }
  0x8c   : > { %1878 = vmatmul.mubr.bf16.gmra.mrb[48].mxu0 %v3818_v59  ;;  %v1564_v59 = vsel %vm3543_vm5, %v1559_v9, %v1563_v2 }
  0x8d   : > { %1885 = vmatprep.mubr.bf16.mxu0 %v3906_v22 }
  0x8e   : > { %3067 = vmatmul.mubr.bf16.vlgmr.msra.gmra.mrb[0].mxu1 %v3553_v57  ;;  %v1554_v57 = vsel %vm3543_vm5, %v1549_v1, %v1553_v4 }
  0x8f   : > { %3122 = vmatpush3.bf16.msra.mxu1 %v3902_v18  ;;  %3070 = vmatprep.mubr.bf16.mxu1 %v3572_v3  ;;  %v2642_v23 = vcombine.low %v1554_v57, %v1564_v59 }
  0x90   : > { %3115 = vmatprep.subr.bf16.mxu1 %v3952_v61 }
  0x93   : > { %3123 = vmatpush3.bf16.msra.mxu1 %v3952_v61 }
  0x94   : > { %1886 = vmatmul.mubr.bf16.gmra.mrb[52].mxu0 %v3919_v33  ;;  %3116 = vmatprep.subr.bf16.mxu1 %v3961_v52 }
  0x95   : > { %1893 = vmatprep.mubr.bf16.mxu0 %v3923_v35 }
  0x96   : > { %3071 = vmatmul.mubr.bf16.gmra.mrb[4].mxu1 %v3626_v42 }
  0x97   : > { %3124 = vmatpush3.bf16.msra.mxu1 %v3961_v52  ;;  %3074 = vmatprep.mubr.bf16.mxu1 %v3647_v53 }
  0x98   : > { %3117 = vmatprep.subr.bf16.mxu1 %v3971_v47 }
  0x9b   : > { %3125 = vmatpush3.bf16.msra.mxu1 %v3971_v47 }
  0x9c   : > { %1894 = vmatmul.mubr.bf16.gmra.mrb[56].mxu0 %v3937_v54  ;;  %3118 = vmatprep.subr.bf16.mxu1 %v3980_v43 }
  0x9d   : > { %1901 = vmatprep.mubr.bf16.mxu0 %v2642_v23 }
  0x9e   : > { %3075 = vmatmul.mubr.bf16.gmra.mrb[8].mxu1 %v3696_v31 }
  0x9f   : > { %3126 = vmatpush3.bf16.msra.mxu1 %v3980_v43  ;;  %3078 = vmatprep.mubr.bf16.mxu1 %v3717_v44 }
  0xa0   : > { %3119 = vmatprep.subr.bf16.mxu1 %v3990_v37 }
  0xa3   : > { %3127 = vmatpush3.bf16.msra.mxu1 %v3990_v37 }
  0xa4   : > { %1902 = vmatmul.mubr.bf16.gmra.mrb[60].mxu0 %v2641_v49  ;;  %3120 = vmatprep.subr.bf16.mxu1 %v4001_v29 }
  0xa5   : > { %3098 = vmatprep.mubr.bf16.mxu0 %v3572_v3  ;;  %v1581_v3 = vsel %vm3524_vm4, %v2643_v15, %v1580_v14 }
  0xa6   : > { %3079 = vmatmul.mubr.bf16.gmra.mrb[12].mxu1 %v3779_v36 }
  0xa7   : > { %3128 = vmatpush3.bf16.msra.mxu1 %v4001_v29  ;;  %3106 = vmatprep.mubr.bf16.mxu1 %v3717_v44  ;;  %v1584_v44 = vsel %vm3524_vm4, %v1582_v11, %v1583_v12 }
  0xa8   : > { %3121 = vmatprep.subr.bf16.mxu1 %v3332_v5  ;;  %v2644_v17 = vcombine.low %v1581_v3, %v1584_v44 }
  0xab   : > { %3129 = vmatpush3.bf16.msra.mxu1 %v3332_v5 }
  0xac   : > { %3099 = vmatmul.mubr.bf16.vlgmr.msra.gmra.mrb[64].mxu0 %v3626_v42 }
  0xad   : > { %3102 = vmatprep.mubr.bf16.mxu0 %v3647_v53 }
  0xae   : > { %3107 = vmatmul.mubr.bf16.vlgmr.msra.gmra.mrb[8].mxu1 %v3779_v36 }
  0xaf   : > { %3110 = vmatprep.mubr.bf16.mxu1 %v3789_v41 }
  0xb4   : > { %3103 = vmatmul.mubr.bf16.gmra.mrb[68].mxu0 %v3696_v31 }
  0xb6   : > { %3111 = vmatmul.mubr.bf16.gmra.mrb[12].mxu1 %v2644_v17 }
  0xfe   : > { %v2794_v42 = vpop.f32.mrb[0].mxu0 }
  0xff   : > { %v2795_v16 = vpop.f32.mrb[1].mxu0 }
 0x100   : > { %v2796_v18 = vadd.f32 %v2795_v16, %v2794_v42  ;;  %v2797_v20 = vpop.f32.mrb[2].mxu0 }
 0x101   : > { %v2798_v21 = vpop.f32.mrb[3].mxu0 }
 0x102   : > { %v2799_v53 = vadd.f32 %v2798_v21, %v2797_v20 }
 0x106   : > { %v2800_v22 = vpop.f32.mrb[4].mxu0 }
 0x107   : > { %v2801_v36 = vpop.f32.mrb[5].mxu0 }
 0x108   : > { %v2802_v25 = vadd.f32 %v2801_v36, %v2800_v22  ;;  %v2803_v41 = vpop.f32.mrb[6].mxu0 }
 0x109   : > { %v2804_v19 = vpop.f32.mrb[7].mxu0 }
 0x10a   : > { %v2805_v30 = vadd.f32 %v2804_v19, %v2803_v41 }
 0x10e   : > { %v2806_v33 = vpop.f32.mrb[8].mxu0 }
 0x10f   : > { %v2807_v24 = vpop.f32.mrb[9].mxu0 }
 0x110   : > { %v2808_v32 = vadd.f32 %v2807_v24, %v2806_v33  ;;  %v2809_v35 = vpop.f32.mrb[10].mxu0 }
 0x111   : > { %v2810_v62 = vpop.f32.mrb[11].mxu0 }
 0x112   : > { %v2811_v39 = vadd.f32 %v2810_v62, %v2809_v35 }
 0x116   : > { %v2812_v31 = vpop.f32.mrb[12].mxu0 }
 0x117   : > { %v2813_v54 = vpop.f32.mrb[13].mxu0 }
 0x118   : > { %v2814_v38 = vadd.f32 %v2813_v54, %v2812_v31  ;;  %v2815_v40 = vpop.f32.mrb[14].mxu0 }
 0x119   : > { %v2816_v61 = vpop.f32.mrb[15].mxu0 }
 0x11a   : > { %v2817_v52 = vadd.f32 %v2816_v61, %v2815_v40 }
 0x11e   : > { %v2818_v47 = vpop.f32.mrb[16].mxu0 }
 0x11f   : > { %v2819_v43 = vpop.f32.mrb[17].mxu0 }
 0x120   : > { %v4073_v7 = vadd.f32 %v2819_v43, %v2818_v47  ;;  %v2821_v37 = vpop.f32.mrb[18].mxu0 }
 0x121   : > { %v2874_v28 = vpop.f32.mrb[16].mxu1  ;;  %v2822_v8 = vpop.f32.mrb[19].mxu0 }
 0x122   : > { %v2875_v13 = vpop.f32.mrb[17].mxu1  ;;  %v4075_v29 = vadd.f32 %v2822_v8, %v2821_v37 }
 0x123   : > { %v2876_v27 = vadd.f32 %v2875_v13, %v2874_v28  ;;  %v2877_v34 = vpop.f32.mrb[18].mxu1 }
 0x124   : > { %v2878_v5 = vpop.f32.mrb[19].mxu1 }
 0x125   : > { %v2879_v63 = vadd.f32 %v2878_v5, %v2877_v34  ;;  %v4077_v45 = vadd.f32 %v2876_v27, %v2796_v18 }
 0x127   : > { %v2824_v46 = vpop.f32.mrb[20].mxu0  ;;  %v4079_v50 = vadd.f32 %v2879_v63, %v2799_v53 }
 0x128   : > { %v2825_v48 = vpop.f32.mrb[21].mxu0 }
 0x129   : > { %v4081_v51 = vadd.f32 %v2825_v48, %v2824_v46  ;;  %v2827_v55 = vpop.f32.mrb[22].mxu0  ;;  %v2880_v56 = vpop.f32.mrb[20].mxu1 }
 0x12a   : > { %v2828_v58 = vpop.f32.mrb[23].mxu0  ;;  %v2881_v4 = vpop.f32.mrb[21].mxu1 }
 0x12b   : > { %v4083_v26 = vadd.f32 %v2828_v58, %v2827_v55  ;;  %v2882_v0 = vadd.f32 %v2881_v4, %v2880_v56  ;;  %v2883_v10 = vpop.f32.mrb[22].mxu1 }
 0x12c   : > { %v2884_v6 = vpop.f32.mrb[23].mxu1 }
 0x12d   : > { %v2885_v60 = vadd.f32 %v2884_v6, %v2883_v10  ;;  %v4085_v1 = vadd.f32 %v2882_v0, %v2802_v25 }
 0x12f   : > { %v2830_v9 = vpop.f32.mrb[24].mxu0  ;;  %v4087_v57 = vadd.f32 %v2885_v60, %v2805_v30 }
 0x130   : > { %v2831_v2 = vpop.f32.mrb[25].mxu0 }
 0x131   : > { %v4089_v59 = vadd.f32 %v2831_v2, %v2830_v9  ;;  %v2833_v23 = vpop.f32.mrb[26].mxu0  ;;  %v2886_v49 = vpop.f32.mrb[24].mxu1 }
 0x132   : > { %v2834_v14 = vpop.f32.mrb[27].mxu0  ;;  %v2887_v15 = vpop.f32.mrb[25].mxu1 }
 0x133   : > { %v4091_v11 = vadd.f32 %v2834_v14, %v2833_v23  ;;  %v2888_v12 = vadd.f32 %v2887_v15, %v2886_v49  ;;  %v2889_v3 = vpop.f32.mrb[26].mxu1 }
 0x134   : > { %v2890_v44 = vpop.f32.mrb[27].mxu1 }
 0x135   : > { %v2891_v17 = vadd.f32 %v2890_v44, %v2889_v3  ;;  %v4093_v42 = vadd.f32 %v2888_v12, %v2808_v32 }
 0x137   : > { %v2836_v16 = vpop.f32.mrb[28].mxu0  ;;  %v4095_v20 = vadd.f32 %v2891_v17, %v2811_v39 }
 0x138   : > { %v2837_v18 = vpop.f32.mrb[29].mxu0 }
 0x139   : > { %v4097_v21 = vadd.f32 %v2837_v18, %v2836_v16  ;;  %v2839_v53 = vpop.f32.mrb[30].mxu0  ;;  %v2892_v22 = vpop.f32.mrb[28].mxu1 }
 0x13a   : > { %v2840_v36 = vpop.f32.mrb[31].mxu0  ;;  %v2893_v25 = vpop.f32.mrb[29].mxu1 }
 0x13b   : > { %v4099_v41 = vadd.f32 %v2840_v36, %v2839_v53  ;;  %v2894_v19 = vadd.f32 %v2893_v25, %v2892_v22  ;;  %v2895_v30 = vpop.f32.mrb[30].mxu1 }
 0x13c   : > { %v2896_v33 = vpop.f32.mrb[31].mxu1 }
 0x13d   : > { %v2897_v24 = vadd.f32 %v2896_v33, %v2895_v30  ;;  %v4101_v35 = vadd.f32 %v2894_v19, %v2814_v38 }
 0x13f   : > { %v2954_v32 = vpop.f32.mrb[32].mxu0  ;;  %v4103_v31 = vadd.f32 %v2897_v24, %v2817_v52 }
 0x140   : > { %v2955_v62 = vpop.f32.mrb[33].mxu0 }
 0x141   : > { %v4105_v39 = vadd.f32 %v2955_v62, %v2954_v32  ;;  %v2957_v54 = vpop.f32.mrb[34].mxu0  ;;  %v2898_v40 = vpop.f32.mrb[32].mxu1 }
 0x142   : > { %v2958_v61 = vpop.f32.mrb[35].mxu0  ;;  %v2899_v47 = vpop.f32.mrb[33].mxu1 }
 0x143   : > { %v4107_v43 = vadd.f32 %v2958_v61, %v2957_v54  ;;  %v2900_v37 = vadd.f32 %v2899_v47, %v2898_v40  ;;  %v2901_v28 = vpop.f32.mrb[34].mxu1 }
 0x144   : > { %v2902_v8 = vpop.f32.mrb[35].mxu1 }
 0x145   : > { %v3165_v13 = vadd.f32 %v2900_v37, %v4073_v7  ;;  %v2903_v27 = vadd.f32 %v2902_v8, %v2901_v28 }
 0x147   : > { %v2960_v38 = vpop.f32.mrb[36].mxu0  ;;  %v3171_v34 = vadd.f32 %v2903_v27, %v4075_v29 }
 0x148   : > { %v2961_v5 = vpop.f32.mrb[37].mxu0 }
 0x149   : > { %v2962_v52 = vadd.f32 %v2961_v5, %v2960_v38  ;;  %v2963_v63 = vpop.f32.mrb[38].mxu0  ;;  %v2904_v46 = vpop.f32.mrb[36].mxu1 }
 0x14a   : > { %v2964_v48 = vpop.f32.mrb[39].mxu0  ;;  %v2905_v55 = vpop.f32.mrb[37].mxu1 }
 0x14b   : > { %v2965_v56 = vadd.f32 %v2964_v48, %v2963_v63  ;;  %v2906_v58 = vadd.f32 %v2905_v55, %v2904_v46  ;;  %v2907_v4 = vpop.f32.mrb[38].mxu1 }
 0x14c   : > { %v2908_v0 = vpop.f32.mrb[39].mxu1 }
 0x14d   : > { %v3162_v10 = vadd.f32 %v2906_v58, %v4081_v51  ;;  %v2909_v6 = vadd.f32 %v2908_v0, %v2907_v4 }
 0x14f   : > { %v2966_v60 = vpop.f32.mrb[40].mxu0  ;;  %v3168_v7 = vadd.f32 %v2909_v6, %v4083_v26 }
 0x150   : > { %v2967_v9 = vpop.f32.mrb[41].mxu0 }
 0x151   : > { %v4113_v2 = vadd.f32 %v2967_v9, %v2966_v60  ;;  %v2969_v29 = vpop.f32.mrb[42].mxu0  ;;  %v2910_v23 = vpop.f32.mrb[40].mxu1 }
 0x152   : > { %v2970_v49 = vpop.f32.mrb[43].mxu0  ;;  %v2911_v14 = vpop.f32.mrb[41].mxu1 }
 0x153   : > { %v2971_v15 = vadd.f32 %v2970_v49, %v2969_v29  ;;  %v2912_v12 = vadd.f32 %v2911_v14, %v2910_v23  ;;  %v2913_v3 = vpop.f32.mrb[42].mxu1 }
 0x154   : > { %v2914_v44 = vpop.f32.mrb[43].mxu1 }
 0x155   : > { %v4116_v17 = vadd.f32 %v2912_v12, %v4089_v59  ;;  %v2915_v16 = vadd.f32 %v2914_v44, %v2913_v3 }
 0x157   : > { %v2972_v51 = vpop.f32.mrb[44].mxu0  ;;  %v3183_v18 = vadd.f32 %v2915_v16, %v4091_v11 }
 0x158   : > { %v2973_v53 = vpop.f32.mrb[45].mxu0 }
 0x159   : > { %v2974_v26 = vadd.f32 %v2973_v53, %v2972_v51  ;;  %v2975_v22 = vpop.f32.mrb[46].mxu0  ;;  %v2916_v36 = vpop.f32.mrb[44].mxu1 }
 0x15a   : > { %v2976_v25 = vpop.f32.mrb[47].mxu0  ;;  %v2917_v19 = vpop.f32.mrb[45].mxu1 }
 0x15b   : > { %v2977_v30 = vadd.f32 %v2976_v25, %v2975_v22  ;;  %v2918_v33 = vadd.f32 %v2917_v19, %v2916_v36  ;;  %v2919_v24 = vpop.f32.mrb[46].mxu1 }
 0x15c   : > { %v2920_v32 = vpop.f32.mrb[47].mxu1 }
 0x15d   : > { %v3174_v62 = vadd.f32 %v2918_v33, %v4097_v21  ;;  %v2921_v54 = vadd.f32 %v2920_v32, %v2919_v24 }
 0x15f   : > { %v2978_v40 = vpop.f32.mrb[48].mxu0  ;;  %v3180_v59 = vadd.f32 %v2921_v54, %v4099_v41 }
 0x160   : > { %v2979_v61 = vpop.f32.mrb[49].mxu0 }
 0x161   : > { %v2980_v47 = vadd.f32 %v2979_v61, %v2978_v40  ;;  %v2981_v37 = vpop.f32.mrb[50].mxu0  ;;  %v3068_v11 = vpop.f32.mrb[0].mxu1 }
 0x162   : > { %v2982_v28 = vpop.f32.mrb[51].mxu0  ;;  %v3131_v8 = vadd.f32 %v4085_v1, %v3068_v11  ;;  %v1464_v27 = vpop.f32.mrb[1].mxu1 }
 0x163   : > { %v2983_v38 = vadd.f32 %v2982_v28, %v2981_v37  ;;  %v4122_v5 = vadd.f32 %v3165_v13, %v2980_v47  ;;  %v3135_v63 = vadd.f32 %v4077_v45, %v1464_v27  ;;  %v3069_v46 = vpop.f32.mrb[2].mxu1 }
 0x164   : > { %v3139_v21 = vadd.f32 %v4087_v57, %v3069_v46  ;;  %v1467_v48 = vpop.f32.mrb[3].mxu1  ;;  %v3132_v55 = vadd.f32 %v3131_v8, %v2962_v52 }
 0x165   : > { %v4126_v58 = vadd.f32 %v3171_v34, %v2983_v38  ;;  %v3143_v41 = vadd.f32 %v4079_v50, %v1467_v48  ;;  %v3136_v4 = vadd.f32 %v3135_v63, %v4105_v39 }
 0x166   : > { %v3140_v6 = vadd.f32 %v3139_v21, %v2965_v56 }
 0x167   : > { %v2984_v0 = vpop.f32.mrb[52].mxu0  ;;  %v3144_v60 = vadd.f32 %v3143_v41, %v4107_v43 }
 0x168   : > { %v2985_v1 = vpop.f32.mrb[53].mxu0 }
 0x169   : > { %v2986_v13 = vadd.f32 %v2985_v1, %v2984_v0  ;;  %v2987_v9 = vpop.f32.mrb[54].mxu0  ;;  %v3072_v29 = vpop.f32.mrb[4].mxu1 }
 0x16a   : > { %v2988_v45 = vpop.f32.mrb[55].mxu0  ;;  %v3147_v23 = vadd.f32 %v4101_v35, %v3072_v29  ;;  %v1480_v57 = vpop.f32.mrb[5].mxu1 }
 0x16b   : > { %v2989_v49 = vadd.f32 %v2988_v45, %v2987_v9  ;;  %v3163_v52 = vadd.f32 %v3162_v10, %v2986_v13  ;;  %v3151_v34 = vadd.f32 %v4093_v42, %v1480_v57  ;;  %v3073_v14 = vpop.f32.mrb[6].mxu1 }
 0x16c   : > { %v3155_v50 = vadd.f32 %v4103_v31, %v3073_v14  ;;  %v1483_v39 = vpop.f32.mrb[7].mxu1  ;;  %v4134_v56 = vadd.f32 %v3147_v23, %v2974_v26 }
 0x16d   : > { %v3169_v12 = vadd.f32 %v3168_v7, %v2989_v49  ;;  %v3159_v43 = vadd.f32 %v4095_v20, %v1483_v39  ;;  %v4138_v3 = vadd.f32 %v3151_v34, %v4113_v2 }
 0x16e   : > { %v4140_v16 = vadd.f32 %v3155_v50, %v2977_v30 }
 0x16f   : > { %v2990_v44 = vpop.f32.mrb[56].mxu0  ;;  %v4142_v51 = vadd.f32 %v3159_v43, %v2971_v15 }
 0x170   : > { %v2991_v35 = vpop.f32.mrb[57].mxu0 }
 0x171   : > { %v2992_v10 = vadd.f32 %v2991_v35, %v2990_v44  ;;  %v2993_v42 = vpop.f32.mrb[58].mxu0 }
 0x172   : > { %v2994_v53 = vpop.f32.mrb[59].mxu0 }
 0x173   : > { %v2995_v22 = vadd.f32 %v2994_v53, %v2993_v42  ;;  %v4145_v31 = vadd.f32 %v4116_v17, %v2992_v10 }
 0x175   : > { %v4147_v7 = vadd.f32 %v3183_v18, %v2995_v22 }
 0x177   : > { %v2996_v26 = vpop.f32.mrb[60].mxu0 }
 0x178   : > { %v2997_v20 = vpop.f32.mrb[61].mxu0 }
 0x179   : > { %v2998_v36 = vadd.f32 %v2997_v20, %v2996_v26  ;;  %v2999_v2 = vpop.f32.mrb[62].mxu0 }
 0x17a   : > { %v3000_v25 = vpop.f32.mrb[63].mxu0 }
 0x17b   : > { %v3001_v19 = vadd.f32 %v3000_v25, %v2999_v2  ;;  %v4149_v30 = vadd.f32 %v3174_v62, %v2998_v36 }
 0x17d   : > { %v4151_v33 = vadd.f32 %v3180_v59, %v3001_v19 }
 0x17f   : > { %v3100_v15 = vpop.f32.mrb[64].mxu0 }
 0x180   : > { %v4153_v24 = vadd.f32 %v3132_v55, %v3100_v15  ;;  %v1944_v32 = vpop.f32.mrb[65].mxu0 }
 0x181   : > { %v4155_v17 = vadd.f32 %v3136_v4, %v1944_v32  ;;  %v3101_v18 = vpop.f32.mrb[66].mxu0  ;;  %v3108_v40 = vpop.f32.mrb[8].mxu1 }
 0x182   : > { %v2764_v54 = vpack.c.bf16 %v4153_v24, %v4153_v24  ;;  %v4159_v61 = vadd.f32 %v3140_v6, %v3101_v18  ;;  %v1947_v62 = vpop.f32.mrb[67].mxu0  ;;  %v4161_v59 = vadd.f32 %v3163_v52, %v3108_v40  ;;  %v1976_v37 = vpop.f32.mrb[9].mxu1  ;;  %v2687_v52 = vld [vmem:[%s3460_s20 + $0xc] sm:$0xf]  ;;  %v2707_v18 = vld [vmem:[%s3460_s20 + $0x3c] sm:$0xf] }
 0x183   : > { %v2762_v47 = vpack.c.bf16 %v4155_v17, %v4155_v17  ;;  %v4165_v11 = vadd.f32 %v3144_v60, %v1947_v62  ;;  %v4168_v27 = vadd.f32 %v4122_v5, %v1976_v37  ;;  %v3109_v63 = vpop.f32.mrb[10].mxu1  ;;  %v2692_v60 = vld [vmem:[%s3460_s20 + $0x18] sm:$0xf]  ;;  %v2695_v40 = vld [vmem:[%s3460_s20 + $0x20] sm:$0x1] }
 0x184   : > { %v2171_v28 = vshrl.u32 %v2764_v54, 16  ;;  %v2174_v8 = vshll.u32 %v2764_v54, 16  ;;  %v2765_v38 = vpack.c.bf16 %v4159_v61, %v4159_v61  ;;  %v2772_v46 = vpack.c.bf16 %v4161_v59, %v4161_v59  ;;  %v4176_v41 = vpop.f32.mrb[11].mxu1 }
 0x185   : > { %v2154_v21 = vshrl.u32 %v2762_v47, 16  ;;  %v2157_v48 = vshll.u32 %v2762_v47, 16  ;;  %v4174_v55 = vadd.f32 %v3169_v12, %v3109_v63  ;;  %v2770_v0 = vpack.c.bf16 %v4168_v27, %v4168_v27  ;;  %v2712_v12 = vld [vmem:[%s3460_s20 + $0x48] sm:$0xf] }
 0x186   : > { %v2173_v4 = vrot.slane %v2171_v28, 7  ;;  %v2179_v5 = vshrl.u32 %v2765_v38, 16  ;;  %v2182_v6 = vshll.u32 %v2765_v38, 16  ;;  %v2239_v13 = vshrl.u32 %v2772_v46, 16 }
 0x187   : > { %v2242_v9 = vshll.u32 %v2772_v46, 16  ;;  %v4187_v29 = vrot.slane %v2154_v21, 7  ;;  %v2773_v45 = vpack.c.bf16 %v4174_v55, %v4174_v55  ;;  %v3104_v23 = vpop.f32.mrb[68].mxu0  ;;  %v2222_v34 = vshrl.u32 %v2770_v0, 16  ;;  %v2715_v21 = vld [vmem:[%s3460_s20 + $0x50] sm:$0x1] }
 0x188   : > { %v2176_v57 = vor.u32 %v2174_v8, %v2173_v4  ;;  %v2177_v49 = vrot.slane %v2173_v4, 4  ;;  %v2225_v14 = vshll.u32 %v2770_v0, 16  ;;  %v1960_v50 = vpop.f32.mrb[69].mxu0  ;;  %v2241_v39 = vrot.slane %v2239_v13, 7 }
 0x189   : > { %v2159_v43 = vor.u32 %v2157_v48, %v4187_v29  ;;  %v2160_v44 = vrot.slane %v4187_v29, 4  ;;  %v2181_v35 = vrot.slane %v2179_v5, 7  ;;  %v3105_v10 = vpop.f32.mrb[70].mxu0  ;;  %v4197_v53 = vrot.slane %v2222_v34, 7  ;;  %v3112_v36 = vpop.f32.mrb[12].mxu1 }
 0x18a   : > { %v2329_v42 = vsel %vm4182_vm11, %v2176_v57, %v2692_v60  ;;  %v2247_v26 = vshrl.u32 %v2773_v45, 16  ;;  %v2250_v20 = vshll.u32 %v2773_v45, 16  ;;  %v4205_v2 = vpop.f32.mrb[71].mxu0  ;;  %v2244_v19 = vor.u32 %v2242_v9, %v2241_v39  ;;  %v1992_v62 = vpop.f32.mrb[13].mxu1 }
 0x18b   : > { %2693 = vst [vmem:[%s3460_s20 + $0x18] sm:$0xf] %v2329_v42  ;;  %v2245_v15 = vrot.slane %v2241_v39, 4  ;;  %v2320_v32 = vsel %vm4182_vm11, %v2159_v43, %v2687_v52  ;;  %v2184_v54 = vor.u32 %v2182_v6, %v2181_v35  ;;  %v2227_v47 = vor.u32 %v2225_v14, %v4197_v53  ;;  %v4221_v38 = vpop.f32.mrb[14].mxu1  ;;  %v2690_v42 = vld [vmem:[%s3460_s20 + $0x14] sm:$0x1] }
 0x18c   : > { %2688 = vst [vmem:[%s3460_s20 + $0xc] sm:$0xf] %v2320_v32  ;;  %v2228_v37 = vrot.slane %v4197_v53, 4  ;;  %v2186_v28 = vrot.slane %v2181_v35, 4  ;;  %v2249_v8 = vrot.slane %v2247_v26, 7  ;;  %v2357_v63 = vsel %vm4182_vm11, %v2244_v19, %v2712_v12  ;;  %v4232_v0 = vpop.f32.mrb[15].mxu1 }
 0x18d   : > { %v2185_v46 = vsel %vm4201_vm12, %v2177_v49, %v2184_v54  ;;  %v2023_v48 = vadd.f32 %v4165_v11, %v4155_v17  ;;  %v2763_v4 = vpack.c.bf16 %v4165_v11, %v4165_v11  ;;  %2713 = vst [vmem:[%s3460_s20 + $0x48] sm:$0xf] %v2357_v63  ;;  %v2350_v5 = vsel %vm4182_vm11, %v2227_v47, %v2707_v18  ;;  %v2710_v47 = vld [vmem:[%s3460_s20 + $0x44] sm:$0x1] }
 0x18e   : > { %2694 = vst [vmem:[%s3460_s20 + $0x1c] sm:$0xf] %v2185_v46  ;;  %v2333_v6 = vsel %vm4209_vm13, %v2186_v28, %v2695_v40  ;;  %v2252_v60 = vor.u32 %v2250_v20, %v2249_v8  ;;  %v2254_v13 = vrot.slane %v2249_v8, 4  ;;  %2708 = vst [vmem:[%s3460_s20 + $0x3c] sm:$0xf] %v2350_v5  ;;  %v4245_v49 = vadd.f32 %v4126_v58, %v4176_v41 }
 0x18f   : > { %2696 = vst [vmem:[%s3460_s20 + $0x20] sm:$0x1] %v2333_v6  ;;  %v2024_v9 = vadd.f32 %v4153_v24, %v2023_v48  ;;  %v2162_v45 = vshrl.u32 %v2763_v4, 16  ;;  %v2165_v57 = vshll.u32 %v2763_v4, 16  ;;  %v4252_v14 = vadd.f32 %v4134_v56, %v3104_v23 }
 0x190   : > { %v2253_v52 = vsel %vm4201_vm12, %v2245_v15, %v2252_v60  ;;  %v2361_v34 = vsel %vm4209_vm13, %v2254_v13, %v2715_v21  ;;  %v4255_v39 = vadd.f32 %v4149_v30, %v3112_v36  ;;  %v2771_v58 = vpack.c.bf16 %v4245_v49, %v4245_v49  ;;  %v2702_v60 = vld [vmem:[%s3460_s20 + $0x30] sm:$0xf] }
 0x191   : > { %2714 = vst [vmem:[%s3460_s20 + $0x4c] sm:$0xf] %v2253_v52  ;;  %2716 = vst [vmem:[%s3460_s20 + $0x50] sm:$0x1] %v2361_v34  ;;  %v2164_v12 = vrot.slane %v2162_v45, 7  ;;  %v4262_v41 = vadd.f32 %v4138_v3, %v1960_v50  ;;  %v2025_v43 = vadd.f32 %v4159_v61, %v2024_v9  ;;  %v2768_v56 = vpack.c.bf16 %v4252_v14, %v4252_v14 }
 0x192   : > { %v2729_v35 = vld [vmem:[%s3460_s20 + $0x18] sm:$0x1]  ;;  %v2776_v30 = vpack.c.bf16 %v4255_v39, %v4255_v39  ;;  %v4272_v23 = vadd.f32 %v4145_v31, %v1992_v62  ;;  %v4275_v26 = vadd.f32 %v4140_v16, %v3105_v10  ;;  %v2230_v19 = vshrl.u32 %v2771_v58, 16 }
 0x193   : > { %v2381_v3 = vsel %vm4209_vm13, 0, %v2729_v35  ;;  %v2727_v50 = vld [vmem:[%s3460_s20 + $0xc] sm:$0x1]  ;;  %v2167_v20 = vor.u32 %v2165_v57, %v2164_v12  ;;  %v2169_v36 = vrot.slane %v2164_v12, 4  ;;  %v2233_v10 = vshll.u32 %v2771_v58, 16 }
 0x194   : > { %2730 = vst [vmem:[%s3460_s20 + $0x18] sm:$0x1] %v2381_v3  ;;  %v2378_v16 = vsel %vm4209_vm13, 0, %v2727_v50  ;;  %v2205_v15 = vshrl.u32 %v2768_v56, 16  ;;  %v2208_v32 = vshll.u32 %v2768_v56, 16  ;;  %v2232_v62 = vrot.slane %v2230_v19, 7 }
 0x195   : > { %v2737_v18 = vld [vmem:[%s3460_s20 + $0x48] sm:$0x1]  ;;  %2728 = vst [vmem:[%s3460_s20 + $0xc] sm:$0x1] %v2378_v16  ;;  %v2168_v54 = vsel %vm4201_vm12, %v2160_v44, %v2167_v20  ;;  %v2326_v40 = vsel %vm4209_vm13, %v2169_v36, %v2690_v42  ;;  %v2273_v28 = vshrl.u32 %v2776_v30, 16  ;;  %v2026_v44 = vadd.f32 %v4262_v41, %v2025_v43 }
 0x196   : > { %v2393_v8 = vsel %vm4209_vm13, 0, %v2737_v18  ;;  %v2735_v63 = vld [vmem:[%s3460_s20 + $0x3c] sm:$0x1]  ;;  %v2745_v46 = vld [vmem:[%s3460_s20 + $0x20] sm:$0x1]  ;;  %v4304_v29 = vrot.slane %v2205_v15, 7  ;;  %v2766_v21 = vpack.c.bf16 %v4262_v41, %v4262_v41  ;;  %v2235_v5 = vor.u32 %v2233_v10, %v2232_v62 }
 0x197   : > { %2689 = vst [vmem:[%s3460_s20 + $0x10] sm:$0xf] %v2168_v54  ;;  %2691 = vst [vmem:[%s3460_s20 + $0x14] sm:$0x1] %v2326_v40  ;;  %v2390_v48 = vsel %vm4209_vm13, 0, %v2735_v63  ;;  %v2406_v4 = vsel %vm4283_vm14, 0, %v2745_v46  ;;  %v4345_v3 = vadd.f32 %v4151_v33, %v4221_v38  ;;  %v4352_v36 = vadd.f32 %v4142_v51, %v4205_v2 }
 0x198   : > { %2738 = vst [vmem:[%s3460_s20 + $0x48] sm:$0x1] %v2393_v8  ;;  %v2237_v6 = vrot.slane %v2232_v62, 4  ;;  %2736 = vst [vmem:[%s3460_s20 + $0x3c] sm:$0x1] %v2390_v48  ;;  %v2210_v9 = vor.u32 %v2208_v32, %v4304_v29  ;;  %v4319_v45 = vrot.slane %v2273_v28, 7  ;;  %v2236_v34 = vsel %vm4201_vm12, %v2228_v37, %v2235_v5 }
 0x199   : > { %2746 = vst [vmem:[%s3460_s20 + $0x20] sm:$0x1] %v2406_v4  ;;  %v2753_v13 = vld [vmem:[%s3460_s20 + $0x50] sm:$0x1]  ;;  %v2276_v57 = vshll.u32 %v2776_v30, 16  ;;  %v2188_v43 = vshrl.u32 %v2766_v21, 16  ;;  %v2774_v37 = vpack.c.bf16 %v4272_v23, %v4272_v23  ;;  %v2769_v30 = vpack.c.bf16 %v4275_v26, %v4275_v26 }
 0x19a   : > { %v2418_v52 = vsel %vm4283_vm14, 0, %v2753_v13  ;;  %v2354_v12 = vsel %vm4209_vm13, %v2237_v6, %v2710_v47  ;;  %v2722_v58 = vld [vmem:[%s3460_s20 + $0x60] sm:$0xf]  ;;  %2709 = vst [vmem:[%s3460_s20 + $0x40] sm:$0xf] %v2236_v34  ;;  %v2343_v35 = vsel %vm4182_vm11, %v2210_v9, %v2702_v60  ;;  %v2191_v53 = vshll.u32 %v2766_v21, 16 }
 0x19b   : > { %2754 = vst [vmem:[%s3460_s20 + $0x50] sm:$0x1] %v2418_v52  ;;  %2711 = vst [vmem:[%s3460_s20 + $0x44] sm:$0x1] %v2354_v12  ;;  %v2278_v42 = vor.u32 %v2276_v57, %v4319_v45  ;;  %v4337_v56 = vrot.slane %v2188_v43, 7  ;;  %v4356_v19 = vadd.f32 %v4147_v7, %v4232_v0  ;;  %v2211_v10 = vrot.slane %v4304_v29, 4 }
 0x19c   : > { %2703 = vst [vmem:[%s3460_s20 + $0x30] sm:$0xf] %v2343_v35  ;;  %v2697_v20 = vld [vmem:[%s3460_s20 + $0x24] sm:$0xf]  ;;  %v2279_v33 = vrot.slane %v4319_v45, 4  ;;  %v2256_v15 = vshrl.u32 %v2774_v37, 16  ;;  %v2777_v7 = vpack.c.bf16 %v4345_v3, %v4345_v3  ;;  %v2027_v54 = vadd.f32 %v4352_v36, %v2026_v44 }
 0x19d   : > { %v2371_v50 = vsel %vm4182_vm11, %v2278_v42, %v2722_v58  ;;  %v2193_v38 = vor.u32 %v2191_v53, %v4337_v56  ;;  %v2259_v2 = vshll.u32 %v2774_v37, 16  ;;  %v2213_v32 = vshrl.u32 %v2769_v30, 16  ;;  %v2717_v62 = vld [vmem:[%s3460_s20 + $0x54] sm:$0xf]  ;;  %v2705_v21 = vld [vmem:[%s3460_s20 + $0x38] sm:$0x1] }
 0x19e   : > { %v2743_v16 = vld [vmem:[%s3460_s20 + $0x14] sm:$0x1]  ;;  %2723 = vst [vmem:[%s3460_s20 + $0x60] sm:$0xf] %v2371_v50  ;;  %v4370_v18 = vrot.slane %v2256_v15, 7  ;;  %v2767_v40 = vpack.c.bf16 %v4352_v36, %v4352_v36  ;;  %v2216_v28 = vshll.u32 %v2769_v30, 16  ;;  %v2028_v48 = vadd.f32 %v4252_v14, %v2027_v54 }
 0x19f   : > { %v2403_v51 = vsel %vm4283_vm14, 0, %v2743_v16  ;;  %v2336_v0 = vsel %vm4182_vm11, %v2193_v38, %v2697_v20  ;;  %v2215_v47 = vrot.slane %v2213_v32, 7  ;;  %v2281_v8 = vshrl.u32 %v2777_v7, 16  ;;  %v2725_v52 = vld [vmem:[%s3460_s20 + $0x68] sm:$0x1] }
 0x1a0   : > { %2744 = vst [vmem:[%s3460_s20 + $0x14] sm:$0x1] %v2403_v51  ;;  %2698 = vst [vmem:[%s3460_s20 + $0x24] sm:$0xf] %v2336_v0  ;;  %v2284_v63 = vshll.u32 %v2777_v7, 16  ;;  %v2261_v29 = vor.u32 %v2259_v2, %v4370_v18  ;;  %v2196_v44 = vshrl.u32 %v2767_v40, 16  ;;  %v2775_v4 = vpack.c.bf16 %v4356_v19, %v4356_v19 }
 0x1a1   : > { %v2218_v60 = vor.u32 %v2216_v28, %v2215_v47  ;;  %v2220_v13 = vrot.slane %v2215_v47, 4  ;;  %v2283_v9 = vrot.slane %v2281_v8, 7  ;;  %v2029_v34 = vadd.f32 %v4275_v26, %v2028_v48  ;;  %v2700_v53 = vld [vmem:[%s3460_s20 + $0x2c] sm:$0x1] }
 0x1a2   : > { %v2751_v46 = vld [vmem:[%s3460_s20 + $0x44] sm:$0x1]  ;;  %v2364_v57 = vsel %vm4182_vm11, %v2261_v29, %v2717_v62  ;;  %v2198_v12 = vrot.slane %v2196_v44, 7  ;;  %v2199_v50 = vshll.u32 %v2767_v40, 16  ;;  %v2264_v38 = vshrl.u32 %v2775_v4, 16 }
 0x1a3   : > { %v2415_v5 = vsel %vm4283_vm14, 0, %v2751_v46  ;;  %v2733_v6 = vld [vmem:[%s3460_s20 + $0x30] sm:$0x1]  ;;  %2718 = vst [vmem:[%s3460_s20 + $0x54] sm:$0xf] %v2364_v57  ;;  %v2219_v43 = vsel %vm4201_vm12, %v2211_v10, %v2218_v60  ;;  %v2347_v35 = vsel %vm4209_vm13, %v2220_v13, %v2705_v21  ;;  %v2286_v42 = vor.u32 %v2284_v63, %v2283_v9 }
 0x1a4   : > { %2752 = vst [vmem:[%s3460_s20 + $0x44] sm:$0x1] %v2415_v5  ;;  %v2387_v45 = vsel %vm4209_vm13, 0, %v2733_v6  ;;  %v2288_v1 = vrot.slane %v2283_v9, 4  ;;  %2704 = vst [vmem:[%s3460_s20 + $0x34] sm:$0xf] %v2219_v43  ;;  %v2030_v30 = vadd.f32 %v4168_v27, %v2029_v34  ;;  %v2201_v2 = vor.u32 %v2199_v50, %v2198_v12 }
 0x1a5   : > { %2734 = vst [vmem:[%s3460_s20 + $0x30] sm:$0x1] %v2387_v45  ;;  %v2741_v58 = vld [vmem:[%s3460_s20 + $0x60] sm:$0x1]  ;;  %2706 = vst [vmem:[%s3460_s20 + $0x38] sm:$0x1] %v2347_v35  ;;  %v2287_v16 = vsel %vm4201_vm12, %v2279_v33, %v2286_v42 }
 0x1a6   : > { %v2399_v37 = vsel %vm4209_vm13, 0, %v2741_v58  ;;  %v2203_v20 = vrot.slane %v2198_v12, 4  ;;  %v2375_v10 = vsel %vm4209_vm13, %v2288_v1, %v2725_v52  ;;  %v2194_v15 = vrot.slane %v4337_v56, 4  ;;  %2724 = vst [vmem:[%s3460_s20 + $0x64] sm:$0xf] %v2287_v16 }
 0x1a7   : > { %2742 = vst [vmem:[%s3460_s20 + $0x60] sm:$0x1] %v2399_v37  ;;  %v2731_v51 = vld [vmem:[%s3460_s20 + $0x24] sm:$0x1]  ;;  %2726 = vst [vmem:[%s3460_s20 + $0x68] sm:$0x1] %v2375_v10  ;;  %v2031_v7 = vadd.f32 %v4245_v49, %v2030_v30 }
 0x1a8   : > { %v2340_v32 = vsel %vm4209_vm13, %v2203_v20, %v2700_v53  ;;  %v2384_v33 = vsel %vm4209_vm13, 0, %v2731_v51  ;;  %v2266_v0 = vrot.slane %v2264_v38, 7  ;;  %v2267_v54 = vshll.u32 %v2775_v4, 16  ;;  %v2720_v62 = vld [vmem:[%s3460_s20 + $0x5c] sm:$0x1] }
 0x1a9   : > { %2701 = vst [vmem:[%s3460_s20 + $0x2c] sm:$0x1] %v2340_v32  ;;  %2732 = vst [vmem:[%s3460_s20 + $0x24] sm:$0x1] %v2384_v33  ;;  %v2202_v56 = vsel %vm4201_vm12, %v2194_v15, %v2201_v2  ;;  %v2032_v40 = vadd.f32 %v4161_v59, %v2031_v7  ;;  %v2262_v47 = vrot.slane %v4370_v18, 4 }
 0x1aa   : > { %2699 = vst [vmem:[%s3460_s20 + $0x28] sm:$0xf] %v2202_v56  ;;  %v2269_v28 = vor.u32 %v2267_v54, %v2266_v0  ;;  %v2271_v8 = vrot.slane %v2266_v0, 4  ;;  %v2739_v63 = vld [vmem:[%s3460_s20 + $0x54] sm:$0x1] }
 0x1ab   : > { %v2033_v46 = vadd.f32 %v4174_v55, %v2032_v40  ;;  %v2396_v29 = vsel %vm4209_vm13, 0, %v2739_v63 }
 0x1ac   : > { %v2749_v21 = vld [vmem:[%s3460_s20 + $0x38] sm:$0x1]  ;;  %v2270_v48 = vsel %vm4201_vm12, %v2262_v47, %v2269_v28  ;;  %v2368_v18 = vsel %vm4209_vm13, %v2271_v8, %v2720_v62  ;;  %2740 = vst [vmem:[%s3460_s20 + $0x54] sm:$0x1] %v2396_v29 }
 0x1ad   : > { %v2412_v44 = vsel %vm4283_vm14, 0, %v2749_v21  ;;  %v2034_v4 = vadd.f32 %v4272_v23, %v2033_v46  ;;  %2719 = vst [vmem:[%s3460_s20 + $0x58] sm:$0xf] %v2270_v48  ;;  %2721 = vst [vmem:[%s3460_s20 + $0x5c] sm:$0x1] %v2368_v18 }
 0x1ae   : > { %2750 = vst [vmem:[%s3460_s20 + $0x38] sm:$0x1] %v2412_v44  ;;  %v2757_v5 = vld [vmem:[%s3460_s20 + $0x68] sm:$0x1] }
 0x1af   : > { %v2424_v22 = vsel %vm4283_vm14, 0, %v2757_v5  ;;  %v2035_v25 = vadd.f32 %v4356_v19, %v2034_v4 }
 0x1b0   : > { %v2747_v6 = vld [vmem:[%s3460_s20 + $0x2c] sm:$0x1]  ;;  %2758 = vst [vmem:[%s3460_s20 + $0x68] sm:$0x1] %v2424_v22 }
 0x1b1   : > { %v2409_v60 = vsel %vm4283_vm14, 0, %v2747_v6  ;;  %v2036_v13 = vadd.f32 %v4255_v39, %v2035_v25 }
 0x1b2   : > { %2748 = vst [vmem:[%s3460_s20 + $0x2c] sm:$0x1] %v2409_v60 }
 0x1b3   : > { %v2037_v9 = vadd.f32 %v4345_v3, %v2036_v13 }
 0x1b4   : > { %v2755_v45 = vld [vmem:[%s3460_s20 + $0x5c] sm:$0x1] }
 0x1b5   : > { %v2038_v57 = vrot.slane %v2037_v9, 4  ;;  %v2421_v52 = vsel %vm4283_vm14, 0, %v2755_v45 }
 0x1b6   : > { %2756 = vst [vmem:[%s3460_s20 + $0x5c] sm:$0x1] %v2421_v52 }
 0x1b7   : > { %v2039_v34 = vadd.f32 %v2038_v57, %v2037_v9 }
 0x1b9   : > { %v2040_v12 = vrot.slane %v2039_v34, 2 }
 0x1bb   : > { %v2041_v58 = vadd.f32 %v2040_v12, %v2039_v34 }
 0x1bd   : > { %v2042_v43 = vrot.slane %v2041_v58, 1 }
 0x1bf   : > { %v2043_v35 = vadd.f32 %v2042_v43, %v2041_v58 }
 0x1c1   : > { %v2045_v42 = vmul.f32 0.0078125, %v2043_v35  ;;  %2046 = vst [vmem:[%s4465_s29] sm:$0x1] %v2043_v35 }
 0x1c3   : > { %v2047_v1 = vsub.f32 %v4155_v17, %v2045_v42  ;;  %v2048_v31 = vsub.f32 %v4165_v11, %v2045_v42  ;;  %v2050_v53 = vsub.f32 %v4159_v61, %v2045_v42  ;;  %v2051_v37 = vsub.f32 %v4262_v41, %v2045_v42 }
 0x1c4   : > { %v2052_v30 = vsub.f32 %v4352_v36, %v2045_v42  ;;  %v2053_v50 = vsub.f32 %v4252_v14, %v2045_v42  ;;  %v2054_v20 = vsub.f32 %v4275_v26, %v2045_v42  ;;  %v2055_v16 = vsub.f32 %v4168_v27, %v2045_v42 }
 0x1c5   : > { %v2056_v10 = vsub.f32 %v4245_v49, %v2045_v42  ;;  %v2057_v38 = vsub.f32 %v4161_v59, %v2045_v42  ;;  %v2058_v17 = vsub.f32 %v4174_v55, %v2045_v42  ;;  %v2059_v11 = vsub.f32 %v4272_v23, %v2045_v42 }
 0x1c6   : > { %v2060_v61 = vsub.f32 %v4356_v19, %v2045_v42  ;;  %v2061_v41 = vsub.f32 %v4255_v39, %v2045_v42  ;;  %v2062_v36 = vsub.f32 %v4345_v3, %v2045_v42  ;;  %v2049_v14 = vsub.f32 %v4153_v24, %v2045_v42 }
 0x1c7   : > { %v2063_v15 = vmul.f32 %v2047_v1, %v2047_v1  ;;  %v2064_v26 = vmul.f32 %v2048_v31, %v2048_v31  ;;  %v2066_v2 = vmul.f32 %v2050_v53, %v2050_v53  ;;  %v2067_v32 = vmul.f32 %v2051_v37, %v2051_v37 }
 0x1c8   : > { %v2065_v51 = vmul.f32 %v2049_v14, %v2049_v14  ;;  %v2068_v7 = vmul.f32 %v2052_v30, %v2052_v30  ;;  %v2069_v33 = vmul.f32 %v2053_v50, %v2053_v50  ;;  %v2070_v0 = vmul.f32 %v2054_v20, %v2054_v20 }
 0x1c9   : > { %v2079_v27 = vadd.f32 %v2064_v26, %v2063_v15  ;;  %v2071_v54 = vmul.f32 %v2055_v16, %v2055_v16  ;;  %v2072_v56 = vmul.f32 %v2056_v10, %v2056_v10  ;;  %v2073_v40 = vmul.f32 %v2057_v38, %v2057_v38 }
 0x1ca   : > { %v2074_v62 = vmul.f32 %v2058_v17, %v2058_v17  ;;  %v2075_v28 = vmul.f32 %v2059_v11, %v2059_v11  ;;  %v2076_v63 = vmul.f32 %v2060_v61, %v2060_v61  ;;  %v2077_v29 = vmul.f32 %v2061_v41, %v2061_v41 }
 0x1cb   : > { %v2080_v49 = vadd.f32 %v2079_v27, %v2065_v51  ;;  %v2078_v48 = vmul.f32 %v2062_v36, %v2062_v36 }
 0x1cd   : > { %v2081_v59 = vadd.f32 %v2080_v49, %v2066_v2 }
 0x1cf   : > { %v2082_v55 = vadd.f32 %v2081_v59, %v2067_v32 }
 0x1d1   : > { %v2083_v23 = vadd.f32 %v2082_v55, %v2068_v7 }
 0x1d3   : > { %v2084_v19 = vadd.f32 %v2083_v23, %v2069_v33 }
 0x1d5   : > { %v2085_v39 = vadd.f32 %v2084_v19, %v2070_v0 }
 0x1d7   : > { %v2086_v3 = vadd.f32 %v2085_v39, %v2071_v54 }
 0x1d9   : > { %v2087_v24 = vadd.f32 %v2086_v3, %v2072_v56 }
 0x1db   : > { %v2088_v47 = vadd.f32 %v2087_v24, %v2073_v40 }
 0x1dd   : > { %v2089_v8 = vadd.f32 %v2088_v47, %v2074_v62 }
 0x1df   : > { %v2090_v46 = vadd.f32 %v2089_v8, %v2075_v28 }
 0x1e1   : > { %v2091_v21 = vadd.f32 %v2090_v46, %v2076_v63 }
 0x1e3   : > { %v2092_v18 = vadd.f32 %v2091_v21, %v2077_v29 }
 0x1e5   : > { %v2093_v44 = vadd.f32 %v2092_v18, %v2078_v48 }
 0x1e7   : > { %v2094_v4 = vrot.slane %v2093_v44, 4 }
 0x1e9   : > { %v2095_v5 = vadd.f32 %v2094_v4, %v2093_v44 }
 0x1eb   : > { %v2096_v22 = vrot.slane %v2095_v5, 2 }
 0x1ed   : > { %v2097_v6 = vadd.f32 %v2096_v22, %v2095_v5 }
 0x1ef   : > { %v2098_v25 = vrot.slane %v2097_v6, 1 }
 0x1f1   : > { %v2099_v60 = vadd.f32 %v2098_v25, %v2097_v6 }
 0x1f3   : > { %2100 = vst [vmem:[%s4465_s29 + $0x1] sm:$0x1] %v2099_v60 }
 0x1f4 PF: > { %s14_s16 = sadd.s32 1, %s3371_s16   ;;  %s4516_s12 = smov %s3363_s14 }
 0x1f5   : > { %p11_p7 = scmp.ge.s32.totalorder %s14_s16, 6   ;;  %s4517_s13 = smov %s3367_s15 }
 0x1f6   : > { %s4518_s14 = smov %s4521_s17  ;;  %s4519_s15 = smov %s4525_s18 }
 0x1f7   :  { %13 = sbr.rel (!%p11_p7) target bundleno = 3 (0x3), region = 72 }

</bundles_post_ra>
